<compile_context>
chip_gen: v5e
topology: v5e:2x2
jax: 0.10.0
libtpu: 0.0.40
codegen_flags: <defaults>
</compile_context>

<pallas_src>
import functools

import jax
import jax.numpy as jnp
from jax import lax
from jax.experimental import pallas as pl
from jax.experimental.pallas import tpu as pltpu

LN_EPS = 1e-5
BN_EPS = 1e-5

# MXU operand dtype.  bf16 operands + f32 accumulation (preferred_element_type)
# per the perf review; set to None for exact f32 matmul operands.
MATMUL_DTYPE = jnp.bfloat16

# PyTorch nn.GELU() is exact (erf).  Set True on v5e to route the activation to
# the EUP (tanh) instead of a long VALU erf polynomial (numerics deviate).
GELU_APPROX_TANH = False


def _default_vmem_limit():
    # ~80% of physical VMEM, capped at 100 MiB:
    #   v5e/v6e (128 MiB) -> 100 MiB, v7x (64 MiB) -> ~51 MiB.
    try:
        cap = pltpu.get_tpu_info().vmem_capacity_bytes
        return int(min(cap * 0.8, 100 * 1024 * 1024))
    except Exception:
        return 52 * 1024 * 1024


_VMEM_LIMIT = _default_vmem_limit()


def _gelu(x):
    if GELU_APPROX_TANH:
        c = 0.7978845608028654  # sqrt(2/pi)
        return 0.5 * x * (1.0 + jnp.tanh(c * (x + 0.044715 * x * x * x)))
    return 0.5 * x * (1.0 + lax.erf(x * 0.7071067811865476))


def _pick_tile(dim, pref, align):
    """Largest divisor of `dim` that is <= `pref` and a multiple of `align`.

    Never silently falls back to the full dimension when dim > pref (unless no
    aligned divisor exists at all, in which case the full dim is the only
    layout-legal choice).
    """
    if dim <= pref:
        return dim
    start = pref - (pref % align)
    for t in range(start, 0, -align):
        if dim % t == 0:
            return t
    # No aligned divisor <= pref: smallest aligned divisor above pref, else full.
    for t in range(start + align, dim, align):
        if dim % t == 0:
            return t
    return dim


def _ln_rows(y, g_ref, b_ref, eps):
    """Row-wise LayerNorm of an f32 [rows, N] tile; g/b are (1, N) refs."""
    mean = jnp.mean(y, axis=-1, keepdims=True)
    var = jnp.mean(jnp.square(y - mean), axis=-1, keepdims=True)
    yn = (y - mean) * lax.rsqrt(var + eps)
    return yn * g_ref[...].astype(jnp.float32) + b_ref[...].astype(jnp.float32)


# --------------------------------------------------------------------------
# Tiled linear with fused epilogue (bias / GELU / residual / LayerNorm /
# second "LN of output" output for fused pre-norms).
# --------------------------------------------------------------------------

def linear(x, w, b, *, act=None, residual=None, ln=None, ln_out=None,
           ln_eps=LN_EPS, tm=512, tn=1024, tk=512):
    """y = epilogue(x @ w + b).   x:[M,K]  w:[K,N]  b:[N].

    epilogue order: +bias -> act -> +residual -> (LayerNorm if `ln`).
    If `ln_out` is given, a second output LN(y) is produced (fused pre-norm of
    the *next* block); returns (y, ln_y).  LN variants force TN == N.
    """
    M, K = x.shape
    Kw, N = w.shape
    assert Kw == K
    cd = MATMUL_DTYPE
    wc = w if cd is None else w.astype(cd)

    has_res = residual is not None
    has_ln = ln is not None
    has_ln_out = ln_out is not None
    full_n = has_ln or has_ln_out

    TM = _pick_tile(M, tm, 8)
    TK = _pick_tile(K, tk, 128)
    TN = N if full_n else _pick_tile(N, tn, 128)
    gm, gn, gk = M // TM, N // TN, K // TK

    in_specs = [pl.BlockSpec((TM, TK), lambda i, j, k: (i, k)),
                pl.BlockSpec((TK, TN), lambda i, j, k: (k, j)),
                pl.BlockSpec((1, TN), lambda i, j, k: (0, j))]
    inputs = [x, wc, b.reshape(1, N)]
    if has_res:
        in_specs.append(pl.BlockSpec((TM, TN), lambda i, j, k: (i, j)))
        inputs.append(residual)
    if has_ln:
        g, be = ln
        in_specs += [pl.BlockSpec((1, TN), lambda i, j, k: (0, j)),
                     pl.BlockSpec((1, TN), lambda i, j, k: (0, j))]
        inputs += [g.reshape(1, N), be.reshape(1, N)]
    if has_ln_out:
        g2, be2 = ln_out
        in_specs += [pl.BlockSpec((1, TN), lambda i, j, k: (0, j)),
                     pl.BlockSpec((1, TN), lambda i, j, k: (0, j))]
        inputs += [g2.reshape(1, N), be2.reshape(1, N)]

    out_shape = jax.ShapeDtypeStruct((M, N), x.dtype)
    out_specs = pl.BlockSpec((TM, TN), lambda i, j, k: (i, j))
    if has_ln_out:
        out_shape = (out_shape, jax.ShapeDtypeStruct((M, N), x.dtype))
        out_specs = (out_specs, pl.BlockSpec((TM, TN), lambda i, j, k: (i, j)))

    # gk == 1 (K fits one tile) skips the accumulator scratch entirely.
    scratch = [pltpu.VMEM((TM, TN), jnp.float32)] if gk > 1 else []

    def kernel(*refs):
        x_ref, w_ref, b_ref = refs[:3]
        idx = 3
        res_ref = lng = lnb = log = lob = None
        if has_res:
            res_ref = refs[idx]; idx += 1
        if has_ln:
            lng, lnb = refs[idx], refs[idx + 1]; idx += 2
        if has_ln_out:
            log, lob = refs[idx], refs[idx + 1]; idx += 2
        o_ref = refs[idx]; idx += 1
        o2_ref = None
        if has_ln_out:
            o2_ref = refs[idx]; idx += 1
        acc_ref = refs[idx] if gk > 1 else None

        def matmul_tile():
            a = x_ref[...]
            if cd is not None and a.dtype != cd:
                a = a.astype(cd)
            return jnp.dot(a, w_ref[...], preferred_element_type=jnp.float32)

        def epilogue(acc):
            y = acc + b_ref[...].astype(jnp.float32)
            if act == "gelu":
                y = _gelu(y)
            if res_ref is not None:
                y = y + res_ref[...].astype(jnp.float32)
            if has_ln:
                y = _ln_rows(y, lng, lnb, ln_eps)
            o_ref[...] = y.astype(o_ref.dtype)
            if has_ln_out:
                o2_ref[...] = _ln_rows(y, log, lob, ln_eps).astype(o2_ref.dtype)

        if gk == 1:
            epilogue(matmul_tile())
        else:
            kk = pl.program_id(2)

            @pl.when(kk == 0)
            def _():
                acc_ref[...] = jnp.zeros_like(acc_ref)

            acc_ref[...] += matmul_tile()

            @pl.when(kk == pl.num_programs(2) - 1)
            def _():
                epilogue(acc_ref[...])

    return pl.pallas_call(
        kernel,
        out_shape=out_shape,
        grid=(gm, gn, gk),
        in_specs=in_specs,
        out_specs=out_specs,
        scratch_shapes=scratch,
        compiler_params=pltpu.CompilerParams(
            dimension_semantics=("parallel", "parallel", "arbitrary"),
            vmem_limit_bytes=_VMEM_LIMIT),
    )(*inputs)


# --------------------------------------------------------------------------
# Standalone LayerNorm (only used for the very first transformer pre-norm;
# all other pre-norms are fused into the producing matmul).
# --------------------------------------------------------------------------

def _layernorm_kernel(x_ref, g_ref, b_ref, o_ref, *, eps):
    y = x_ref[...].astype(jnp.float32)
    o_ref[...] = _ln_rows(y, g_ref, b_ref, eps).astype(o_ref.dtype)


def layernorm(x, g, b, eps=LN_EPS, tm=256):
    M, D = x.shape
    TM = _pick_tile(M, tm, 8)
    return pl.pallas_call(
        functools.partial(_layernorm_kernel, eps=eps),
        out_shape=jax.ShapeDtypeStruct((M, D), x.dtype),
        grid=(M // TM,),
        in_specs=[pl.BlockSpec((TM, D), lambda i: (i, 0)),
                  pl.BlockSpec((1, D), lambda i: (0, 0)),
                  pl.BlockSpec((1, D), lambda i: (0, 0))],
        out_specs=pl.BlockSpec((TM, D), lambda i: (i, 0)),
        compiler_params=pltpu.CompilerParams(
            dimension_semantics=("parallel",),
            vmem_limit_bytes=_VMEM_LIMIT),
    )(x, g.reshape(1, D), b.reshape(1, D))


# --------------------------------------------------------------------------
# Conv1d ('same', stride=1) tiled over Cout, with fused eval-BatchNorm
# (folded scale/shift) + GELU + residual.  Halo handled with pltpu.roll.
# --------------------------------------------------------------------------

def _conv_kernel(*refs, K, pad, act, has_res, cd):
    x_ref, w_ref, scale_ref, shift_ref = refs[:4]
    if has_res:
        res_ref, o_ref = refs[4], refs[5]
    else:
        res_ref, o_ref = None, refs[4]

    x = x_ref[0]                                  # (L, Cin)
    L = x.shape[0]
    TC = o_ref.shape[-1]
    rows = lax.broadcasted_iota(jnp.int32, (L, 1), 0)

    acc = jnp.zeros((L, TC), jnp.float32)
    for k in range(K):                            # tiny static unroll (K == 3)
        d = k - pad
        if d == 0:
            xs = x
        else:
            # Row l of xs must hold x[l + d]; rows with l + d outside [0, L)
            # are zero (the 'same' padding halo).  Rotation runs on the XLU.
            xs = pltpu.roll(x, (-d) % L, 0)
            if d > 0:
                xs = jnp.where(rows < L - d, xs, 0.0)
            else:
                xs = jnp.where(rows >= -d, xs, 0.0)
        if cd is not None and xs.dtype != cd:
            xs = xs.astype(cd)
        acc = acc + jnp.dot(xs, w_ref[k], preferred_element_type=jnp.float32)

    y = (acc * scale_ref[...].astype(jnp.float32)
         + shift_ref[...].astype(jnp.float32))
    if act == "gelu":
        y = _gelu(y)
    if has_res:
        y = y + res_ref[0].astype(jnp.float32)
    o_ref[0] = y.astype(o_ref.dtype)


def conv1d_bn_gelu(x, w, scale, shift, act=None, residual=None, tc=256):
    """Conv1d (stride=1, padding=K//2) with fused per-channel affine, GELU and
    optional residual add.  x:[B,L,Cin]  w:[K,Cin,Cout]  scale,shift:[Cout] (f32).
    out = act(conv(x, w) * scale + shift) (+ residual)
    """
    B, L, Cin = x.shape
    K, _, Cout = w.shape
    pad = K // 2
    cd = MATMUL_DTYPE
    wc = w if cd is None else w.astype(cd)
    TC = _pick_tile(Cout, tc, 128)
    gc = Cout // TC
    has_res = residual is not None

    in_specs = [pl.BlockSpec((1, L, Cin), lambda b, j: (b, 0, 0)),
                pl.BlockSpec((K, Cin, TC), lambda b, j: (0, 0, j)),
                pl.BlockSpec((1, TC), lambda b, j: (0, j)),
                pl.BlockSpec((1, TC), lambda b, j: (0, j))]
    inputs = [x, wc, scale.reshape(1, Cout), shift.reshape(1, Cout)]
    if has_res:
        in_specs.append(pl.BlockSpec((1, L, TC), lambda b, j: (b, 0, j)))
        inputs.append(residual)

    # TODO(synk): very long L could additionally be tiled over L (halo via
    # element-offset index maps); full-L blocks fit VMEM for typical shapes.
    return pl.pallas_call(
        functools.partial(_conv_kernel, K=K, pad=pad, act=act,
                          has_res=has_res, cd=cd),
        out_shape=jax.ShapeDtypeStruct((B, L, Cout), x.dtype),
        grid=(B, gc),
        in_specs=in_specs,
        out_specs=pl.BlockSpec((1, L, TC), lambda b, j: (b, 0, j)),
        compiler_params=pltpu.CompilerParams(
            dimension_semantics=("parallel", "parallel"),
            vmem_limit_bytes=_VMEM_LIMIT),
    )(*inputs)


# --------------------------------------------------------------------------
# Flash-style multi-head attention (shared by self-attn and cross-attn pool).
# q:[Bq,Lq,D] (Bq==1 when queries are shared across the batch), kv:[B,Lk,2D]
# packed k|v.  Grid = (B, Lq/TQ, Lk/TKV) with the KV axis innermost.
# --------------------------------------------------------------------------

def _flash_attn_kernel(q_ref, kv_ref, o_ref, m_ref, l_ref, acc_ref, *,
                       num_heads, scale, cd):
    D = o_ref.shape[-1]
    Dh = D // num_heads
    ki = pl.program_id(2)

    @pl.when(ki == 0)
    def _():
        m_ref[...] = jnp.full_like(m_ref, -jnp.inf)
        l_ref[...] = jnp.zeros_like(l_ref)
        acc_ref[...] = jnp.zeros_like(acc_ref)

    q = q_ref[0]                                  # (TQ, D)
    kv = kv_ref[0]                                # (TKV, 2D)
    for h in range(num_heads):
        sl = slice(h * Dh, (h + 1) * Dh)
        qh = q[:, sl]
        kh = kv[:, sl]
        vh = kv[:, D + h * Dh:D + (h + 1) * Dh]
        if cd is not None:
            qh = qh.astype(cd)
            kh = kh.astype(cd)
            vh = vh.astype(cd)
        s = lax.dot_general(qh, kh, (((1,), (1,)), ((), ())),
                            preferred_element_type=jnp.float32) * scale
        m_prev = m_ref[h]                         # (TQ, 1)
        m_new = jnp.maximum(m_prev, jnp.max(s, axis=-1, keepdims=True))
        alpha = jnp.exp(m_prev - m_new)
        p = jnp.exp(s - m_new)
        l_ref[h] = alpha * l_ref[h] + jnp.sum(p, axis=-1, keepdims=True)
        acc_ref[:, sl] = alpha * acc_ref[:, sl] + jnp.dot(
            p.astype(qh.dtype), vh, preferred_element_type=jnp.float32)
        m_ref[h] = m_new

    @pl.when(ki == pl.num_programs(2) - 1)
    def _():
        for h in range(num_heads):
            sl = slice(h * Dh, (h + 1) * Dh)
            # Exact softmax normalization (no approx reciprocal); direct
            # per-head slice write, no concat.
            o_ref[0, :, sl] = (acc_ref[:, sl] / l_ref[h]).astype(o_ref.dtype)


def flash_attention(q, kv, num_heads, *, shared_q=False, tq=256, tkv=512):
    _, Lq, D = q.shape
    B, Lk, D2 = kv.shape
    assert D2 == 2 * D
    scale = 1.0 / float(D // num_heads) ** 0.5
    TQ = _pick_tile(Lq, tq, 8)
    TKV = _pick_tile(Lk, tkv, 8)
    q_map = ((lambda b, qi, ki: (0, qi, 0)) if shared_q
             else (lambda b, qi, ki: (b, qi, 0)))
    return pl.pallas_call(
        functools.partial(_flash_attn_kernel, num_heads=num_heads,
                          scale=scale, cd=MATMUL_DTYPE),
        out_shape=jax.ShapeDtypeStruct((B, Lq, D), kv.dtype),
        grid=(B, Lq // TQ, Lk // TKV),
        in_specs=[pl.BlockSpec((1, TQ, D), q_map),
                  pl.BlockSpec((1, TKV, D2), lambda b, qi, ki: (b, ki, 0))],
        out_specs=pl.BlockSpec((1, TQ, D), lambda b, qi, ki: (b, qi, 0)),
        scratch_shapes=[pltpu.VMEM((num_heads, TQ, 1), jnp.float32),
                        pltpu.VMEM((num_heads, TQ, 1), jnp.float32),
                        pltpu.VMEM((TQ, D), jnp.float32)],
        compiler_params=pltpu.CompilerParams(
            dimension_semantics=("parallel", "parallel", "arbitrary"),
            vmem_limit_bytes=_VMEM_LIMIT),
    )(q, kv)


# --------------------------------------------------------------------------
# Model glue (plain JAX around the Pallas kernels)
# --------------------------------------------------------------------------

def attention_pooling(h, ap, num_heads):
    """Learned queries cross-attend to conv features; out-proj + LN fused."""
    B, L, D = h.shape
    T = ap["queries"].shape[0]
    # Q projection computed once on the shared queries; no HBM broadcast.
    q = linear(ap["queries"], ap["wq"], ap["bq"]).reshape(1, T, D)
    # Packed K|V projection over the full conv sequence (B*L rows).
    kv = linear(h.reshape(B * L, D), ap["w_kv"], ap["b_kv"]).reshape(B, L, 2 * D)
    attn = flash_attention(q, kv, num_heads, shared_q=True).reshape(B * T, D)
    pooled = linear(attn, ap["wo"], ap["bo"], ln=(ap["ln_g"], ap["ln_b"]), tm=256)
    return pooled.reshape(B, T, D)


def transformer_stack(pooled, layers, num_heads):
    """nn.TransformerEncoder(norm_first=True, activation='gelu'), eval mode.

    Pre-norms (LN1/LN2) are fused into the residual-producing matmuls; only the
    very first LN1 is a standalone pass.
    """
    if not layers:
        return pooled
    B, T, D = pooled.shape
    x2 = pooled.reshape(B * T, D)
    y = layernorm(x2, layers[0]["ln1_g"], layers[0]["ln1_b"])
    for li, p in enumerate(layers):
        q = linear(y, p["wq"], p["bq"]).reshape(B, T, D)
        kv = linear(y, p["w_kv"], p["b_kv"]).reshape(B, T, 2 * D)
        attn = flash_attention(q, kv, num_heads).reshape(B * T, D)
        # attn out-proj + residual; also emit LN2(x) for the FF block.
        x2, y_ff = linear(attn, p["wo"], p["bo"], residual=x2,
                          ln_out=(p["ln2_g"], p["ln2_b"]), tm=256)
        h1 = linear(y_ff, p["ff1_w"], p["ff1_b"], act="gelu")
        if li + 1 < len(layers):
            nxt = layers[li + 1]
            # ff2 + residual; also emit the next layer's LN1(x).
            x2, y = linear(h1, p["ff2_w"], p["ff2_b"], residual=x2,
                           ln_out=(nxt["ln1_g"], nxt["ln1_b"]), tm=256)
        else:
            x2 = linear(h1, p["ff2_w"], p["ff2_b"], residual=x2)
    return x2.reshape(B, T, D)


def hybrid_modality_projector_forward(x, params, cfg):
    B, L, _ = x.shape
    D = cfg["lm_hidden_dim"]
    T = cfg["mp_target_length"]
    n_conv = cfg["mp_conv_layers"]
    # TODO(synk): mp_conv_stride > 1 is not implemented (test config uses 1).

    # --- conv stack: Conv1d + BN(eval, folded) + GELU + Dropout(id) + residual ---
    h = x
    for i in range(n_conv):
        cp = params["conv"][i]
        last = (i == n_conv - 1)
        if last:
            scale = jnp.ones_like(cp["b"])
            shift = cp["b"]
            act = None
        else:
            inv = lax.rsqrt(cp["bn_v"] + BN_EPS)
            s = cp["bn_g"] * inv
            scale = s
            shift = cp["b"] * s + (cp["bn_b"] - cp["bn_m"] * s)
            act = "gelu"
        # Conv-stack residual fires only for non-last layers when Cin == Cout
        # (matching the PyTorch shape check); fused into the conv epilogue.
        res = h if (not last) and (h.shape[-1] == cp["w"].shape[-1]) else None
        h = conv1d_bn_gelu(h, cp["w"], scale, shift, act=act, residual=res)

    # --- attention pooling ---
    pooled = attention_pooling(h, params["attn_pool"], cfg["mp_attention_heads"])

    # --- transformer encoder (norm_first, no final norm) ---
    z = transformer_stack(pooled, params["transformer"], cfg["mp_transformer_heads"])

    # use_layer_scale defaults to False -> skipped.

    # --- output projection: Linear -> GELU -> Dropout(id) -> Linear -> LN ---
    op = params["out_proj"]
    y = linear(z.reshape(B * T, D), op["w1"], op["b1"], act="gelu")
    y = linear(y, op["w2"], op["b2"], ln=(op["ln_g"], op["ln_b"]), tm=256)
    return y.reshape(B, T, D)


# --------------------------------------------------------------------------
# Deterministic parameter initialization (synthetic, PRNGKey-based)
# --------------------------------------------------------------------------

def init_params(key, cfg):
    Din = cfg["audio_hidden_dim"]
    D = cfg["lm_hidden_dim"]
    K = cfg["mp_conv_kernel_size"]
    mult = cfg["mp_conv_channels_multiplier"]
    n_conv = cfg["mp_conv_layers"]
    T = cfg["mp_target_length"]

    keys = iter(jax.random.split(key, 256))

    def w(shape, scale=0.02):
        return jax.random.normal(next(keys), shape, jnp.float32) * scale

    zeros = lambda s: jnp.zeros(s, jnp.float32)
    ones = lambda s: jnp.ones(s, jnp.float32)

    params = {}
    conv = []
    cin = Din
    for i in range(n_conv):
        cout = D if i == n_conv - 1 else cin * mult
        layer = {"w": w((K, cin, cout)), "b": zeros((cout,))}
        if i < n_conv - 1:
            layer.update(bn_g=ones((cout,)), bn_b=zeros((cout,)),
                         bn_m=zeros((cout,)), bn_v=ones((cout,)))
        conv.append(layer)
        cin = cout
    params["conv"] = conv

    # Cross-attention (pool): Q separate, K|V packed (column order k|v).
    params["attn_pool"] = {
        "queries": w((T, D), scale=1.0),
        "wq": w((D, D)), "bq": zeros((D,)),
        "w_kv": w((D, 2 * D)), "b_kv": zeros((2 * D,)),
        "wo": w((D, D)), "bo": zeros((D,)),
        "ln_g": ones((D,)), "ln_b": zeros((D,)),
    }

    # Self-attention: Q separate, packed K|V (flash kernel expects k|v packing).
    params["transformer"] = [{
        "ln1_g": ones((D,)), "ln1_b": zeros((D,)),
        "ln2_g": ones((D,)), "ln2_b": zeros((D,)),
        "wq": w((D, D)), "bq": zeros((D,)),
        "w_kv": w((D, 2 * D)), "b_kv": zeros((2 * D,)),
        "wo": w((D, D)), "bo": zeros((D,)),
        "ff1_w": w((D, 4 * D)), "ff1_b": zeros((4 * D,)),
        "ff2_w": w((4 * D, D)), "ff2_b": zeros((D,)),
    } for _ in range(cfg["mp_transformer_layers"])]

    H = D * cfg["mp_output_hidden_multiplier"]
    params["out_proj"] = {
        "w1": w((D, H)), "b1": zeros((H,)),
        "w2": w((H, D)), "b2": zeros((D,)),
        "ln_g": ones((D,)), "ln_b": zeros((D,)),
    }
    return params


if __name__ == "__main__":
    cfg = dict(
        audio_hidden_dim=16,      # input_dim
        lm_hidden_dim=32,         # output_dim
        mp_target_length=8,
        mp_conv_layers=3,
        mp_conv_kernel_size=3,
        mp_conv_stride=1,
        mp_conv_channels_multiplier=2,
        mp_attention_heads=4,
        mp_transformer_layers=2,
        mp_transformer_heads=4,
        mp_output_hidden_multiplier=2,
    )

    key = jax.random.PRNGKey(0)
    k_x, k_p = jax.random.split(key)
    B, L = 2, 16
    x = jax.random.normal(k_x, (B, L, cfg["audio_hidden_dim"]), jnp.float32)
    params = init_params(k_p, cfg)

    fwd = jax.jit(functools.partial(hybrid_modality_projector_forward, cfg=cfg))
    out = jax.block_until_ready(fwd(x, params))

    assert out.shape == (B, cfg["mp_target_length"], cfg["lm_hidden_dim"]), out.shape
    assert bool(jnp.all(jnp.isfinite(out)))
    print("KERNEL_OK")
</pallas_src>

<mosaic_0001>
module attributes {stable_mosaic.version = 11 : i64} {
  func.func @_conv_kernel(%arg0: i32, %arg1: i32, %arg2: memref<1x16x16xf32, #tpu.memory_space<vmem>>, %arg3: memref<3x16x32xbf16, #tpu.memory_space<vmem>>, %arg4: memref<1x32xf32, #tpu.memory_space<vmem>>, %arg5: memref<1x32xf32, #tpu.memory_space<vmem>>, %arg6: memref<1x16x32xf32, #tpu.memory_space<vmem>>) attributes {dimension_semantics = [#tpu.dimension_semantics<parallel>, #tpu.dimension_semantics<parallel>], iteration_bounds = array<i64: 2, 1>, scalar_prefetch = 0 : i64, scratch_operands = 0 : i64, tpu.core_type = #tpu.core_type<tc>, window_params = [{transform_indices = @transform_0, window_bounds = array<i64: 1, 16, 16>}, {transform_indices = @transform_1, window_bounds = array<i64: 3, 16, 32>}, {transform_indices = @transform_2, window_bounds = array<i64: 1, 32>}, {transform_indices = @transform_3, window_bounds = array<i64: 1, 32>}, {transform_indices = @transform_4, window_bounds = array<i64: 1, 16, 32>}]} {
    %c0 = arith.constant 0 : index
    %c0_0 = arith.constant 0 : index
    %c0_1 = arith.constant 0 : index
    %0 = vector.load %arg2[%c0, %c0_0, %c0_1] : memref<1x16x16xf32, #tpu.memory_space<vmem>>, vector<1x16x16xf32>
    %1 = vector.shape_cast %0 : vector<1x16x16xf32> to vector<16x16xf32>
    %2 = tpu.iota {dimensions = array<i32: 0>} : vector<16x1xi32>
    %cst = arith.constant 0.000000e+00 : f32
    %3 = vector.broadcast %cst : f32 to vector<16x32xf32>
    %c1_i32 = arith.constant 1 : i32
    %4 = tpu.dynamic_rotate %1 by %c1_i32 dim 0 : vector<16x16xf32>, i32 -> vector<16x16xf32>
    %c1_i32_2 = arith.constant 1 : i32
    %5 = vector.broadcast %c1_i32_2 : i32 to vector<16x1xi32>
    %6 = arith.cmpi sge, %2, %5 : vector<16x1xi32>
    %cst_3 = arith.constant 0.000000e+00 : f32
    %7 = vector.shape_cast %6 : vector<16x1xi1> to vector<16x1xi1>
    %8 = vector.broadcast %7 : vector<16x1xi1> to vector<16x16xi1>
    %9 = vector.broadcast %cst_3 : f32 to vector<16x16xf32>
    %10 = arith.select %8, %4, %9 : vector<16x16xi1>, vector<16x16xf32>
    %11 = arith.truncf %10 : vector<16x16xf32> to vector<16x16xbf16>
    %c0_4 = arith.constant 0 : index
    %c0_5 = arith.constant 0 : index
    %c0_6 = arith.constant 0 : index
    %12 = vector.load %arg3[%c0_4, %c0_5, %c0_6] : memref<3x16x32xbf16, #tpu.memory_space<vmem>>, vector<1x16x32xbf16>
    %13 = vector.shape_cast %12 : vector<1x16x32xbf16> to vector<16x32xbf16>
    %cst_7 = arith.constant dense<0.000000e+00> : vector<16x32xf32>
    %14 = tpu.matmul %11, %13, %cst_7 {dimension_numbers = #tpu.dot_dimension_numbers<[1], [0], [0], [1], [0, 0, 1, 1], [], []>} : vector<16x16xbf16>, vector<16x32xbf16>, vector<16x32xf32> -> vector<16x32xf32>
    %15 = arith.addf %3, %14 : vector<16x32xf32>
    %16 = arith.truncf %1 : vector<16x16xf32> to vector<16x16xbf16>
    %c1 = arith.constant 1 : index
    %c0_8 = arith.constant 0 : index
    %c0_9 = arith.constant 0 : index
    %17 = vector.load %arg3[%c1, %c0_8, %c0_9] : memref<3x16x32xbf16, #tpu.memory_space<vmem>>, vector<1x16x32xbf16>
    %18 = vector.shape_cast %17 : vector<1x16x32xbf16> to vector<16x32xbf16>
    %cst_10 = arith.constant dense<0.000000e+00> : vector<16x32xf32>
    %19 = tpu.matmul %16, %18, %cst_10 {dimension_numbers = #tpu.dot_dimension_numbers<[1], [0], [0], [1], [0, 0, 1, 1], [], []>} : vector<16x16xbf16>, vector<16x32xbf16>, vector<16x32xf32> -> vector<16x32xf32>
    %20 = arith.addf %15, %19 : vector<16x32xf32>
    %c15_i32 = arith.constant 15 : i32
    %21 = tpu.dynamic_rotate %1 by %c15_i32 dim 0 : vector<16x16xf32>, i32 -> vector<16x16xf32>
    %c15_i32_11 = arith.constant 15 : i32
    %22 = vector.broadcast %c15_i32_11 : i32 to vector<16x1xi32>
    %23 = arith.cmpi slt, %2, %22 : vector<16x1xi32>
    %cst_12 = arith.constant 0.000000e+00 : f32
    %24 = vector.shape_cast %23 : vector<16x1xi1> to vector<16x1xi1>
    %25 = vector.broadcast %24 : vector<16x1xi1> to vector<16x16xi1>
    %26 = vector.broadcast %cst_12 : f32 to vector<16x16xf32>
    %27 = arith.select %25, %21, %26 : vector<16x16xi1>, vector<16x16xf32>
    %28 = arith.truncf %27 : vector<16x16xf32> to vector<16x16xbf16>
    %c2 = arith.constant 2 : index
    %c0_13 = arith.constant 0 : index
    %c0_14 = arith.constant 0 : index
    %29 = vector.load %arg3[%c2, %c0_13, %c0_14] : memref<3x16x32xbf16, #tpu.memory_space<vmem>>, vector<1x16x32xbf16>
    %30 = vector.shape_cast %29 : vector<1x16x32xbf16> to vector<16x32xbf16>
    %cst_15 = arith.constant dense<0.000000e+00> : vector<16x32xf32>
    %31 = tpu.matmul %28, %30, %cst_15 {dimension_numbers = #tpu.dot_dimension_numbers<[1], [0], [0], [1], [0, 0, 1, 1], [], []>} : vector<16x16xbf16>, vector<16x32xbf16>, vector<16x32xf32> -> vector<16x32xf32>
    %32 = arith.addf %20, %31 : vector<16x32xf32>
    %c0_16 = arith.constant 0 : index
    %c0_17 = arith.constant 0 : index
    %33 = vector.load %arg4[%c0_16, %c0_17] : memref<1x32xf32, #tpu.memory_space<vmem>>, vector<1x32xf32>
    %34 = vector.broadcast %33 : vector<1x32xf32> to vector<16x32xf32>
    %35 = arith.mulf %32, %34 : vector<16x32xf32>
    %c0_18 = arith.constant 0 : index
    %c0_19 = arith.constant 0 : index
    %36 = vector.load %arg5[%c0_18, %c0_19] : memref<1x32xf32, #tpu.memory_space<vmem>>, vector<1x32xf32>
    %37 = vector.broadcast %36 : vector<1x32xf32> to vector<16x32xf32>
    %38 = arith.addf %35, %37 : vector<16x32xf32>
    %cst_20 = arith.constant 5.000000e-01 : f32
    %39 = vector.broadcast %cst_20 : f32 to vector<16x32xf32>
    %40 = arith.mulf %39, %38 : vector<16x32xf32>
    %cst_21 = arith.constant 0.707106769 : f32
    %41 = vector.broadcast %cst_21 : f32 to vector<16x32xf32>
    %42 = arith.mulf %38, %41 : vector<16x32xf32>
    %43 = math.erf %42 : vector<16x32xf32>
    %cst_22 = arith.constant 1.000000e+00 : f32
    %44 = vector.broadcast %cst_22 : f32 to vector<16x32xf32>
    %45 = arith.addf %44, %43 : vector<16x32xf32>
    %46 = arith.mulf %40, %45 : vector<16x32xf32>
    %c0_23 = arith.constant 0 : index
    %c0_24 = arith.constant 0 : index
    %c0_25 = arith.constant 0 : index
    %47 = vector.load %arg6[%c0_23, %c0_24, %c0_25] : memref<1x16x32xf32, #tpu.memory_space<vmem>>, vector<1x16x32xf32>
    %48 = vector.shape_cast %47 : vector<1x16x32xf32> to vector<16x32xf32>
    %49 = vector.shape_cast %46 : vector<16x32xf32> to vector<1x16x32xf32>
    tpu.vector_store %arg6[%c0_23, %c0_24, %c0_25], %49 {strides = array<i32>} : memref<1x16x32xf32, #tpu.memory_space<vmem>>, vector<1x16x32xf32>,
    return
  }
  func.func @transform_0(%arg0: i32, %arg1: i32) -> (i32, i32, i32) {
    %c0_i32 = arith.constant 0 : i32
    %c0_i32_0 = arith.constant 0 : i32
    %c0_i32_1 = arith.constant 0 : i32
    return %arg0, %c0_i32, %c0_i32_0 : i32, i32, i32
  }
  func.func @transform_1(%arg0: i32, %arg1: i32) -> (i32, i32, i32) {
    %c0_i32 = arith.constant 0 : i32
    %c0_i32_0 = arith.constant 0 : i32
    %c0_i32_1 = arith.constant 0 : i32
    return %c0_i32, %c0_i32_0, %arg1 : i32, i32, i32
  }
  func.func @transform_2(%arg0: i32, %arg1: i32) -> (i32, i32) {
    %c0_i32 = arith.constant 0 : i32
    %c0_i32_0 = arith.constant 0 : i32
    return %c0_i32, %arg1 : i32, i32
  }
  func.func @transform_3(%arg0: i32, %arg1: i32) -> (i32, i32) {
    %c0_i32 = arith.constant 0 : i32
    %c0_i32_0 = arith.constant 0 : i32
    return %c0_i32, %arg1 : i32, i32
  }
  func.func @transform_4(%arg0: i32, %arg1: i32) -> (i32, i32, i32) {
    %c0_i32 = arith.constant 0 : i32
    %c0_i32_0 = arith.constant 0 : i32
    return %arg0, %c0_i32, %arg1 : i32, i32, i32
  }
}

module attributes {stable_mosaic.version = 11 : i64} {
  func.func @_conv_kernel(%arg0: i32, %arg1: i32, %arg2: memref<1x16x32xf32, #tpu.memory_space<vmem>>, %arg3: memref<3x32x64xbf16, #tpu.memory_space<vmem>>, %arg4: memref<1x64xf32, #tpu.memory_space<vmem>>, %arg5: memref<1x64xf32, #tpu.memory_space<vmem>>, %arg6: memref<1x16x64xf32, #tpu.memory_space<vmem>>) attributes {dimension_semantics = [#tpu.dimension_semantics<parallel>, #tpu.dimension_semantics<parallel>], iteration_bounds = array<i64: 2, 1>, scalar_prefetch = 0 : i64, scratch_operands = 0 : i64, tpu.core_type = #tpu.core_type<tc>, window_params = [{transform_indices = @transform_0, window_bounds = array<i64: 1, 16, 32>}, {transform_indices = @transform_1, window_bounds = array<i64: 3, 32, 64>}, {transform_indices = @transform_2, window_bounds = array<i64: 1, 64>}, {transform_indices = @transform_3, window_bounds = array<i64: 1, 64>}, {transform_indices = @transform_4, window_bounds = array<i64: 1, 16, 64>}]} {
    %c0 = arith.constant 0 : index
    %c0_0 = arith.constant 0 : index
    %c0_1 = arith.constant 0 : index
    %0 = vector.load %arg2[%c0, %c0_0, %c0_1] : memref<1x16x32xf32, #tpu.memory_space<vmem>>, vector<1x16x32xf32>
    %1 = vector.shape_cast %0 : vector<1x16x32xf32> to vector<16x32xf32>
    %2 = tpu.iota {dimensions = array<i32: 0>} : vector<16x1xi32>
    %cst = arith.constant 0.000000e+00 : f32
    %3 = vector.broadcast %cst : f32 to vector<16x64xf32>
    %c1_i32 = arith.constant 1 : i32
    %4 = tpu.dynamic_rotate %1 by %c1_i32 dim 0 : vector<16x32xf32>, i32 -> vector<16x32xf32>
    %c1_i32_2 = arith.constant 1 : i32
    %5 = vector.broadcast %c1_i32_2 : i32 to vector<16x1xi32>
    %6 = arith.cmpi sge, %2, %5 : vector<16x1xi32>
    %cst_3 = arith.constant 0.000000e+00 : f32
    %7 = vector.shape_cast %6 : vector<16x1xi1> to vector<16x1xi1>
    %8 = vector.broadcast %7 : vector<16x1xi1> to vector<16x32xi1>
    %9 = vector.broadcast %cst_3 : f32 to vector<16x32xf32>
    %10 = arith.select %8, %4, %9 : vector<16x32xi1>, vector<16x32xf32>
    %11 = arith.truncf %10 : vector<16x32xf32> to vector<16x32xbf16>
    %c0_4 = arith.constant 0 : index
    %c0_5 = arith.constant 0 : index
    %c0_6 = arith.constant 0 : index
    %12 = vector.load %arg3[%c0_4, %c0_5, %c0_6] : memref<3x32x64xbf16, #tpu.memory_space<vmem>>, vector<1x32x64xbf16>
    %13 = vector.shape_cast %12 : vector<1x32x64xbf16> to vector<32x64xbf16>
    %cst_7 = arith.constant dense<0.000000e+00> : vector<16x64xf32>
    %14 = tpu.matmul %11, %13, %cst_7 {dimension_numbers = #tpu.dot_dimension_numbers<[1], [0], [0], [1], [0, 0, 1, 1], [], []>} : vector<16x32xbf16>, vector<32x64xbf16>, vector<16x64xf32> -> vector<16x64xf32>
    %15 = arith.addf %3, %14 : vector<16x64xf32>
    %16 = arith.truncf %1 : vector<16x32xf32> to vector<16x32xbf16>
    %c1 = arith.constant 1 : index
    %c0_8 = arith.constant 0 : index
    %c0_9 = arith.constant 0 : index
    %17 = vector.load %arg3[%c1, %c0_8, %c0_9] : memref<3x32x64xbf16, #tpu.memory_space<vmem>>, vector<1x32x64xbf16>
    %18 = vector.shape_cast %17 : vector<1x32x64xbf16> to vector<32x64xbf16>
    %cst_10 = arith.constant dense<0.000000e+00> : vector<16x64xf32>
    %19 = tpu.matmul %16, %18, %cst_10 {dimension_numbers = #tpu.dot_dimension_numbers<[1], [0], [0], [1], [0, 0, 1, 1], [], []>} : vector<16x32xbf16>, vector<32x64xbf16>, vector<16x64xf32> -> vector<16x64xf32>
    %20 = arith.addf %15, %19 : vector<16x64xf32>
    %c15_i32 = arith.constant 15 : i32
    %21 = tpu.dynamic_rotate %1 by %c15_i32 dim 0 : vector<16x32xf32>, i32 -> vector<16x32xf32>
    %c15_i32_11 = arith.constant 15 : i32
    %22 = vector.broadcast %c15_i32_11 : i32 to vector<16x1xi32>
    %23 = arith.cmpi slt, %2, %22 : vector<16x1xi32>
    %cst_12 = arith.constant 0.000000e+00 : f32
    %24 = vector.shape_cast %23 : vector<16x1xi1> to vector<16x1xi1>
    %25 = vector.broadcast %24 : vector<16x1xi1> to vector<16x32xi1>
    %26 = vector.broadcast %cst_12 : f32 to vector<16x32xf32>
    %27 = arith.select %25, %21, %26 : vector<16x32xi1>, vector<16x32xf32>
    %28 = arith.truncf %27 : vector<16x32xf32> to vector<16x32xbf16>
    %c2 = arith.constant 2 : index
    %c0_13 = arith.constant 0 : index
    %c0_14 = arith.constant 0 : index
    %29 = vector.load %arg3[%c2, %c0_13, %c0_14] : memref<3x32x64xbf16, #tpu.memory_space<vmem>>, vector<1x32x64xbf16>
    %30 = vector.shape_cast %29 : vector<1x32x64xbf16> to vector<32x64xbf16>
    %cst_15 = arith.constant dense<0.000000e+00> : vector<16x64xf32>
    %31 = tpu.matmul %28, %30, %cst_15 {dimension_numbers = #tpu.dot_dimension_numbers<[1], [0], [0], [1], [0, 0, 1, 1], [], []>} : vector<16x32xbf16>, vector<32x64xbf16>, vector<16x64xf32> -> vector<16x64xf32>
    %32 = arith.addf %20, %31 : vector<16x64xf32>
    %c0_16 = arith.constant 0 : index
    %c0_17 = arith.constant 0 : index
    %33 = vector.load %arg4[%c0_16, %c0_17] : memref<1x64xf32, #tpu.memory_space<vmem>>, vector<1x64xf32>
    %34 = vector.broadcast %33 : vector<1x64xf32> to vector<16x64xf32>
    %35 = arith.mulf %32, %34 : vector<16x64xf32>
    %c0_18 = arith.constant 0 : index
    %c0_19 = arith.constant 0 : index
    %36 = vector.load %arg5[%c0_18, %c0_19] : memref<1x64xf32, #tpu.memory_space<vmem>>, vector<1x64xf32>
    %37 = vector.broadcast %36 : vector<1x64xf32> to vector<16x64xf32>
    %38 = arith.addf %35, %37 : vector<16x64xf32>
    %cst_20 = arith.constant 5.000000e-01 : f32
    %39 = vector.broadcast %cst_20 : f32 to vector<16x64xf32>
    %40 = arith.mulf %39, %38 : vector<16x64xf32>
    %cst_21 = arith.constant 0.707106769 : f32
    %41 = vector.broadcast %cst_21 : f32 to vector<16x64xf32>
    %42 = arith.mulf %38, %41 : vector<16x64xf32>
    %43 = math.erf %42 : vector<16x64xf32>
    %cst_22 = arith.constant 1.000000e+00 : f32
    %44 = vector.broadcast %cst_22 : f32 to vector<16x64xf32>
    %45 = arith.addf %44, %43 : vector<16x64xf32>
    %46 = arith.mulf %40, %45 : vector<16x64xf32>
    %c0_23 = arith.constant 0 : index
    %c0_24 = arith.constant 0 : index
    %c0_25 = arith.constant 0 : index
    %47 = vector.load %arg6[%c0_23, %c0_24, %c0_25] : memref<1x16x64xf32, #tpu.memory_space<vmem>>, vector<1x16x64xf32>
    %48 = vector.shape_cast %47 : vector<1x16x64xf32> to vector<16x64xf32>
    %49 = vector.shape_cast %46 : vector<16x64xf32> to vector<1x16x64xf32>
    tpu.vector_store %arg6[%c0_23, %c0_24, %c0_25], %49 {strides = array<i32>} : memref<1x16x64xf32, #tpu.memory_space<vmem>>, vector<1x16x64xf32>,
    return
  }
  func.func @transform_0(%arg0: i32, %arg1: i32) -> (i32, i32, i32) {
    %c0_i32 = arith.constant 0 : i32
    %c0_i32_0 = arith.constant 0 : i32
    %c0_i32_1 = arith.constant 0 : i32
    return %arg0, %c0_i32, %c0_i32_0 : i32, i32, i32
  }
  func.func @transform_1(%arg0: i32, %arg1: i32) -> (i32, i32, i32) {
    %c0_i32 = arith.constant 0 : i32
    %c0_i32_0 = arith.constant 0 : i32
    %c0_i32_1 = arith.constant 0 : i32
    return %c0_i32, %c0_i32_0, %arg1 : i32, i32, i32
  }
  func.func @transform_2(%arg0: i32, %arg1: i32) -> (i32, i32) {
    %c0_i32 = arith.constant 0 : i32
    %c0_i32_0 = arith.constant 0 : i32
    return %c0_i32, %arg1 : i32, i32
  }
  func.func @transform_3(%arg0: i32, %arg1: i32) -> (i32, i32) {
    %c0_i32 = arith.constant 0 : i32
    %c0_i32_0 = arith.constant 0 : i32
    return %c0_i32, %arg1 : i32, i32
  }
  func.func @transform_4(%arg0: i32, %arg1: i32) -> (i32, i32, i32) {
    %c0_i32 = arith.constant 0 : i32
    %c0_i32_0 = arith.constant 0 : i32
    return %arg0, %c0_i32, %arg1 : i32, i32, i32
  }
}

module attributes {stable_mosaic.version = 11 : i64} {
  func.func @_conv_kernel(%arg0: i32, %arg1: i32, %arg2: memref<1x16x64xf32, #tpu.memory_space<vmem>>, %arg3: memref<3x64x32xbf16, #tpu.memory_space<vmem>>, %arg4: memref<1x32xf32, #tpu.memory_space<vmem>>, %arg5: memref<1x32xf32, #tpu.memory_space<vmem>>, %arg6: memref<1x16x32xf32, #tpu.memory_space<vmem>>) attributes {dimension_semantics = [#tpu.dimension_semantics<parallel>, #tpu.dimension_semantics<parallel>], iteration_bounds = array<i64: 2, 1>, scalar_prefetch = 0 : i64, scratch_operands = 0 : i64, tpu.core_type = #tpu.core_type<tc>, window_params = [{transform_indices = @transform_0, window_bounds = array<i64: 1, 16, 64>}, {transform_indices = @transform_1, window_bounds = array<i64: 3, 64, 32>}, {transform_indices = @transform_2, window_bounds = array<i64: 1, 32>}, {transform_indices = @transform_3, window_bounds = array<i64: 1, 32>}, {transform_indices = @transform_4, window_bounds = array<i64: 1, 16, 32>}]} {
    %c0 = arith.constant 0 : index
    %c0_0 = arith.constant 0 : index
    %c0_1 = arith.constant 0 : index
    %0 = vector.load %arg2[%c0, %c0_0, %c0_1] : memref<1x16x64xf32, #tpu.memory_space<vmem>>, vector<1x16x64xf32>
    %1 = vector.shape_cast %0 : vector<1x16x64xf32> to vector<16x64xf32>
    %2 = tpu.iota {dimensions = array<i32: 0>} : vector<16x1xi32>
    %cst = arith.constant 0.000000e+00 : f32
    %3 = vector.broadcast %cst : f32 to vector<16x32xf32>
    %c1_i32 = arith.constant 1 : i32
    %4 = tpu.dynamic_rotate %1 by %c1_i32 dim 0 : vector<16x64xf32>, i32 -> vector<16x64xf32>
    %c1_i32_2 = arith.constant 1 : i32
    %5 = vector.broadcast %c1_i32_2 : i32 to vector<16x1xi32>
    %6 = arith.cmpi sge, %2, %5 : vector<16x1xi32>
    %cst_3 = arith.constant 0.000000e+00 : f32
    %7 = vector.shape_cast %6 : vector<16x1xi1> to vector<16x1xi1>
    %8 = vector.broadcast %7 : vector<16x1xi1> to vector<16x64xi1>
    %9 = vector.broadcast %cst_3 : f32 to vector<16x64xf32>
    %10 = arith.select %8, %4, %9 : vector<16x64xi1>, vector<16x64xf32>
    %11 = arith.truncf %10 : vector<16x64xf32> to vector<16x64xbf16>
    %c0_4 = arith.constant 0 : index
    %c0_5 = arith.constant 0 : index
    %c0_6 = arith.constant 0 : index
    %12 = vector.load %arg3[%c0_4, %c0_5, %c0_6] : memref<3x64x32xbf16, #tpu.memory_space<vmem>>, vector<1x64x32xbf16>
    %13 = vector.shape_cast %12 : vector<1x64x32xbf16> to vector<64x32xbf16>
    %cst_7 = arith.constant dense<0.000000e+00> : vector<16x32xf32>
    %14 = tpu.matmul %11, %13, %cst_7 {dimension_numbers = #tpu.dot_dimension_numbers<[1], [0], [0], [1], [0, 0, 1, 1], [], []>} : vector<16x64xbf16>, vector<64x32xbf16>, vector<16x32xf32> -> vector<16x32xf32>
    %15 = arith.addf %3, %14 : vector<16x32xf32>
    %16 = arith.truncf %1 : vector<16x64xf32> to vector<16x64xbf16>
    %c1 = arith.constant 1 : index
    %c0_8 = arith.constant 0 : index
    %c0_9 = arith.constant 0 : index
    %17 = vector.load %arg3[%c1, %c0_8, %c0_9] : memref<3x64x32xbf16, #tpu.memory_space<vmem>>, vector<1x64x32xbf16>
    %18 = vector.shape_cast %17 : vector<1x64x32xbf16> to vector<64x32xbf16>
    %cst_10 = arith.constant dense<0.000000e+00> : vector<16x32xf32>
    %19 = tpu.matmul %16, %18, %cst_10 {dimension_numbers = #tpu.dot_dimension_numbers<[1], [0], [0], [1], [0, 0, 1, 1], [], []>} : vector<16x64xbf16>, vector<64x32xbf16>, vector<16x32xf32> -> vector<16x32xf32>
    %20 = arith.addf %15, %19 : vector<16x32xf32>
    %c15_i32 = arith.constant 15 : i32
    %21 = tpu.dynamic_rotate %1 by %c15_i32 dim 0 : vector<16x64xf32>, i32 -> vector<16x64xf32>
    %c15_i32_11 = arith.constant 15 : i32
    %22 = vector.broadcast %c15_i32_11 : i32 to vector<16x1xi32>
    %23 = arith.cmpi slt, %2, %22 : vector<16x1xi32>
    %cst_12 = arith.constant 0.000000e+00 : f32
    %24 = vector.shape_cast %23 : vector<16x1xi1> to vector<16x1xi1>
    %25 = vector.broadcast %24 : vector<16x1xi1> to vector<16x64xi1>
    %26 = vector.broadcast %cst_12 : f32 to vector<16x64xf32>
    %27 = arith.select %25, %21, %26 : vector<16x64xi1>, vector<16x64xf32>
    %28 = arith.truncf %27 : vector<16x64xf32> to vector<16x64xbf16>
    %c2 = arith.constant 2 : index
    %c0_13 = arith.constant 0 : index
    %c0_14 = arith.constant 0 : index
    %29 = vector.load %arg3[%c2, %c0_13, %c0_14] : memref<3x64x32xbf16, #tpu.memory_space<vmem>>, vector<1x64x32xbf16>
    %30 = vector.shape_cast %29 : vector<1x64x32xbf16> to vector<64x32xbf16>
    %cst_15 = arith.constant dense<0.000000e+00> : vector<16x32xf32>
    %31 = tpu.matmul %28, %30, %cst_15 {dimension_numbers = #tpu.dot_dimension_numbers<[1], [0], [0], [1], [0, 0, 1, 1], [], []>} : vector<16x64xbf16>, vector<64x32xbf16>, vector<16x32xf32> -> vector<16x32xf32>
    %32 = arith.addf %20, %31 : vector<16x32xf32>
    %c0_16 = arith.constant 0 : index
    %c0_17 = arith.constant 0 : index
    %33 = vector.load %arg4[%c0_16, %c0_17] : memref<1x32xf32, #tpu.memory_space<vmem>>, vector<1x32xf32>
    %34 = vector.broadcast %33 : vector<1x32xf32> to vector<16x32xf32>
    %35 = arith.mulf %32, %34 : vector<16x32xf32>
    %c0_18 = arith.constant 0 : index
    %c0_19 = arith.constant 0 : index
    %36 = vector.load %arg5[%c0_18, %c0_19] : memref<1x32xf32, #tpu.memory_space<vmem>>, vector<1x32xf32>
    %37 = vector.broadcast %36 : vector<1x32xf32> to vector<16x32xf32>
    %38 = arith.addf %35, %37 : vector<16x32xf32>
    %c0_20 = arith.constant 0 : index
    %c0_21 = arith.constant 0 : index
    %c0_22 = arith.constant 0 : index
    %39 = vector.load %arg6[%c0_20, %c0_21, %c0_22] : memref<1x16x32xf32, #tpu.memory_space<vmem>>, vector<1x16x32xf32>
    %40 = vector.shape_cast %39 : vector<1x16x32xf32> to vector<16x32xf32>
    %41 = vector.shape_cast %38 : vector<16x32xf32> to vector<1x16x32xf32>
    tpu.vector_store %arg6[%c0_20, %c0_21, %c0_22], %41 {strides = array<i32>} : memref<1x16x32xf32, #tpu.memory_space<vmem>>, vector<1x16x32xf32>,
    return
  }
  func.func @transform_0(%arg0: i32, %arg1: i32) -> (i32, i32, i32) {
    %c0_i32 = arith.constant 0 : i32
    %c0_i32_0 = arith.constant 0 : i32
    %c0_i32_1 = arith.constant 0 : i32
    return %arg0, %c0_i32, %c0_i32_0 : i32, i32, i32
  }
  func.func @transform_1(%arg0: i32, %arg1: i32) -> (i32, i32, i32) {
    %c0_i32 = arith.constant 0 : i32
    %c0_i32_0 = arith.constant 0 : i32
    %c0_i32_1 = arith.constant 0 : i32
    return %c0_i32, %c0_i32_0, %arg1 : i32, i32, i32
  }
  func.func @transform_2(%arg0: i32, %arg1: i32) -> (i32, i32) {
    %c0_i32 = arith.constant 0 : i32
    %c0_i32_0 = arith.constant 0 : i32
    return %c0_i32, %arg1 : i32, i32
  }
  func.func @transform_3(%arg0: i32, %arg1: i32) -> (i32, i32) {
    %c0_i32 = arith.constant 0 : i32
    %c0_i32_0 = arith.constant 0 : i32
    return %c0_i32, %arg1 : i32, i32
  }
  func.func @transform_4(%arg0: i32, %arg1: i32) -> (i32, i32, i32) {
    %c0_i32 = arith.constant 0 : i32
    %c0_i32_0 = arith.constant 0 : i32
    return %arg0, %c0_i32, %arg1 : i32, i32, i32
  }
}

module attributes {stable_mosaic.version = 11 : i64} {
  func.func @kernel(%arg0: i32, %arg1: i32, %arg2: i32, %arg3: memref<32x32xf32, #tpu.memory_space<vmem>>, %arg4: memref<32x64xbf16, #tpu.memory_space<vmem>>, %arg5: memref<1x64xf32, #tpu.memory_space<vmem>>, %arg6: memref<32x64xf32, #tpu.memory_space<vmem>>) attributes {dimension_semantics = [#tpu.dimension_semantics<parallel>, #tpu.dimension_semantics<parallel>, #tpu.dimension_semantics<arbitrary>], iteration_bounds = array<i64: 1, 1, 1>, scalar_prefetch = 0 : i64, scratch_operands = 0 : i64, tpu.core_type = #tpu.core_type<tc>, window_params = [{transform_indices = @transform_0, window_bounds = array<i64: 32, 32>}, {transform_indices = @transform_1, window_bounds = array<i64: 32, 64>}, {transform_indices = @transform_2, window_bounds = array<i64: 1, 64>}, {transform_indices = @transform_3, window_bounds = array<i64: 32, 64>}]} {
    %c0 = arith.constant 0 : index
    %c0_0 = arith.constant 0 : index
    %0 = vector.load %arg3[%c0, %c0_0] : memref<32x32xf32, #tpu.memory_space<vmem>>, vector<32x32xf32>
    %1 = arith.truncf %0 : vector<32x32xf32> to vector<32x32xbf16>
    %c0_1 = arith.constant 0 : index
    %c0_2 = arith.constant 0 : index
    %2 = vector.load %arg4[%c0_1, %c0_2] : memref<32x64xbf16, #tpu.memory_space<vmem>>, vector<32x64xbf16>
    %cst = arith.constant dense<0.000000e+00> : vector<32x64xf32>
    %3 = tpu.matmul %1, %2, %cst {dimension_numbers = #tpu.dot_dimension_numbers<[1], [0], [0], [1], [0, 0, 1, 1], [], []>} : vector<32x32xbf16>, vector<32x64xbf16>, vector<32x64xf32> -> vector<32x64xf32>
    %c0_3 = arith.constant 0 : index
    %c0_4 = arith.constant 0 : index
    %4 = vector.load %arg5[%c0_3, %c0_4] : memref<1x64xf32, #tpu.memory_space<vmem>>, vector<1x64xf32>
    %5 = vector.broadcast %4 : vector<1x64xf32> to vector<32x64xf32>
    %6 = arith.addf %3, %5 : vector<32x64xf32>
    %c0_5 = arith.constant 0 : index
    %c0_6 = arith.constant 0 : index
    %7 = vector.load %arg6[%c0_5, %c0_6] : memref<32x64xf32, #tpu.memory_space<vmem>>, vector<32x64xf32>
    tpu.vector_store %arg6[%c0_5, %c0_6], %6 {strides = array<i32>} : memref<32x64xf32, #tpu.memory_space<vmem>>, vector<32x64xf32>,
    return
  }
  func.func @transform_0(%arg0: i32, %arg1: i32, %arg2: i32) -> (i32, i32) {
    %c0_i32 = arith.constant 0 : i32
    return %arg0, %arg2 : i32, i32
  }
  func.func @transform_1(%arg0: i32, %arg1: i32, %arg2: i32) -> (i32, i32) {
    %c0_i32 = arith.constant 0 : i32
    return %arg2, %arg1 : i32, i32
  }
  func.func @transform_2(%arg0: i32, %arg1: i32, %arg2: i32) -> (i32, i32) {
    %c0_i32 = arith.constant 0 : i32
    %c0_i32_0 = arith.constant 0 : i32
    return %c0_i32, %arg1 : i32, i32
  }
  func.func @transform_3(%arg0: i32, %arg1: i32, %arg2: i32) -> (i32, i32) {
    %c0_i32 = arith.constant 0 : i32
    return %arg0, %arg1 : i32, i32
  }
}

module attributes {stable_mosaic.version = 11 : i64} {
  func.func @kernel(%arg0: i32, %arg1: i32, %arg2: i32, %arg3: memref<8x32xf32, #tpu.memory_space<vmem>>, %arg4: memref<32x32xbf16, #tpu.memory_space<vmem>>, %arg5: memref<1x32xf32, #tpu.memory_space<vmem>>, %arg6: memref<8x32xf32, #tpu.memory_space<vmem>>) attributes {dimension_semantics = [#tpu.dimension_semantics<parallel>, #tpu.dimension_semantics<parallel>, #tpu.dimension_semantics<arbitrary>], iteration_bounds = array<i64: 1, 1, 1>, scalar_prefetch = 0 : i64, scratch_operands = 0 : i64, tpu.core_type = #tpu.core_type<tc>, window_params = [{transform_indices = @transform_0, window_bounds = array<i64: 8, 32>}, {transform_indices = @transform_1, window_bounds = array<i64: 32, 32>}, {transform_indices = @transform_2, window_bounds = array<i64: 1, 32>}, {transform_indices = @transform_3, window_bounds = array<i64: 8, 32>}]} {
    %c0 = arith.constant 0 : index
    %c0_0 = arith.constant 0 : index
    %0 = vector.load %arg3[%c0, %c0_0] : memref<8x32xf32, #tpu.memory_space<vmem>>, vector<8x32xf32>
    %1 = arith.truncf %0 : vector<8x32xf32> to vector<8x32xbf16>
    %c0_1 = arith.constant 0 : index
    %c0_2 = arith.constant 0 : index
    %2 = vector.load %arg4[%c0_1, %c0_2] : memref<32x32xbf16, #tpu.memory_space<vmem>>, vector<32x32xbf16>
    %cst = arith.constant dense<0.000000e+00> : vector<8x32xf32>
    %3 = tpu.matmul %1, %2, %cst {dimension_numbers = #tpu.dot_dimension_numbers<[1], [0], [0], [1], [0, 0, 1, 1], [], []>} : vector<8x32xbf16>, vector<32x32xbf16>, vector<8x32xf32> -> vector<8x32xf32>
    %c0_3 = arith.constant 0 : index
    %c0_4 = arith.constant 0 : index
    %4 = vector.load %arg5[%c0_3, %c0_4] : memref<1x32xf32, #tpu.memory_space<vmem>>, vector<1x32xf32>
    %5 = vector.broadcast %4 : vector<1x32xf32> to vector<8x32xf32>
    %6 = arith.addf %3, %5 : vector<8x32xf32>
    %c0_5 = arith.constant 0 : index
    %c0_6 = arith.constant 0 : index
    %7 = vector.load %arg6[%c0_5, %c0_6] : memref<8x32xf32, #tpu.memory_space<vmem>>, vector<8x32xf32>
    tpu.vector_store %arg6[%c0_5, %c0_6], %6 {strides = array<i32>} : memref<8x32xf32, #tpu.memory_space<vmem>>, vector<8x32xf32>,
    return
  }
  func.func @transform_0(%arg0: i32, %arg1: i32, %arg2: i32) -> (i32, i32) {
    %c0_i32 = arith.constant 0 : i32
    return %arg0, %arg2 : i32, i32
  }
  func.func @transform_1(%arg0: i32, %arg1: i32, %arg2: i32) -> (i32, i32) {
    %c0_i32 = arith.constant 0 : i32
    return %arg2, %arg1 : i32, i32
  }
  func.func @transform_2(%arg0: i32, %arg1: i32, %arg2: i32) -> (i32, i32) {
    %c0_i32 = arith.constant 0 : i32
    %c0_i32_0 = arith.constant 0 : i32
    return %c0_i32, %arg1 : i32, i32
  }
  func.func @transform_3(%arg0: i32, %arg1: i32, %arg2: i32) -> (i32, i32) {
    %c0_i32 = arith.constant 0 : i32
    return %arg0, %arg1 : i32, i32
  }
}

module attributes {stable_mosaic.version = 11 : i64} {
  func.func @_layernorm_kernel(%arg0: i32, %arg1: memref<16x32xf32, #tpu.memory_space<vmem>>, %arg2: memref<1x32xf32, #tpu.memory_space<vmem>>, %arg3: memref<1x32xf32, #tpu.memory_space<vmem>>, %arg4: memref<16x32xf32, #tpu.memory_space<vmem>>) attributes {dimension_semantics = [#tpu.dimension_semantics<parallel>], iteration_bounds = array<i64: 1>, scalar_prefetch = 0 : i64, scratch_operands = 0 : i64, tpu.core_type = #tpu.core_type<tc>, window_params = [{transform_indices = @transform_0, window_bounds = array<i64: 16, 32>}, {pipeline_mode = #tpu.pipeline_mode<synchronous>, transform_indices = @transform_1, window_bounds = array<i64: 1, 32>}, {pipeline_mode = #tpu.pipeline_mode<synchronous>, transform_indices = @transform_2, window_bounds = array<i64: 1, 32>}, {transform_indices = @transform_3, window_bounds = array<i64: 16, 32>}]} {
    %c0 = arith.constant 0 : index
    %c0_0 = arith.constant 0 : index
    %0 = vector.load %arg1[%c0, %c0_0] : memref<16x32xf32, #tpu.memory_space<vmem>>, vector<16x32xf32>
    %cst = arith.constant dense<0.000000e+00> : vector<16xf32>
    %1 = vector.multi_reduction <add>, %0, %cst [1] : vector<16x32xf32> to vector<16xf32>
    %2 = vector.shape_cast %1 : vector<16xf32> to vector<16x1xf32>
    %cst_1 = arith.constant 3.200000e+01 : f32
    %3 = vector.broadcast %cst_1 : f32 to vector<16x1xf32>
    %4 = arith.divf %2, %3 : vector<16x1xf32>
    %5 = vector.broadcast %4 : vector<16x1xf32> to vector<16x32xf32>
    %6 = arith.subf %0, %5 : vector<16x32xf32>
    %7 = arith.mulf %6, %6 : vector<16x32xf32>
    %cst_2 = arith.constant dense<0.000000e+00> : vector<16xf32>
    %8 = vector.multi_reduction <add>, %7, %cst_2 [1] : vector<16x32xf32> to vector<16xf32>
    %9 = vector.shape_cast %8 : vector<16xf32> to vector<16x1xf32>
    %cst_3 = arith.constant 3.200000e+01 : f32
    %10 = vector.broadcast %cst_3 : f32 to vector<16x1xf32>
    %11 = arith.divf %9, %10 : vector<16x1xf32>
    %12 = vector.broadcast %4 : vector<16x1xf32> to vector<16x32xf32>
    %13 = arith.subf %0, %12 : vector<16x32xf32>
    %cst_4 = arith.constant 9.99999974E-6 : f32
    %14 = vector.broadcast %cst_4 : f32 to vector<16x1xf32>
    %15 = arith.addf %11, %14 : vector<16x1xf32>
    %16 = math.rsqrt %15 : vector<16x1xf32>
    %17 = vector.broadcast %16 : vector<16x1xf32> to vector<16x32xf32>
    %18 = arith.mulf %13, %17 : vector<16x32xf32>
    %c0_5 = arith.constant 0 : index
    %c0_6 = arith.constant 0 : index
    %19 = vector.load %arg2[%c0_5, %c0_6] : memref<1x32xf32, #tpu.memory_space<vmem>>, vector<1x32xf32>
    %20 = vector.broadcast %19 : vector<1x32xf32> to vector<16x32xf32>
    %21 = arith.mulf %18, %20 : vector<16x32xf32>
    %c0_7 = arith.constant 0 : index
    %c0_8 = arith.constant 0 : index
    %22 = vector.load %arg3[%c0_7, %c0_8] : memref<1x32xf32, #tpu.memory_space<vmem>>, vector<1x32xf32>
    %23 = vector.broadcast %22 : vector<1x32xf32> to vector<16x32xf32>
    %24 = arith.addf %21, %23 : vector<16x32xf32>
    %c0_9 = arith.constant 0 : index
    %c0_10 = arith.constant 0 : index
    %25 = vector.load %arg4[%c0_9, %c0_10] : memref<16x32xf32, #tpu.memory_space<vmem>>, vector<16x32xf32>
    tpu.vector_store %arg4[%c0_9, %c0_10], %24 {strides = array<i32>} : memref<16x32xf32, #tpu.memory_space<vmem>>, vector<16x32xf32>,
    return
  }
  func.func @transform_0(%arg0: i32) -> (i32, i32) {
    %c0_i32 = arith.constant 0 : i32
    %c0_i32_0 = arith.constant 0 : i32
    return %arg0, %c0_i32 : i32, i32
  }
  func.func @transform_1(%arg0: i32) -> (i32, i32) {
    %c0_i32 = arith.constant 0 : i32
    %c0_i32_0 = arith.constant 0 : i32
    %c0_i32_1 = arith.constant 0 : i32
    return %c0_i32, %c0_i32_0 : i32, i32
  }
  func.func @transform_2(%arg0: i32) -> (i32, i32) {
    %c0_i32 = arith.constant 0 : i32
    %c0_i32_0 = arith.constant 0 : i32
    %c0_i32_1 = arith.constant 0 : i32
    return %c0_i32, %c0_i32_0 : i32, i32
  }
  func.func @transform_3(%arg0: i32) -> (i32, i32) {
    %c0_i32 = arith.constant 0 : i32
    %c0_i32_0 = arith.constant 0 : i32
    return %arg0, %c0_i32 : i32, i32
  }
}

module attributes {stable_mosaic.version = 11 : i64} {
  func.func @kernel(%arg0: i32, %arg1: i32, %arg2: i32, %arg3: memref<16x32xf32, #tpu.memory_space<vmem>>, %arg4: memref<32x32xbf16, #tpu.memory_space<vmem>>, %arg5: memref<1x32xf32, #tpu.memory_space<vmem>>, %arg6: memref<1x32xf32, #tpu.memory_space<vmem>>, %arg7: memref<1x32xf32, #tpu.memory_space<vmem>>, %arg8: memref<16x32xf32, #tpu.memory_space<vmem>>) attributes {dimension_semantics = [#tpu.dimension_semantics<parallel>, #tpu.dimension_semantics<parallel>, #tpu.dimension_semantics<arbitrary>], iteration_bounds = array<i64: 1, 1, 1>, scalar_prefetch = 0 : i64, scratch_operands = 0 : i64, tpu.core_type = #tpu.core_type<tc>, window_params = [{transform_indices = @transform_0, window_bounds = array<i64: 16, 32>}, {transform_indices = @transform_1, window_bounds = array<i64: 32, 32>}, {transform_indices = @transform_2, window_bounds = array<i64: 1, 32>}, {transform_indices = @transform_3, window_bounds = array<i64: 1, 32>}, {transform_indices = @transform_4, window_bounds = array<i64: 1, 32>}, {transform_indices = @transform_5, window_bounds = array<i64: 16, 32>}]} {
    %c0 = arith.constant 0 : index
    %c0_0 = arith.constant 0 : index
    %0 = vector.load %arg3[%c0, %c0_0] : memref<16x32xf32, #tpu.memory_space<vmem>>, vector<16x32xf32>
    %1 = arith.truncf %0 : vector<16x32xf32> to vector<16x32xbf16>
    %c0_1 = arith.constant 0 : index
    %c0_2 = arith.constant 0 : index
    %2 = vector.load %arg4[%c0_1, %c0_2] : memref<32x32xbf16, #tpu.memory_space<vmem>>, vector<32x32xbf16>
    %cst = arith.constant dense<0.000000e+00> : vector<16x32xf32>
    %3 = tpu.matmul %1, %2, %cst {dimension_numbers = #tpu.dot_dimension_numbers<[1], [0], [0], [1], [0, 0, 1, 1], [], []>} : vector<16x32xbf16>, vector<32x32xbf16>, vector<16x32xf32> -> vector<16x32xf32>
    %c0_3 = arith.constant 0 : index
    %c0_4 = arith.constant 0 : index
    %4 = vector.load %arg5[%c0_3, %c0_4] : memref<1x32xf32, #tpu.memory_space<vmem>>, vector<1x32xf32>
    %5 = vector.broadcast %4 : vector<1x32xf32> to vector<16x32xf32>
    %6 = arith.addf %3, %5 : vector<16x32xf32>
    %cst_5 = arith.constant dense<0.000000e+00> : vector<16xf32>
    %7 = vector.multi_reduction <add>, %6, %cst_5 [1] : vector<16x32xf32> to vector<16xf32>
    %8 = vector.shape_cast %7 : vector<16xf32> to vector<16x1xf32>
    %cst_6 = arith.constant 3.200000e+01 : f32
    %9 = vector.broadcast %cst_6 : f32 to vector<16x1xf32>
    %10 = arith.divf %8, %9 : vector<16x1xf32>
    %11 = vector.broadcast %10 : vector<16x1xf32> to vector<16x32xf32>
    %12 = arith.subf %6, %11 : vector<16x32xf32>
    %13 = arith.mulf %12, %12 : vector<16x32xf32>
    %cst_7 = arith.constant dense<0.000000e+00> : vector<16xf32>
    %14 = vector.multi_reduction <add>, %13, %cst_7 [1] : vector<16x32xf32> to vector<16xf32>
    %15 = vector.shape_cast %14 : vector<16xf32> to vector<16x1xf32>
    %cst_8 = arith.constant 3.200000e+01 : f32
    %16 = vector.broadcast %cst_8 : f32 to vector<16x1xf32>
    %17 = arith.divf %15, %16 : vector<16x1xf32>
    %18 = vector.broadcast %10 : vector<16x1xf32> to vector<16x32xf32>
    %19 = arith.subf %6, %18 : vector<16x32xf32>
    %cst_9 = arith.constant 9.99999974E-6 : f32
    %20 = vector.broadcast %cst_9 : f32 to vector<16x1xf32>
    %21 = arith.addf %17, %20 : vector<16x1xf32>
    %22 = math.rsqrt %21 : vector<16x1xf32>
    %23 = vector.broadcast %22 : vector<16x1xf32> to vector<16x32xf32>
    %24 = arith.mulf %19, %23 : vector<16x32xf32>
    %c0_10 = arith.constant 0 : index
    %c0_11 = arith.constant 0 : index
    %25 = vector.load %arg6[%c0_10, %c0_11] : memref<1x32xf32, #tpu.memory_space<vmem>>, vector<1x32xf32>
    %26 = vector.broadcast %25 : vector<1x32xf32> to vector<16x32xf32>
    %27 = arith.mulf %24, %26 : vector<16x32xf32>
    %c0_12 = arith.constant 0 : index
    %c0_13 = arith.constant 0 : index
    %28 = vector.load %arg7[%c0_12, %c0_13] : memref<1x32xf32, #tpu.memory_space<vmem>>, vector<1x32xf32>
    %29 = vector.broadcast %28 : vector<1x32xf32> to vector<16x32xf32>
    %30 = arith.addf %27, %29 : vector<16x32xf32>
    %c0_14 = arith.constant 0 : index
    %c0_15 = arith.constant 0 : index
    %31 = vector.load %arg8[%c0_14, %c0_15] : memref<16x32xf32, #tpu.memory_space<vmem>>, vector<16x32xf32>
    tpu.vector_store %arg8[%c0_14, %c0_15], %30 {strides = array<i32>} : memref<16x32xf32, #tpu.memory_space<vmem>>, vector<16x32xf32>,
    return
  }
  func.func @transform_0(%arg0: i32, %arg1: i32, %arg2: i32) -> (i32, i32) {
    %c0_i32 = arith.constant 0 : i32
    return %arg0, %arg2 : i32, i32
  }
  func.func @transform_1(%arg0: i32, %arg1: i32, %arg2: i32) -> (i32, i32) {
    %c0_i32 = arith.constant 0 : i32
    return %arg2, %arg1 : i32, i32
  }
  func.func @transform_2(%arg0: i32, %arg1: i32, %arg2: i32) -> (i32, i32) {
    %c0_i32 = arith.constant 0 : i32
    %c0_i32_0 = arith.constant 0 : i32
    return %c0_i32, %arg1 : i32, i32
  }
  func.func @transform_3(%arg0: i32, %arg1: i32, %arg2: i32) -> (i32, i32) {
    %c0_i32 = arith.constant 0 : i32
    %c0_i32_0 = arith.constant 0 : i32
    return %c0_i32, %arg1 : i32, i32
  }
  func.func @transform_4(%arg0: i32, %arg1: i32, %arg2: i32) -> (i32, i32) {
    %c0_i32 = arith.constant 0 : i32
    %c0_i32_0 = arith.constant 0 : i32
    return %c0_i32, %arg1 : i32, i32
  }
  func.func @transform_5(%arg0: i32, %arg1: i32, %arg2: i32) -> (i32, i32) {
    %c0_i32 = arith.constant 0 : i32
    return %arg0, %arg1 : i32, i32
  }
}

module attributes {stable_mosaic.version = 11 : i64} {
  func.func @_flash_attn_kernel(%arg0: i32, %arg1: i32, %arg2: i32, %arg3: memref<1x8x32xf32, #tpu.memory_space<vmem>>, %arg4: memref<1x16x64xf32, #tpu.memory_space<vmem>>, %arg5: memref<1x8x32xf32, #tpu.memory_space<vmem>>, %arg6: memref<4x8x1xf32, #tpu.memory_space<vmem>>, %arg7: memref<4x8x1xf32, #tpu.memory_space<vmem>>, %arg8: memref<8x32xf32, #tpu.memory_space<vmem>>) attributes {dimension_semantics = [#tpu.dimension_semantics<parallel>, #tpu.dimension_semantics<parallel>, #tpu.dimension_semantics<arbitrary>], iteration_bounds = array<i64: 2, 1, 1>, scalar_prefetch = 0 : i64, scratch_operands = 3 : i64, tpu.core_type = #tpu.core_type<tc>, window_params = [{transform_indices = @transform_0, window_bounds = array<i64: 1, 8, 32>}, {transform_indices = @transform_1, window_bounds = array<i64: 1, 16, 64>}, {transform_indices = @transform_2, window_bounds = array<i64: 1, 8, 32>}]} {
    %c0_i32 = arith.constant 0 : i32
    %0 = arith.cmpi eq, %arg2, %c0_i32 : i32
    %1 = arith.extui %0 : i1 to i32
    %c0_i32_0 = arith.constant 0 : i32
    %2 = arith.cmpi ne, %1, %c0_i32_0 : i32
    scf.if %2 {
      %cst_85 = arith.constant 0xFF800000 : f32
      %162 = vector.broadcast %cst_85 : f32 to vector<4x8x1xf32>
      %c0_86 = arith.constant 0 : index
      %c0_87 = arith.constant 0 : index
      %c0_88 = arith.constant 0 : index
      %163 = vector.load %arg6[%c0_86, %c0_87, %c0_88] : memref<4x8x1xf32, #tpu.memory_space<vmem>>, vector<4x8x1xf32>
      tpu.vector_store %arg6[%c0_86, %c0_87, %c0_88], %162 {strides = array<i32>} : memref<4x8x1xf32, #tpu.memory_space<vmem>>, vector<4x8x1xf32>,
      %cst_89 = arith.constant 0.000000e+00 : f32
      %164 = vector.broadcast %cst_89 : f32 to vector<4x8x1xf32>
      %c0_90 = arith.constant 0 : index
      %c0_91 = arith.constant 0 : index
      %c0_92 = arith.constant 0 : index
      %165 = vector.load %arg7[%c0_90, %c0_91, %c0_92] : memref<4x8x1xf32, #tpu.memory_space<vmem>>, vector<4x8x1xf32>
      tpu.vector_store %arg7[%c0_90, %c0_91, %c0_92], %164 {strides = array<i32>} : memref<4x8x1xf32, #tpu.memory_space<vmem>>, vector<4x8x1xf32>,
      %cst_93 = arith.constant 0.000000e+00 : f32
      %166 = vector.broadcast %cst_93 : f32 to vector<8x32xf32>
      %c0_94 = arith.constant 0 : index
      %c0_95 = arith.constant 0 : index
      %167 = vector.load %arg8[%c0_94, %c0_95] : memref<8x32xf32, #tpu.memory_space<vmem>>, vector<8x32xf32>
      tpu.vector_store %arg8[%c0_94, %c0_95], %166 {strides = array<i32>} : memref<8x32xf32, #tpu.memory_space<vmem>>, vector<8x32xf32>,
    } else {
    }
    %c0 = arith.constant 0 : index
    %c0_1 = arith.constant 0 : index
    %c0_2 = arith.constant 0 : index
    %3 = vector.load %arg3[%c0, %c0_1, %c0_2] : memref<1x8x32xf32, #tpu.memory_space<vmem>>, vector<1x8x32xf32>
    %4 = vector.shape_cast %3 : vector<1x8x32xf32> to vector<8x32xf32>
    %c0_3 = arith.constant 0 : index
    %c0_4 = arith.constant 0 : index
    %c0_5 = arith.constant 0 : index
    %5 = vector.load %arg4[%c0_3, %c0_4, %c0_5] : memref<1x16x64xf32, #tpu.memory_space<vmem>>, vector<1x16x64xf32>
    %6 = vector.shape_cast %5 : vector<1x16x64xf32> to vector<16x64xf32>
    %7 = vector.extract_strided_slice %4 {offsets = [0, 0], sizes = [8, 8], strides = [1, 1]} : vector<8x32xf32> to vector<8x8xf32>
    %8 = vector.extract_strided_slice %6 {offsets = [0, 0], sizes = [16, 8], strides = [1, 1]} : vector<16x64xf32> to vector<16x8xf32>
    %9 = vector.extract_strided_slice %6 {offsets = [0, 32], sizes = [16, 8], strides = [1, 1]} : vector<16x64xf32> to vector<16x8xf32>
    %10 = arith.truncf %7 : vector<8x8xf32> to vector<8x8xbf16>
    %11 = arith.truncf %8 : vector<16x8xf32> to vector<16x8xbf16>
    %12 = arith.truncf %9 : vector<16x8xf32> to vector<16x8xbf16>
    %cst = arith.constant dense<0.000000e+00> : vector<8x16xf32>
    %13 = tpu.matmul %10, %11, %cst {dimension_numbers = #tpu.dot_dimension_numbers<[1], [1], [0], [0], [0, 0, 1, 0], [], []>} : vector<8x8xbf16>, vector<16x8xbf16>, vector<8x16xf32> -> vector<8x16xf32>
    %cst_6 = arith.constant 0.353553385 : f32
    %14 = vector.broadcast %cst_6 : f32 to vector<8x16xf32>
    %15 = arith.mulf %13, %14 : vector<8x16xf32>
    %c0_7 = arith.constant 0 : index
    %c0_8 = arith.constant 0 : index
    %c0_9 = arith.constant 0 : index
    %16 = vector.load %arg6[%c0_7, %c0_8, %c0_9] : memref<4x8x1xf32, #tpu.memory_space<vmem>>, vector<1x8x1xf32>
    %17 = vector.shape_cast %16 : vector<1x8x1xf32> to vector<8x1xf32>
    %cst_10 = arith.constant dense<0xFF800000> : vector<8xf32>
    %18 = vector.multi_reduction <maximumf>, %15, %cst_10 [1] : vector<8x16xf32> to vector<8xf32>
    %19 = vector.shape_cast %18 : vector<8xf32> to vector<8x1xf32>
    %20 = arith.maximumf %17, %19 : vector<8x1xf32>
    %21 = arith.subf %17, %20 : vector<8x1xf32>
    %22 = math.exp %21 : vector<8x1xf32>
    %23 = vector.broadcast %20 : vector<8x1xf32> to vector<8x16xf32>
    %24 = arith.subf %15, %23 : vector<8x16xf32>
    %25 = math.exp %24 : vector<8x16xf32>
    %c0_11 = arith.constant 0 : index
    %c0_12 = arith.constant 0 : index
    %c0_13 = arith.constant 0 : index
    %26 = vector.load %arg7[%c0_11, %c0_12, %c0_13] : memref<4x8x1xf32, #tpu.memory_space<vmem>>, vector<1x8x1xf32>
    %27 = vector.shape_cast %26 : vector<1x8x1xf32> to vector<8x1xf32>
    %28 = arith.mulf %22, %27 : vector<8x1xf32>
    %cst_14 = arith.constant dense<0.000000e+00> : vector<8xf32>
    %29 = vector.multi_reduction <add>, %25, %cst_14 [1] : vector<8x16xf32> to vector<8xf32>
    %30 = vector.shape_cast %29 : vector<8xf32> to vector<8x1xf32>
    %31 = arith.addf %28, %30 : vector<8x1xf32>
    %c0_15 = arith.constant 0 : index
    %c0_16 = arith.constant 0 : index
    %c0_17 = arith.constant 0 : index
    %32 = vector.load %arg7[%c0_15, %c0_16, %c0_17] : memref<4x8x1xf32, #tpu.memory_space<vmem>>, vector<1x8x1xf32>
    %33 = vector.shape_cast %32 : vector<1x8x1xf32> to vector<8x1xf32>
    %34 = vector.shape_cast %31 : vector<8x1xf32> to vector<1x8x1xf32>
    tpu.vector_store %arg7[%c0_15, %c0_16, %c0_17], %34 {strides = array<i32>} : memref<4x8x1xf32, #tpu.memory_space<vmem>>, vector<1x8x1xf32>,
    %c0_18 = arith.constant 0 : index
    %c0_19 = arith.constant 0 : index
    %35 = vector.load %arg8[%c0_18, %c0_19] : memref<8x32xf32, #tpu.memory_space<vmem>>, vector<8x8xf32>
    %36 = vector.broadcast %22 : vector<8x1xf32> to vector<8x8xf32>
    %37 = arith.mulf %36, %35 : vector<8x8xf32>
    %38 = arith.truncf %25 : vector<8x16xf32> to vector<8x16xbf16>
    %cst_20 = arith.constant dense<0.000000e+00> : vector<8x8xf32>
    %39 = tpu.matmul %38, %12, %cst_20 {dimension_numbers = #tpu.dot_dimension_numbers<[1], [0], [0], [1], [0, 0, 1, 1], [], []>} : vector<8x16xbf16>, vector<16x8xbf16>, vector<8x8xf32> -> vector<8x8xf32>
    %40 = arith.addf %37, %39 : vector<8x8xf32>
    %c0_21 = arith.constant 0 : index
    %c0_22 = arith.constant 0 : index
    %41 = vector.load %arg8[%c0_21, %c0_22] : memref<8x32xf32, #tpu.memory_space<vmem>>, vector<8x8xf32>
    tpu.vector_store %arg8[%c0_21, %c0_22], %40 {strides = array<i32>} : memref<8x32xf32, #tpu.memory_space<vmem>>, vector<8x8xf32>,
    %c0_23 = arith.constant 0 : index
    %c0_24 = arith.constant 0 : index
    %c0_25 = arith.constant 0 : index
    %42 = vector.load %arg6[%c0_23, %c0_24, %c0_25] : memref<4x8x1xf32, #tpu.memory_space<vmem>>, vector<1x8x1xf32>
    %43 = vector.shape_cast %42 : vector<1x8x1xf32> to vector<8x1xf32>
    %44 = vector.shape_cast %20 : vector<8x1xf32> to vector<1x8x1xf32>
    tpu.vector_store %arg6[%c0_23, %c0_24, %c0_25], %44 {strides = array<i32>} : memref<4x8x1xf32, #tpu.memory_space<vmem>>, vector<1x8x1xf32>,
    %45 = vector.extract_strided_slice %4 {offsets = [0, 8], sizes = [8, 8], strides = [1, 1]} : vector<8x32xf32> to vector<8x8xf32>
    %46 = vector.extract_strided_slice %6 {offsets = [0, 8], sizes = [16, 8], strides = [1, 1]} : vector<16x64xf32> to vector<16x8xf32>
    %47 = vector.extract_strided_slice %6 {offsets = [0, 40], sizes = [16, 8], strides = [1, 1]} : vector<16x64xf32> to vector<16x8xf32>
    %48 = arith.truncf %45 : vector<8x8xf32> to vector<8x8xbf16>
    %49 = arith.truncf %46 : vector<16x8xf32> to vector<16x8xbf16>
    %50 = arith.truncf %47 : vector<16x8xf32> to vector<16x8xbf16>
    %cst_26 = arith.constant dense<0.000000e+00> : vector<8x16xf32>
    %51 = tpu.matmul %48, %49, %cst_26 {dimension_numbers = #tpu.dot_dimension_numbers<[1], [1], [0], [0], [0, 0, 1, 0], [], []>} : vector<8x8xbf16>, vector<16x8xbf16>, vector<8x16xf32> -> vector<8x16xf32>
    %cst_27 = arith.constant 0.353553385 : f32
    %52 = vector.broadcast %cst_27 : f32 to vector<8x16xf32>
    %53 = arith.mulf %51, %52 : vector<8x16xf32>
    %c1 = arith.constant 1 : index
    %c0_28 = arith.constant 0 : index
    %c0_29 = arith.constant 0 : index
    %54 = vector.load %arg6[%c1, %c0_28, %c0_29] : memref<4x8x1xf32, #tpu.memory_space<vmem>>, vector<1x8x1xf32>
    %55 = vector.shape_cast %54 : vector<1x8x1xf32> to vector<8x1xf32>
    %cst_30 = arith.constant dense<0xFF800000> : vector<8xf32>
    %56 = vector.multi_reduction <maximumf>, %53, %cst_30 [1] : vector<8x16xf32> to vector<8xf32>
    %57 = vector.shape_cast %56 : vector<8xf32> to vector<8x1xf32>
    %58 = arith.maximumf %55, %57 : vector<8x1xf32>
    %59 = arith.subf %55, %58 : vector<8x1xf32>
    %60 = math.exp %59 : vector<8x1xf32>
    %61 = vector.broadcast %58 : vector<8x1xf32> to vector<8x16xf32>
    %62 = arith.subf %53, %61 : vector<8x16xf32>
    %63 = math.exp %62 : vector<8x16xf32>
    %c1_31 = arith.constant 1 : index
    %c0_32 = arith.constant 0 : index
    %c0_33 = arith.constant 0 : index
    %64 = vector.load %arg7[%c1_31, %c0_32, %c0_33] : memref<4x8x1xf32, #tpu.memory_space<vmem>>, vector<1x8x1xf32>
    %65 = vector.shape_cast %64 : vector<1x8x1xf32> to vector<8x1xf32>
    %66 = arith.mulf %60, %65 : vector<8x1xf32>
    %cst_34 = arith.constant dense<0.000000e+00> : vector<8xf32>
    %67 = vector.multi_reduction <add>, %63, %cst_34 [1] : vector<8x16xf32> to vector<8xf32>
    %68 = vector.shape_cast %67 : vector<8xf32> to vector<8x1xf32>
    %69 = arith.addf %66, %68 : vector<8x1xf32>
    %c1_35 = arith.constant 1 : index
    %c0_36 = arith.constant 0 : index
    %c0_37 = arith.constant 0 : index
    %70 = vector.load %arg7[%c1_35, %c0_36, %c0_37] : memref<4x8x1xf32, #tpu.memory_space<vmem>>, vector<1x8x1xf32>
    %71 = vector.shape_cast %70 : vector<1x8x1xf32> to vector<8x1xf32>
    %72 = vector.shape_cast %69 : vector<8x1xf32> to vector<1x8x1xf32>
    tpu.vector_store %arg7[%c1_35, %c0_36, %c0_37], %72 {strides = array<i32>} : memref<4x8x1xf32, #tpu.memory_space<vmem>>, vector<1x8x1xf32>,
    %c0_38 = arith.constant 0 : index
    %c8 = arith.constant 8 : index
    %73 = vector.load %arg8[%c0_38, %c8] : memref<8x32xf32, #tpu.memory_space<vmem>>, vector<8x8xf32>
    %74 = vector.broadcast %60 : vector<8x1xf32> to vector<8x8xf32>
    %75 = arith.mulf %74, %73 : vector<8x8xf32>
    %76 = arith.truncf %63 : vector<8x16xf32> to vector<8x16xbf16>
    %cst_39 = arith.constant dense<0.000000e+00> : vector<8x8xf32>
    %77 = tpu.matmul %76, %50, %cst_39 {dimension_numbers = #tpu.dot_dimension_numbers<[1], [0], [0], [1], [0, 0, 1, 1], [], []>} : vector<8x16xbf16>, vector<16x8xbf16>, vector<8x8xf32> -> vector<8x8xf32>
    %78 = arith.addf %75, %77 : vector<8x8xf32>
    %c0_40 = arith.constant 0 : index
    %c8_41 = arith.constant 8 : index
    %79 = vector.load %arg8[%c0_40, %c8_41] : memref<8x32xf32, #tpu.memory_space<vmem>>, vector<8x8xf32>
    tpu.vector_store %arg8[%c0_40, %c8_41], %78 {strides = array<i32>} : memref<8x32xf32, #tpu.memory_space<vmem>>, vector<8x8xf32>,
    %c1_42 = arith.constant 1 : index
    %c0_43 = arith.constant 0 : index
    %c0_44 = arith.constant 0 : index
    %80 = vector.load %arg6[%c1_42, %c0_43, %c0_44] : memref<4x8x1xf32, #tpu.memory_space<vmem>>, vector<1x8x1xf32>
    %81 = vector.shape_cast %80 : vector<1x8x1xf32> to vector<8x1xf32>
    %82 = vector.shape_cast %58 : vector<8x1xf32> to vector<1x8x1xf32>
    tpu.vector_store %arg6[%c1_42, %c0_43, %c0_44], %82 {strides = array<i32>} : memref<4x8x1xf32, #tpu.memory_space<vmem>>, vector<1x8x1xf32>,
    %83 = vector.extract_strided_slice %4 {offsets = [0, 16], sizes = [8, 8], strides = [1, 1]} : vector<8x32xf32> to vector<8x8xf32>
    %84 = vector.extract_strided_slice %6 {offsets = [0, 16], sizes = [16, 8], strides = [1, 1]} : vector<16x64xf32> to vector<16x8xf32>
    %85 = vector.extract_strided_slice %6 {offsets = [0, 48], sizes = [16, 8], strides = [1, 1]} : vector<16x64xf32> to vector<16x8xf32>
    %86 = arith.truncf %83 : vector<8x8xf32> to vector<8x8xbf16>
    %87 = arith.truncf %84 : vector<16x8xf32> to vector<16x8xbf16>
    %88 = arith.truncf %85 : vector<16x8xf32> to vector<16x8xbf16>
    %cst_45 = arith.constant dense<0.000000e+00> : vector<8x16xf32>
    %89 = tpu.matmul %86, %87, %cst_45 {dimension_numbers = #tpu.dot_dimension_numbers<[1], [1], [0], [0], [0, 0, 1, 0], [], []>} : vector<8x8xbf16>, vector<16x8xbf16>, vector<8x16xf32> -> vector<8x16xf32>
    %cst_46 = arith.constant 0.353553385 : f32
    %90 = vector.broadcast %cst_46 : f32 to vector<8x16xf32>
    %91 = arith.mulf %89, %90 : vector<8x16xf32>
    %c2 = arith.constant 2 : index
    %c0_47 = arith.constant 0 : index
    %c0_48 = arith.constant 0 : index
    %92 = vector.load %arg6[%c2, %c0_47, %c0_48] : memref<4x8x1xf32, #tpu.memory_space<vmem>>, vector<1x8x1xf32>
    %93 = vector.shape_cast %92 : vector<1x8x1xf32> to vector<8x1xf32>
    %cst_49 = arith.constant dense<0xFF800000> : vector<8xf32>
    %94 = vector.multi_reduction <maximumf>, %91, %cst_49 [1] : vector<8x16xf32> to vector<8xf32>
    %95 = vector.shape_cast %94 : vector<8xf32> to vector<8x1xf32>
    %96 = arith.maximumf %93, %95 : vector<8x1xf32>
    %97 = arith.subf %93, %96 : vector<8x1xf32>
    %98 = math.exp %97 : vector<8x1xf32>
    %99 = vector.broadcast %96 : vector<8x1xf32> to vector<8x16xf32>
    %100 = arith.subf %91, %99 : vector<8x16xf32>
    %101 = math.exp %100 : vector<8x16xf32>
    %c2_50 = arith.constant 2 : index
    %c0_51 = arith.constant 0 : index
    %c0_52 = arith.constant 0 : index
    %102 = vector.load %arg7[%c2_50, %c0_51, %c0_52] : memref<4x8x1xf32, #tpu.memory_space<vmem>>, vector<1x8x1xf32>
    %103 = vector.shape_cast %102 : vector<1x8x1xf32> to vector<8x1xf32>
    %104 = arith.mulf %98, %103 : vector<8x1xf32>
    %cst_53 = arith.constant dense<0.000000e+00> : vector<8xf32>
    %105 = vector.multi_reduction <add>, %101, %cst_53 [1] : vector<8x16xf32> to vector<8xf32>
    %106 = vector.shape_cast %105 : vector<8xf32> to vector<8x1xf32>
    %107 = arith.addf %104, %106 : vector<8x1xf32>
    %c2_54 = arith.constant 2 : index
    %c0_55 = arith.constant 0 : index
    %c0_56 = arith.constant 0 : index
    %108 = vector.load %arg7[%c2_54, %c0_55, %c0_56] : memref<4x8x1xf32, #tpu.memory_space<vmem>>, vector<1x8x1xf32>
    %109 = vector.shape_cast %108 : vector<1x8x1xf32> to vector<8x1xf32>
    %110 = vector.shape_cast %107 : vector<8x1xf32> to vector<1x8x1xf32>
    tpu.vector_store %arg7[%c2_54, %c0_55, %c0_56], %110 {strides = array<i32>} : memref<4x8x1xf32, #tpu.memory_space<vmem>>, vector<1x8x1xf32>,
    %c0_57 = arith.constant 0 : index
    %c16 = arith.constant 16 : index
    %111 = vector.load %arg8[%c0_57, %c16] : memref<8x32xf32, #tpu.memory_space<vmem>>, vector<8x8xf32>
    %112 = vector.broadcast %98 : vector<8x1xf32> to vector<8x8xf32>
    %113 = arith.mulf %112, %111 : vector<8x8xf32>
    %114 = arith.truncf %101 : vector<8x16xf32> to vector<8x16xbf16>
    %cst_58 = arith.constant dense<0.000000e+00> : vector<8x8xf32>
    %115 = tpu.matmul %114, %88, %cst_58 {dimension_numbers = #tpu.dot_dimension_numbers<[1], [0], [0], [1], [0, 0, 1, 1], [], []>} : vector<8x16xbf16>, vector<16x8xbf16>, vector<8x8xf32> -> vector<8x8xf32>
    %116 = arith.addf %113, %115 : vector<8x8xf32>
    %c0_59 = arith.constant 0 : index
    %c16_60 = arith.constant 16 : index
    %117 = vector.load %arg8[%c0_59, %c16_60] : memref<8x32xf32, #tpu.memory_space<vmem>>, vector<8x8xf32>
    tpu.vector_store %arg8[%c0_59, %c16_60], %116 {strides = array<i32>} : memref<8x32xf32, #tpu.memory_space<vmem>>, vector<8x8xf32>,
    %c2_61 = arith.constant 2 : index
    %c0_62 = arith.constant 0 : index
    %c0_63 = arith.constant 0 : index
    %118 = vector.load %arg6[%c2_61, %c0_62, %c0_63] : memref<4x8x1xf32, #tpu.memory_space<vmem>>, vector<1x8x1xf32>
    %119 = vector.shape_cast %118 : vector<1x8x1xf32> to vector<8x1xf32>
    %120 = vector.shape_cast %96 : vector<8x1xf32> to vector<1x8x1xf32>
    tpu.vector_store %arg6[%c2_61, %c0_62, %c0_63], %120 {strides = array<i32>} : memref<4x8x1xf32, #tpu.memory_space<vmem>>, vector<1x8x1xf32>,
    %121 = vector.extract_strided_slice %4 {offsets = [0, 24], sizes = [8, 8], strides = [1, 1]} : vector<8x32xf32> to vector<8x8xf32>
    %122 = vector.extract_strided_slice %6 {offsets = [0, 24], sizes = [16, 8], strides = [1, 1]} : vector<16x64xf32> to vector<16x8xf32>
    %123 = vector.extract_strided_slice %6 {offsets = [0, 56], sizes = [16, 8], strides = [1, 1]} : vector<16x64xf32> to vector<16x8xf32>
    %124 = arith.truncf %121 : vector<8x8xf32> to vector<8x8xbf16>
    %125 = arith.truncf %122 : vector<16x8xf32> to vector<16x8xbf16>
    %126 = arith.truncf %123 : vector<16x8xf32> to vector<16x8xbf16>
    %cst_64 = arith.constant dense<0.000000e+00> : vector<8x16xf32>
    %127 = tpu.matmul %124, %125, %cst_64 {dimension_numbers = #tpu.dot_dimension_numbers<[1], [1], [0], [0], [0, 0, 1, 0], [], []>} : vector<8x8xbf16>, vector<16x8xbf16>, vector<8x16xf32> -> vector<8x16xf32>
    %cst_65 = arith.constant 0.353553385 : f32
    %128 = vector.broadcast %cst_65 : f32 to vector<8x16xf32>
    %129 = arith.mulf %127, %128 : vector<8x16xf32>
    %c3 = arith.constant 3 : index
    %c0_66 = arith.constant 0 : index
    %c0_67 = arith.constant 0 : index
    %130 = vector.load %arg6[%c3, %c0_66, %c0_67] : memref<4x8x1xf32, #tpu.memory_space<vmem>>, vector<1x8x1xf32>
    %131 = vector.shape_cast %130 : vector<1x8x1xf32> to vector<8x1xf32>
    %cst_68 = arith.constant dense<0xFF800000> : vector<8xf32>
    %132 = vector.multi_reduction <maximumf>, %129, %cst_68 [1] : vector<8x16xf32> to vector<8xf32>
    %133 = vector.shape_cast %132 : vector<8xf32> to vector<8x1xf32>
    %134 = arith.maximumf %131, %133 : vector<8x1xf32>
    %135 = arith.subf %131, %134 : vector<8x1xf32>
    %136 = math.exp %135 : vector<8x1xf32>
    %137 = vector.broadcast %134 : vector<8x1xf32> to vector<8x16xf32>
    %138 = arith.subf %129, %137 : vector<8x16xf32>
    %139 = math.exp %138 : vector<8x16xf32>
    %c3_69 = arith.constant 3 : index
    %c0_70 = arith.constant 0 : index
    %c0_71 = arith.constant 0 : index
    %140 = vector.load %arg7[%c3_69, %c0_70, %c0_71] : memref<4x8x1xf32, #tpu.memory_space<vmem>>, vector<1x8x1xf32>
    %141 = vector.shape_cast %140 : vector<1x8x1xf32> to vector<8x1xf32>
    %142 = arith.mulf %136, %141 : vector<8x1xf32>
    %cst_72 = arith.constant dense<0.000000e+00> : vector<8xf32>
    %143 = vector.multi_reduction <add>, %139, %cst_72 [1] : vector<8x16xf32> to vector<8xf32>
    %144 = vector.shape_cast %143 : vector<8xf32> to vector<8x1xf32>
    %145 = arith.addf %142, %144 : vector<8x1xf32>
    %c3_73 = arith.constant 3 : index
    %c0_74 = arith.constant 0 : index
    %c0_75 = arith.constant 0 : index
    %146 = vector.load %arg7[%c3_73, %c0_74, %c0_75] : memref<4x8x1xf32, #tpu.memory_space<vmem>>, vector<1x8x1xf32>
    %147 = vector.shape_cast %146 : vector<1x8x1xf32> to vector<8x1xf32>
    %148 = vector.shape_cast %145 : vector<8x1xf32> to vector<1x8x1xf32>
    tpu.vector_store %arg7[%c3_73, %c0_74, %c0_75], %148 {strides = array<i32>} : memref<4x8x1xf32, #tpu.memory_space<vmem>>, vector<1x8x1xf32>,
    %c0_76 = arith.constant 0 : index
    %c24 = arith.constant 24 : index
    %149 = vector.load %arg8[%c0_76, %c24] : memref<8x32xf32, #tpu.memory_space<vmem>>, vector<8x8xf32>
    %150 = vector.broadcast %136 : vector<8x1xf32> to vector<8x8xf32>
    %151 = arith.mulf %150, %149 : vector<8x8xf32>
    %152 = arith.truncf %139 : vector<8x16xf32> to vector<8x16xbf16>
    %cst_77 = arith.constant dense<0.000000e+00> : vector<8x8xf32>
    %153 = tpu.matmul %152, %126, %cst_77 {dimension_numbers = #tpu.dot_dimension_numbers<[1], [0], [0], [1], [0, 0, 1, 1], [], []>} : vector<8x16xbf16>, vector<16x8xbf16>, vector<8x8xf32> -> vector<8x8xf32>
    %154 = arith.addf %151, %153 : vector<8x8xf32>
    %c0_78 = arith.constant 0 : index
    %c24_79 = arith.constant 24 : index
    %155 = vector.load %arg8[%c0_78, %c24_79] : memref<8x32xf32, #tpu.memory_space<vmem>>, vector<8x8xf32>
    tpu.vector_store %arg8[%c0_78, %c24_79], %154 {strides = array<i32>} : memref<8x32xf32, #tpu.memory_space<vmem>>, vector<8x8xf32>,
    %c3_80 = arith.constant 3 : index
    %c0_81 = arith.constant 0 : index
    %c0_82 = arith.constant 0 : index
    %156 = vector.load %arg6[%c3_80, %c0_81, %c0_82] : memref<4x8x1xf32, #tpu.memory_space<vmem>>, vector<1x8x1xf32>
    %157 = vector.shape_cast %156 : vector<1x8x1xf32> to vector<8x1xf32>
    %158 = vector.shape_cast %134 : vector<8x1xf32> to vector<1x8x1xf32>
    tpu.vector_store %arg6[%c3_80, %c0_81, %c0_82], %158 {strides = array<i32>} : memref<4x8x1xf32, #tpu.memory_space<vmem>>, vector<1x8x1xf32>,
    %c0_i32_83 = arith.constant 0 : i32
    %159 = arith.cmpi eq, %arg2, %c0_i32_83 : i32
    %160 = arith.extui %159 : i1 to i32
    %c0_i32_84 = arith.constant 0 : i32
    %161 = arith.cmpi ne, %160, %c0_i32_84 : i32
    scf.if %161 {
      %c0_85 = arith.constant 0 : index
      %c0_86 = arith.constant 0 : index
      %162 = vector.load %arg8[%c0_85, %c0_86] : memref<8x32xf32, #tpu.memory_space<vmem>>, vector<8x8xf32>
      %c0_87 = arith.constant 0 : index
      %c0_88 = arith.constant 0 : index
      %c0_89 = arith.constant 0 : index
      %163 = vector.load %arg7[%c0_87, %c0_88, %c0_89] : memref<4x8x1xf32, #tpu.memory_space<vmem>>, vector<1x8x1xf32>
      %164 = vector.shape_cast %163 : vector<1x8x1xf32> to vector<8x1xf32>
      %165 = vector.broadcast %164 : vector<8x1xf32> to vector<8x8xf32>
      %166 = arith.divf %162, %165 : vector<8x8xf32>
      %c0_90 = arith.constant 0 : index
      %c0_91 = arith.constant 0 : index
      %c0_92 = arith.constant 0 : index
      %167 = vector.load %arg5[%c0_90, %c0_91, %c0_92] : memref<1x8x32xf32, #tpu.memory_space<vmem>>, vector<1x8x8xf32>
      %168 = vector.shape_cast %167 : vector<1x8x8xf32> to vector<8x8xf32>
      %169 = vector.shape_cast %166 : vector<8x8xf32> to vector<1x8x8xf32>
      tpu.vector_store %arg5[%c0_90, %c0_91, %c0_92], %169 {strides = array<i32>} : memref<1x8x32xf32, #tpu.memory_space<vmem>>, vector<1x8x8xf32>,
      %c0_93 = arith.constant 0 : index
      %c8_94 = arith.constant 8 : index
      %170 = vector.load %arg8[%c0_93, %c8_94] : memref<8x32xf32, #tpu.memory_space<vmem>>, vector<8x8xf32>
      %c1_95 = arith.constant 1 : index
      %c0_96 = arith.constant 0 : index
      %c0_97 = arith.constant 0 : index
      %171 = vector.load %arg7[%c1_95, %c0_96, %c0_97] : memref<4x8x1xf32, #tpu.memory_space<vmem>>, vector<1x8x1xf32>
      %172 = vector.shape_cast %171 : vector<1x8x1xf32> to vector<8x1xf32>
      %173 = vector.broadcast %172 : vector<8x1xf32> to vector<8x8xf32>
      %174 = arith.divf %170, %173 : vector<8x8xf32>
      %c0_98 = arith.constant 0 : index
      %c0_99 = arith.constant 0 : index
      %c8_100 = arith.constant 8 : index
      %175 = vector.load %arg5[%c0_98, %c0_99, %c8_100] : memref<1x8x32xf32, #tpu.memory_space<vmem>>, vector<1x8x8xf32>
      %176 = vector.shape_cast %175 : vector<1x8x8xf32> to vector<8x8xf32>
      %177 = vector.shape_cast %174 : vector<8x8xf32> to vector<1x8x8xf32>
      tpu.vector_store %arg5[%c0_98, %c0_99, %c8_100], %177 {strides = array<i32>} : memref<1x8x32xf32, #tpu.memory_space<vmem>>, vector<1x8x8xf32>,
      %c0_101 = arith.constant 0 : index
      %c16_102 = arith.constant 16 : index
      %178 = vector.load %arg8[%c0_101, %c16_102] : memref<8x32xf32, #tpu.memory_space<vmem>>, vector<8x8xf32>
      %c2_103 = arith.constant 2 : index
      %c0_104 = arith.constant 0 : index
      %c0_105 = arith.constant 0 : index
      %179 = vector.load %arg7[%c2_103, %c0_104, %c0_105] : memref<4x8x1xf32, #tpu.memory_space<vmem>>, vector<1x8x1xf32>
      %180 = vector.shape_cast %179 : vector<1x8x1xf32> to vector<8x1xf32>
      %181 = vector.broadcast %180 : vector<8x1xf32> to vector<8x8xf32>
      %182 = arith.divf %178, %181 : vector<8x8xf32>
      %c0_106 = arith.constant 0 : index
      %c0_107 = arith.constant 0 : index
      %c16_108 = arith.constant 16 : index
      %183 = vector.load %arg5[%c0_106, %c0_107, %c16_108] : memref<1x8x32xf32, #tpu.memory_space<vmem>>, vector<1x8x8xf32>
      %184 = vector.shape_cast %183 : vector<1x8x8xf32> to vector<8x8xf32>
      %185 = vector.shape_cast %182 : vector<8x8xf32> to vector<1x8x8xf32>
      tpu.vector_store %arg5[%c0_106, %c0_107, %c16_108], %185 {strides = array<i32>} : memref<1x8x32xf32, #tpu.memory_space<vmem>>, vector<1x8x8xf32>,
      %c0_109 = arith.constant 0 : index
      %c24_110 = arith.constant 24 : index
      %186 = vector.load %arg8[%c0_109, %c24_110] : memref<8x32xf32, #tpu.memory_space<vmem>>, vector<8x8xf32>
      %c3_111 = arith.constant 3 : index
      %c0_112 = arith.constant 0 : index
      %c0_113 = arith.constant 0 : index
      %187 = vector.load %arg7[%c3_111, %c0_112, %c0_113] : memref<4x8x1xf32, #tpu.memory_space<vmem>>, vector<1x8x1xf32>
      %188 = vector.shape_cast %187 : vector<1x8x1xf32> to vector<8x1xf32>
      %189 = vector.broadcast %188 : vector<8x1xf32> to vector<8x8xf32>
      %190 = arith.divf %186, %189 : vector<8x8xf32>
      %c0_114 = arith.constant 0 : index
      %c0_115 = arith.constant 0 : index
      %c24_116 = arith.constant 24 : index
      %191 = vector.load %arg5[%c0_114, %c0_115, %c24_116] : memref<1x8x32xf32, #tpu.memory_space<vmem>>, vector<1x8x8xf32>
      %192 = vector.shape_cast %191 : vector<1x8x8xf32> to vector<8x8xf32>
      %193 = vector.shape_cast %190 : vector<8x8xf32> to vector<1x8x8xf32>
      tpu.vector_store %arg5[%c0_114, %c0_115, %c24_116], %193 {strides = array<i32>} : memref<1x8x32xf32, #tpu.memory_space<vmem>>, vector<1x8x8xf32>,
    } else {
    }
    return
  }
  func.func @transform_0(%arg0: i32, %arg1: i32, %arg2: i32) -> (i32, i32, i32) {
    %c0_i32 = arith.constant 0 : i32
    %c0_i32_0 = arith.constant 0 : i32
    %c0_i32_1 = arith.constant 0 : i32
    return %c0_i32, %arg1, %c0_i32_0 : i32, i32, i32
  }
  func.func @transform_1(%arg0: i32, %arg1: i32, %arg2: i32) -> (i32, i32, i32) {
    %c0_i32 = arith.constant 0 : i32
    %c0_i32_0 = arith.constant 0 : i32
    return %arg0, %arg2, %c0_i32 : i32, i32, i32
  }
  func.func @transform_2(%arg0: i32, %arg1: i32, %arg2: i32) -> (i32, i32, i32) {
    %c0_i32 = arith.constant 0 : i32
    %c0_i32_0 = arith.constant 0 : i32
    return %arg0, %arg1, %c0_i32 : i32, i32, i32
  }
}

module attributes {stable_mosaic.version = 11 : i64} {
  func.func @kernel(%arg0: i32, %arg1: i32, %arg2: i32, %arg3: memref<16x32xf32, #tpu.memory_space<vmem>>, %arg4: memref<32x32xbf16, #tpu.memory_space<vmem>>, %arg5: memref<1x32xf32, #tpu.memory_space<vmem>>, %arg6: memref<16x32xf32, #tpu.memory_space<vmem>>) attributes {dimension_semantics = [#tpu.dimension_semantics<parallel>, #tpu.dimension_semantics<parallel>, #tpu.dimension_semantics<arbitrary>], iteration_bounds = array<i64: 1, 1, 1>, scalar_prefetch = 0 : i64, scratch_operands = 0 : i64, tpu.core_type = #tpu.core_type<tc>, window_params = [{transform_indices = @transform_0, window_bounds = array<i64: 16, 32>}, {transform_indices = @transform_1, window_bounds = array<i64: 32, 32>}, {transform_indices = @transform_2, window_bounds = array<i64: 1, 32>}, {transform_indices = @transform_3, window_bounds = array<i64: 16, 32>}]} {
    %c0 = arith.constant 0 : index
    %c0_0 = arith.constant 0 : index
    %0 = vector.load %arg3[%c0, %c0_0] : memref<16x32xf32, #tpu.memory_space<vmem>>, vector<16x32xf32>
    %1 = arith.truncf %0 : vector<16x32xf32> to vector<16x32xbf16>
    %c0_1 = arith.constant 0 : index
    %c0_2 = arith.constant 0 : index
    %2 = vector.load %arg4[%c0_1, %c0_2] : memref<32x32xbf16, #tpu.memory_space<vmem>>, vector<32x32xbf16>
    %cst = arith.constant dense<0.000000e+00> : vector<16x32xf32>
    %3 = tpu.matmul %1, %2, %cst {dimension_numbers = #tpu.dot_dimension_numbers<[1], [0], [0], [1], [0, 0, 1, 1], [], []>} : vector<16x32xbf16>, vector<32x32xbf16>, vector<16x32xf32> -> vector<16x32xf32>
    %c0_3 = arith.constant 0 : index
    %c0_4 = arith.constant 0 : index
    %4 = vector.load %arg5[%c0_3, %c0_4] : memref<1x32xf32, #tpu.memory_space<vmem>>, vector<1x32xf32>
    %5 = vector.broadcast %4 : vector<1x32xf32> to vector<16x32xf32>
    %6 = arith.addf %3, %5 : vector<16x32xf32>
    %c0_5 = arith.constant 0 : index
    %c0_6 = arith.constant 0 : index
    %7 = vector.load %arg6[%c0_5, %c0_6] : memref<16x32xf32, #tpu.memory_space<vmem>>, vector<16x32xf32>
    tpu.vector_store %arg6[%c0_5, %c0_6], %6 {strides = array<i32>} : memref<16x32xf32, #tpu.memory_space<vmem>>, vector<16x32xf32>,
    return
  }
  func.func @transform_0(%arg0: i32, %arg1: i32, %arg2: i32) -> (i32, i32) {
    %c0_i32 = arith.constant 0 : i32
    return %arg0, %arg2 : i32, i32
  }
  func.func @transform_1(%arg0: i32, %arg1: i32, %arg2: i32) -> (i32, i32) {
    %c0_i32 = arith.constant 0 : i32
    return %arg2, %arg1 : i32, i32
  }
  func.func @transform_2(%arg0: i32, %arg1: i32, %arg2: i32) -> (i32, i32) {
    %c0_i32 = arith.constant 0 : i32
    %c0_i32_0 = arith.constant 0 : i32
    return %c0_i32, %arg1 : i32, i32
  }
  func.func @transform_3(%arg0: i32, %arg1: i32, %arg2: i32) -> (i32, i32) {
    %c0_i32 = arith.constant 0 : i32
    return %arg0, %arg1 : i32, i32
  }
}

module attributes {stable_mosaic.version = 11 : i64} {
  func.func @kernel(%arg0: i32, %arg1: i32, %arg2: i32, %arg3: memref<16x32xf32, #tpu.memory_space<vmem>>, %arg4: memref<32x64xbf16, #tpu.memory_space<vmem>>, %arg5: memref<1x64xf32, #tpu.memory_space<vmem>>, %arg6: memref<16x64xf32, #tpu.memory_space<vmem>>) attributes {dimension_semantics = [#tpu.dimension_semantics<parallel>, #tpu.dimension_semantics<parallel>, #tpu.dimension_semantics<arbitrary>], iteration_bounds = array<i64: 1, 1, 1>, scalar_prefetch = 0 : i64, scratch_operands = 0 : i64, tpu.core_type = #tpu.core_type<tc>, window_params = [{transform_indices = @transform_0, window_bounds = array<i64: 16, 32>}, {transform_indices = @transform_1, window_bounds = array<i64: 32, 64>}, {transform_indices = @transform_2, window_bounds = array<i64: 1, 64>}, {transform_indices = @transform_3, window_bounds = array<i64: 16, 64>}]} {
    %c0 = arith.constant 0 : index
    %c0_0 = arith.constant 0 : index
    %0 = vector.load %arg3[%c0, %c0_0] : memref<16x32xf32, #tpu.memory_space<vmem>>, vector<16x32xf32>
    %1 = arith.truncf %0 : vector<16x32xf32> to vector<16x32xbf16>
    %c0_1 = arith.constant 0 : index
    %c0_2 = arith.constant 0 : index
    %2 = vector.load %arg4[%c0_1, %c0_2] : memref<32x64xbf16, #tpu.memory_space<vmem>>, vector<32x64xbf16>
    %cst = arith.constant dense<0.000000e+00> : vector<16x64xf32>
    %3 = tpu.matmul %1, %2, %cst {dimension_numbers = #tpu.dot_dimension_numbers<[1], [0], [0], [1], [0, 0, 1, 1], [], []>} : vector<16x32xbf16>, vector<32x64xbf16>, vector<16x64xf32> -> vector<16x64xf32>
    %c0_3 = arith.constant 0 : index
    %c0_4 = arith.constant 0 : index
    %4 = vector.load %arg5[%c0_3, %c0_4] : memref<1x64xf32, #tpu.memory_space<vmem>>, vector<1x64xf32>
    %5 = vector.broadcast %4 : vector<1x64xf32> to vector<16x64xf32>
    %6 = arith.addf %3, %5 : vector<16x64xf32>
    %c0_5 = arith.constant 0 : index
    %c0_6 = arith.constant 0 : index
    %7 = vector.load %arg6[%c0_5, %c0_6] : memref<16x64xf32, #tpu.memory_space<vmem>>, vector<16x64xf32>
    tpu.vector_store %arg6[%c0_5, %c0_6], %6 {strides = array<i32>} : memref<16x64xf32, #tpu.memory_space<vmem>>, vector<16x64xf32>,
    return
  }
  func.func @transform_0(%arg0: i32, %arg1: i32, %arg2: i32) -> (i32, i32) {
    %c0_i32 = arith.constant 0 : i32
    return %arg0, %arg2 : i32, i32
  }
  func.func @transform_1(%arg0: i32, %arg1: i32, %arg2: i32) -> (i32, i32) {
    %c0_i32 = arith.constant 0 : i32
    return %arg2, %arg1 : i32, i32
  }
  func.func @transform_2(%arg0: i32, %arg1: i32, %arg2: i32) -> (i32, i32) {
    %c0_i32 = arith.constant 0 : i32
    %c0_i32_0 = arith.constant 0 : i32
    return %c0_i32, %arg1 : i32, i32
  }
  func.func @transform_3(%arg0: i32, %arg1: i32, %arg2: i32) -> (i32, i32) {
    %c0_i32 = arith.constant 0 : i32
    return %arg0, %arg1 : i32, i32
  }
}

module attributes {stable_mosaic.version = 11 : i64} {
  func.func @_flash_attn_kernel(%arg0: i32, %arg1: i32, %arg2: i32, %arg3: memref<1x8x32xf32, #tpu.memory_space<vmem>>, %arg4: memref<1x8x64xf32, #tpu.memory_space<vmem>>, %arg5: memref<1x8x32xf32, #tpu.memory_space<vmem>>, %arg6: memref<4x8x1xf32, #tpu.memory_space<vmem>>, %arg7: memref<4x8x1xf32, #tpu.memory_space<vmem>>, %arg8: memref<8x32xf32, #tpu.memory_space<vmem>>) attributes {dimension_semantics = [#tpu.dimension_semantics<parallel>, #tpu.dimension_semantics<parallel>, #tpu.dimension_semantics<arbitrary>], iteration_bounds = array<i64: 2, 1, 1>, scalar_prefetch = 0 : i64, scratch_operands = 3 : i64, tpu.core_type = #tpu.core_type<tc>, window_params = [{transform_indices = @transform_0, window_bounds = array<i64: 1, 8, 32>}, {transform_indices = @transform_1, window_bounds = array<i64: 1, 8, 64>}, {transform_indices = @transform_2, window_bounds = array<i64: 1, 8, 32>}]} {
    %c0_i32 = arith.constant 0 : i32
    %0 = arith.cmpi eq, %arg2, %c0_i32 : i32
    %1 = arith.extui %0 : i1 to i32
    %c0_i32_0 = arith.constant 0 : i32
    %2 = arith.cmpi ne, %1, %c0_i32_0 : i32
    scf.if %2 {
      %cst_85 = arith.constant 0xFF800000 : f32
      %162 = vector.broadcast %cst_85 : f32 to vector<4x8x1xf32>
      %c0_86 = arith.constant 0 : index
      %c0_87 = arith.constant 0 : index
      %c0_88 = arith.constant 0 : index
      %163 = vector.load %arg6[%c0_86, %c0_87, %c0_88] : memref<4x8x1xf32, #tpu.memory_space<vmem>>, vector<4x8x1xf32>
      tpu.vector_store %arg6[%c0_86, %c0_87, %c0_88], %162 {strides = array<i32>} : memref<4x8x1xf32, #tpu.memory_space<vmem>>, vector<4x8x1xf32>,
      %cst_89 = arith.constant 0.000000e+00 : f32
      %164 = vector.broadcast %cst_89 : f32 to vector<4x8x1xf32>
      %c0_90 = arith.constant 0 : index
      %c0_91 = arith.constant 0 : index
      %c0_92 = arith.constant 0 : index
      %165 = vector.load %arg7[%c0_90, %c0_91, %c0_92] : memref<4x8x1xf32, #tpu.memory_space<vmem>>, vector<4x8x1xf32>
      tpu.vector_store %arg7[%c0_90, %c0_91, %c0_92], %164 {strides = array<i32>} : memref<4x8x1xf32, #tpu.memory_space<vmem>>, vector<4x8x1xf32>,
      %cst_93 = arith.constant 0.000000e+00 : f32
      %166 = vector.broadcast %cst_93 : f32 to vector<8x32xf32>
      %c0_94 = arith.constant 0 : index
      %c0_95 = arith.constant 0 : index
      %167 = vector.load %arg8[%c0_94, %c0_95] : memref<8x32xf32, #tpu.memory_space<vmem>>, vector<8x32xf32>
      tpu.vector_store %arg8[%c0_94, %c0_95], %166 {strides = array<i32>} : memref<8x32xf32, #tpu.memory_space<vmem>>, vector<8x32xf32>,
    } else {
    }
    %c0 = arith.constant 0 : index
    %c0_1 = arith.constant 0 : index
    %c0_2 = arith.constant 0 : index
    %3 = vector.load %arg3[%c0, %c0_1, %c0_2] : memref<1x8x32xf32, #tpu.memory_space<vmem>>, vector<1x8x32xf32>
    %4 = vector.shape_cast %3 : vector<1x8x32xf32> to vector<8x32xf32>
    %c0_3 = arith.constant 0 : index
    %c0_4 = arith.constant 0 : index
    %c0_5 = arith.constant 0 : index
    %5 = vector.load %arg4[%c0_3, %c0_4, %c0_5] : memref<1x8x64xf32, #tpu.memory_space<vmem>>, vector<1x8x64xf32>
    %6 = vector.shape_cast %5 : vector<1x8x64xf32> to vector<8x64xf32>
    %7 = vector.extract_strided_slice %4 {offsets = [0, 0], sizes = [8, 8], strides = [1, 1]} : vector<8x32xf32> to vector<8x8xf32>
    %8 = vector.extract_strided_slice %6 {offsets = [0, 0], sizes = [8, 8], strides = [1, 1]} : vector<8x64xf32> to vector<8x8xf32>
    %9 = vector.extract_strided_slice %6 {offsets = [0, 32], sizes = [8, 8], strides = [1, 1]} : vector<8x64xf32> to vector<8x8xf32>
    %10 = arith.truncf %7 : vector<8x8xf32> to vector<8x8xbf16>
    %11 = arith.truncf %8 : vector<8x8xf32> to vector<8x8xbf16>
    %12 = arith.truncf %9 : vector<8x8xf32> to vector<8x8xbf16>
    %cst = arith.constant dense<0.000000e+00> : vector<8x8xf32>
    %13 = tpu.matmul %10, %11, %cst {dimension_numbers = #tpu.dot_dimension_numbers<[1], [1], [0], [0], [0, 0, 1, 0], [], []>} : vector<8x8xbf16>, vector<8x8xbf16>, vector<8x8xf32> -> vector<8x8xf32>
    %cst_6 = arith.constant 0.353553385 : f32
    %14 = vector.broadcast %cst_6 : f32 to vector<8x8xf32>
    %15 = arith.mulf %13, %14 : vector<8x8xf32>
    %c0_7 = arith.constant 0 : index
    %c0_8 = arith.constant 0 : index
    %c0_9 = arith.constant 0 : index
    %16 = vector.load %arg6[%c0_7, %c0_8, %c0_9] : memref<4x8x1xf32, #tpu.memory_space<vmem>>, vector<1x8x1xf32>
    %17 = vector.shape_cast %16 : vector<1x8x1xf32> to vector<8x1xf32>
    %cst_10 = arith.constant dense<0xFF800000> : vector<8xf32>
    %18 = vector.multi_reduction <maximumf>, %15, %cst_10 [1] : vector<8x8xf32> to vector<8xf32>
    %19 = vector.shape_cast %18 : vector<8xf32> to vector<8x1xf32>
    %20 = arith.maximumf %17, %19 : vector<8x1xf32>
    %21 = arith.subf %17, %20 : vector<8x1xf32>
    %22 = math.exp %21 : vector<8x1xf32>
    %23 = vector.broadcast %20 : vector<8x1xf32> to vector<8x8xf32>
    %24 = arith.subf %15, %23 : vector<8x8xf32>
    %25 = math.exp %24 : vector<8x8xf32>
    %c0_11 = arith.constant 0 : index
    %c0_12 = arith.constant 0 : index
    %c0_13 = arith.constant 0 : index
    %26 = vector.load %arg7[%c0_11, %c0_12, %c0_13] : memref<4x8x1xf32, #tpu.memory_space<vmem>>, vector<1x8x1xf32>
    %27 = vector.shape_cast %26 : vector<1x8x1xf32> to vector<8x1xf32>
    %28 = arith.mulf %22, %27 : vector<8x1xf32>
    %cst_14 = arith.constant dense<0.000000e+00> : vector<8xf32>
    %29 = vector.multi_reduction <add>, %25, %cst_14 [1] : vector<8x8xf32> to vector<8xf32>
    %30 = vector.shape_cast %29 : vector<8xf32> to vector<8x1xf32>
    %31 = arith.addf %28, %30 : vector<8x1xf32>
    %c0_15 = arith.constant 0 : index
    %c0_16 = arith.constant 0 : index
    %c0_17 = arith.constant 0 : index
    %32 = vector.load %arg7[%c0_15, %c0_16, %c0_17] : memref<4x8x1xf32, #tpu.memory_space<vmem>>, vector<1x8x1xf32>
    %33 = vector.shape_cast %32 : vector<1x8x1xf32> to vector<8x1xf32>
    %34 = vector.shape_cast %31 : vector<8x1xf32> to vector<1x8x1xf32>
    tpu.vector_store %arg7[%c0_15, %c0_16, %c0_17], %34 {strides = array<i32>} : memref<4x8x1xf32, #tpu.memory_space<vmem>>, vector<1x8x1xf32>,
    %c0_18 = arith.constant 0 : index
    %c0_19 = arith.constant 0 : index
    %35 = vector.load %arg8[%c0_18, %c0_19] : memref<8x32xf32, #tpu.memory_space<vmem>>, vector<8x8xf32>
    %36 = vector.broadcast %22 : vector<8x1xf32> to vector<8x8xf32>
    %37 = arith.mulf %36, %35 : vector<8x8xf32>
    %38 = arith.truncf %25 : vector<8x8xf32> to vector<8x8xbf16>
    %cst_20 = arith.constant dense<0.000000e+00> : vector<8x8xf32>
    %39 = tpu.matmul %38, %12, %cst_20 {dimension_numbers = #tpu.dot_dimension_numbers<[1], [0], [0], [1], [0, 0, 1, 1], [], []>} : vector<8x8xbf16>, vector<8x8xbf16>, vector<8x8xf32> -> vector<8x8xf32>
    %40 = arith.addf %37, %39 : vector<8x8xf32>
    %c0_21 = arith.constant 0 : index
    %c0_22 = arith.constant 0 : index
    %41 = vector.load %arg8[%c0_21, %c0_22] : memref<8x32xf32, #tpu.memory_space<vmem>>, vector<8x8xf32>
    tpu.vector_store %arg8[%c0_21, %c0_22], %40 {strides = array<i32>} : memref<8x32xf32, #tpu.memory_space<vmem>>, vector<8x8xf32>,
    %c0_23 = arith.constant 0 : index
    %c0_24 = arith.constant 0 : index
    %c0_25 = arith.constant 0 : index
    %42 = vector.load %arg6[%c0_23, %c0_24, %c0_25] : memref<4x8x1xf32, #tpu.memory_space<vmem>>, vector<1x8x1xf32>
    %43 = vector.shape_cast %42 : vector<1x8x1xf32> to vector<8x1xf32>
    %44 = vector.shape_cast %20 : vector<8x1xf32> to vector<1x8x1xf32>
    tpu.vector_store %arg6[%c0_23, %c0_24, %c0_25], %44 {strides = array<i32>} : memref<4x8x1xf32, #tpu.memory_space<vmem>>, vector<1x8x1xf32>,
    %45 = vector.extract_strided_slice %4 {offsets = [0, 8], sizes = [8, 8], strides = [1, 1]} : vector<8x32xf32> to vector<8x8xf32>
    %46 = vector.extract_strided_slice %6 {offsets = [0, 8], sizes = [8, 8], strides = [1, 1]} : vector<8x64xf32> to vector<8x8xf32>
    %47 = vector.extract_strided_slice %6 {offsets = [0, 40], sizes = [8, 8], strides = [1, 1]} : vector<8x64xf32> to vector<8x8xf32>
    %48 = arith.truncf %45 : vector<8x8xf32> to vector<8x8xbf16>
    %49 = arith.truncf %46 : vector<8x8xf32> to vector<8x8xbf16>
    %50 = arith.truncf %47 : vector<8x8xf32> to vector<8x8xbf16>
    %cst_26 = arith.constant dense<0.000000e+00> : vector<8x8xf32>
    %51 = tpu.matmul %48, %49, %cst_26 {dimension_numbers = #tpu.dot_dimension_numbers<[1], [1], [0], [0], [0, 0, 1, 0], [], []>} : vector<8x8xbf16>, vector<8x8xbf16>, vector<8x8xf32> -> vector<8x8xf32>
    %cst_27 = arith.constant 0.353553385 : f32
    %52 = vector.broadcast %cst_27 : f32 to vector<8x8xf32>
    %53 = arith.mulf %51, %52 : vector<8x8xf32>
    %c1 = arith.constant 1 : index
    %c0_28 = arith.constant 0 : index
    %c0_29 = arith.constant 0 : index
    %54 = vector.load %arg6[%c1, %c0_28, %c0_29] : memref<4x8x1xf32, #tpu.memory_space<vmem>>, vector<1x8x1xf32>
    %55 = vector.shape_cast %54 : vector<1x8x1xf32> to vector<8x1xf32>
    %cst_30 = arith.constant dense<0xFF800000> : vector<8xf32>
    %56 = vector.multi_reduction <maximumf>, %53, %cst_30 [1] : vector<8x8xf32> to vector<8xf32>
    %57 = vector.shape_cast %56 : vector<8xf32> to vector<8x1xf32>
    %58 = arith.maximumf %55, %57 : vector<8x1xf32>
    %59 = arith.subf %55, %58 : vector<8x1xf32>
    %60 = math.exp %59 : vector<8x1xf32>
    %61 = vector.broadcast %58 : vector<8x1xf32> to vector<8x8xf32>
    %62 = arith.subf %53, %61 : vector<8x8xf32>
    %63 = math.exp %62 : vector<8x8xf32>
    %c1_31 = arith.constant 1 : index
    %c0_32 = arith.constant 0 : index
    %c0_33 = arith.constant 0 : index
    %64 = vector.load %arg7[%c1_31, %c0_32, %c0_33] : memref<4x8x1xf32, #tpu.memory_space<vmem>>, vector<1x8x1xf32>
    %65 = vector.shape_cast %64 : vector<1x8x1xf32> to vector<8x1xf32>
    %66 = arith.mulf %60, %65 : vector<8x1xf32>
    %cst_34 = arith.constant dense<0.000000e+00> : vector<8xf32>
    %67 = vector.multi_reduction <add>, %63, %cst_34 [1] : vector<8x8xf32> to vector<8xf32>
    %68 = vector.shape_cast %67 : vector<8xf32> to vector<8x1xf32>
    %69 = arith.addf %66, %68 : vector<8x1xf32>
    %c1_35 = arith.constant 1 : index
    %c0_36 = arith.constant 0 : index
    %c0_37 = arith.constant 0 : index
    %70 = vector.load %arg7[%c1_35, %c0_36, %c0_37] : memref<4x8x1xf32, #tpu.memory_space<vmem>>, vector<1x8x1xf32>
    %71 = vector.shape_cast %70 : vector<1x8x1xf32> to vector<8x1xf32>
    %72 = vector.shape_cast %69 : vector<8x1xf32> to vector<1x8x1xf32>
    tpu.vector_store %arg7[%c1_35, %c0_36, %c0_37], %72 {strides = array<i32>} : memref<4x8x1xf32, #tpu.memory_space<vmem>>, vector<1x8x1xf32>,
    %c0_38 = arith.constant 0 : index
    %c8 = arith.constant 8 : index
    %73 = vector.load %arg8[%c0_38, %c8] : memref<8x32xf32, #tpu.memory_space<vmem>>, vector<8x8xf32>
    %74 = vector.broadcast %60 : vector<8x1xf32> to vector<8x8xf32>
    %75 = arith.mulf %74, %73 : vector<8x8xf32>
    %76 = arith.truncf %63 : vector<8x8xf32> to vector<8x8xbf16>
    %cst_39 = arith.constant dense<0.000000e+00> : vector<8x8xf32>
    %77 = tpu.matmul %76, %50, %cst_39 {dimension_numbers = #tpu.dot_dimension_numbers<[1], [0], [0], [1], [0, 0, 1, 1], [], []>} : vector<8x8xbf16>, vector<8x8xbf16>, vector<8x8xf32> -> vector<8x8xf32>
    %78 = arith.addf %75, %77 : vector<8x8xf32>
    %c0_40 = arith.constant 0 : index
    %c8_41 = arith.constant 8 : index
    %79 = vector.load %arg8[%c0_40, %c8_41] : memref<8x32xf32, #tpu.memory_space<vmem>>, vector<8x8xf32>
    tpu.vector_store %arg8[%c0_40, %c8_41], %78 {strides = array<i32>} : memref<8x32xf32, #tpu.memory_space<vmem>>, vector<8x8xf32>,
    %c1_42 = arith.constant 1 : index
    %c0_43 = arith.constant 0 : index
    %c0_44 = arith.constant 0 : index
    %80 = vector.load %arg6[%c1_42, %c0_43, %c0_44] : memref<4x8x1xf32, #tpu.memory_space<vmem>>, vector<1x8x1xf32>
    %81 = vector.shape_cast %80 : vector<1x8x1xf32> to vector<8x1xf32>
    %82 = vector.shape_cast %58 : vector<8x1xf32> to vector<1x8x1xf32>
    tpu.vector_store %arg6[%c1_42, %c0_43, %c0_44], %82 {strides = array<i32>} : memref<4x8x1xf32, #tpu.memory_space<vmem>>, vector<1x8x1xf32>,
    %83 = vector.extract_strided_slice %4 {offsets = [0, 16], sizes = [8, 8], strides = [1, 1]} : vector<8x32xf32> to vector<8x8xf32>
    %84 = vector.extract_strided_slice %6 {offsets = [0, 16], sizes = [8, 8], strides = [1, 1]} : vector<8x64xf32> to vector<8x8xf32>
    %85 = vector.extract_strided_slice %6 {offsets = [0, 48], sizes = [8, 8], strides = [1, 1]} : vector<8x64xf32> to vector<8x8xf32>
    %86 = arith.truncf %83 : vector<8x8xf32> to vector<8x8xbf16>
    %87 = arith.truncf %84 : vector<8x8xf32> to vector<8x8xbf16>
    %88 = arith.truncf %85 : vector<8x8xf32> to vector<8x8xbf16>
    %cst_45 = arith.constant dense<0.000000e+00> : vector<8x8xf32>
    %89 = tpu.matmul %86, %87, %cst_45 {dimension_numbers = #tpu.dot_dimension_numbers<[1], [1], [0], [0], [0, 0, 1, 0], [], []>} : vector<8x8xbf16>, vector<8x8xbf16>, vector<8x8xf32> -> vector<8x8xf32>
    %cst_46 = arith.constant 0.353553385 : f32
    %90 = vector.broadcast %cst_46 : f32 to vector<8x8xf32>
    %91 = arith.mulf %89, %90 : vector<8x8xf32>
    %c2 = arith.constant 2 : index
    %c0_47 = arith.constant 0 : index
    %c0_48 = arith.constant 0 : index
    %92 = vector.load %arg6[%c2, %c0_47, %c0_48] : memref<4x8x1xf32, #tpu.memory_space<vmem>>, vector<1x8x1xf32>
    %93 = vector.shape_cast %92 : vector<1x8x1xf32> to vector<8x1xf32>
    %cst_49 = arith.constant dense<0xFF800000> : vector<8xf32>
    %94 = vector.multi_reduction <maximumf>, %91, %cst_49 [1] : vector<8x8xf32> to vector<8xf32>
    %95 = vector.shape_cast %94 : vector<8xf32> to vector<8x1xf32>
    %96 = arith.maximumf %93, %95 : vector<8x1xf32>
    %97 = arith.subf %93, %96 : vector<8x1xf32>
    %98 = math.exp %97 : vector<8x1xf32>
    %99 = vector.broadcast %96 : vector<8x1xf32> to vector<8x8xf32>
    %100 = arith.subf %91, %99 : vector<8x8xf32>
    %101 = math.exp %100 : vector<8x8xf32>
    %c2_50 = arith.constant 2 : index
    %c0_51 = arith.constant 0 : index
    %c0_52 = arith.constant 0 : index
    %102 = vector.load %arg7[%c2_50, %c0_51, %c0_52] : memref<4x8x1xf32, #tpu.memory_space<vmem>>, vector<1x8x1xf32>
    %103 = vector.shape_cast %102 : vector<1x8x1xf32> to vector<8x1xf32>
    %104 = arith.mulf %98, %103 : vector<8x1xf32>
    %cst_53 = arith.constant dense<0.000000e+00> : vector<8xf32>
    %105 = vector.multi_reduction <add>, %101, %cst_53 [1] : vector<8x8xf32> to vector<8xf32>
    %106 = vector.shape_cast %105 : vector<8xf32> to vector<8x1xf32>
    %107 = arith.addf %104, %106 : vector<8x1xf32>
    %c2_54 = arith.constant 2 : index
    %c0_55 = arith.constant 0 : index
    %c0_56 = arith.constant 0 : index
    %108 = vector.load %arg7[%c2_54, %c0_55, %c0_56] : memref<4x8x1xf32, #tpu.memory_space<vmem>>, vector<1x8x1xf32>
    %109 = vector.shape_cast %108 : vector<1x8x1xf32> to vector<8x1xf32>
    %110 = vector.shape_cast %107 : vector<8x1xf32> to vector<1x8x1xf32>
    tpu.vector_store %arg7[%c2_54, %c0_55, %c0_56], %110 {strides = array<i32>} : memref<4x8x1xf32, #tpu.memory_space<vmem>>, vector<1x8x1xf32>,
    %c0_57 = arith.constant 0 : index
    %c16 = arith.constant 16 : index
    %111 = vector.load %arg8[%c0_57, %c16] : memref<8x32xf32, #tpu.memory_space<vmem>>, vector<8x8xf32>
    %112 = vector.broadcast %98 : vector<8x1xf32> to vector<8x8xf32>
    %113 = arith.mulf %112, %111 : vector<8x8xf32>
    %114 = arith.truncf %101 : vector<8x8xf32> to vector<8x8xbf16>
    %cst_58 = arith.constant dense<0.000000e+00> : vector<8x8xf32>
    %115 = tpu.matmul %114, %88, %cst_58 {dimension_numbers = #tpu.dot_dimension_numbers<[1], [0], [0], [1], [0, 0, 1, 1], [], []>} : vector<8x8xbf16>, vector<8x8xbf16>, vector<8x8xf32> -> vector<8x8xf32>
    %116 = arith.addf %113, %115 : vector<8x8xf32>
    %c0_59 = arith.constant 0 : index
    %c16_60 = arith.constant 16 : index
    %117 = vector.load %arg8[%c0_59, %c16_60] : memref<8x32xf32, #tpu.memory_space<vmem>>, vector<8x8xf32>
    tpu.vector_store %arg8[%c0_59, %c16_60], %116 {strides = array<i32>} : memref<8x32xf32, #tpu.memory_space<vmem>>, vector<8x8xf32>,
    %c2_61 = arith.constant 2 : index
    %c0_62 = arith.constant 0 : index
    %c0_63 = arith.constant 0 : index
    %118 = vector.load %arg6[%c2_61, %c0_62, %c0_63] : memref<4x8x1xf32, #tpu.memory_space<vmem>>, vector<1x8x1xf32>
    %119 = vector.shape_cast %118 : vector<1x8x1xf32> to vector<8x1xf32>
    %120 = vector.shape_cast %96 : vector<8x1xf32> to vector<1x8x1xf32>
    tpu.vector_store %arg6[%c2_61, %c0_62, %c0_63], %120 {strides = array<i32>} : memref<4x8x1xf32, #tpu.memory_space<vmem>>, vector<1x8x1xf32>,
    %121 = vector.extract_strided_slice %4 {offsets = [0, 24], sizes = [8, 8], strides = [1, 1]} : vector<8x32xf32> to vector<8x8xf32>
    %122 = vector.extract_strided_slice %6 {offsets = [0, 24], sizes = [8, 8], strides = [1, 1]} : vector<8x64xf32> to vector<8x8xf32>
    %123 = vector.extract_strided_slice %6 {offsets = [0, 56], sizes = [8, 8], strides = [1, 1]} : vector<8x64xf32> to vector<8x8xf32>
    %124 = arith.truncf %121 : vector<8x8xf32> to vector<8x8xbf16>
    %125 = arith.truncf %122 : vector<8x8xf32> to vector<8x8xbf16>
    %126 = arith.truncf %123 : vector<8x8xf32> to vector<8x8xbf16>
    %cst_64 = arith.constant dense<0.000000e+00> : vector<8x8xf32>
    %127 = tpu.matmul %124, %125, %cst_64 {dimension_numbers = #tpu.dot_dimension_numbers<[1], [1], [0], [0], [0, 0, 1, 0], [], []>} : vector<8x8xbf16>, vector<8x8xbf16>, vector<8x8xf32> -> vector<8x8xf32>
    %cst_65 = arith.constant 0.353553385 : f32
    %128 = vector.broadcast %cst_65 : f32 to vector<8x8xf32>
    %129 = arith.mulf %127, %128 : vector<8x8xf32>
    %c3 = arith.constant 3 : index
    %c0_66 = arith.constant 0 : index
    %c0_67 = arith.constant 0 : index
    %130 = vector.load %arg6[%c3, %c0_66, %c0_67] : memref<4x8x1xf32, #tpu.memory_space<vmem>>, vector<1x8x1xf32>
    %131 = vector.shape_cast %130 : vector<1x8x1xf32> to vector<8x1xf32>
    %cst_68 = arith.constant dense<0xFF800000> : vector<8xf32>
    %132 = vector.multi_reduction <maximumf>, %129, %cst_68 [1] : vector<8x8xf32> to vector<8xf32>
    %133 = vector.shape_cast %132 : vector<8xf32> to vector<8x1xf32>
    %134 = arith.maximumf %131, %133 : vector<8x1xf32>
    %135 = arith.subf %131, %134 : vector<8x1xf32>
    %136 = math.exp %135 : vector<8x1xf32>
    %137 = vector.broadcast %134 : vector<8x1xf32> to vector<8x8xf32>
    %138 = arith.subf %129, %137 : vector<8x8xf32>
    %139 = math.exp %138 : vector<8x8xf32>
    %c3_69 = arith.constant 3 : index
    %c0_70 = arith.constant 0 : index
    %c0_71 = arith.constant 0 : index
    %140 = vector.load %arg7[%c3_69, %c0_70, %c0_71] : memref<4x8x1xf32, #tpu.memory_space<vmem>>, vector<1x8x1xf32>
    %141 = vector.shape_cast %140 : vector<1x8x1xf32> to vector<8x1xf32>
    %142 = arith.mulf %136, %141 : vector<8x1xf32>
    %cst_72 = arith.constant dense<0.000000e+00> : vector<8xf32>
    %143 = vector.multi_reduction <add>, %139, %cst_72 [1] : vector<8x8xf32> to vector<8xf32>
    %144 = vector.shape_cast %143 : vector<8xf32> to vector<8x1xf32>
    %145 = arith.addf %142, %144 : vector<8x1xf32>
    %c3_73 = arith.constant 3 : index
    %c0_74 = arith.constant 0 : index
    %c0_75 = arith.constant 0 : index
    %146 = vector.load %arg7[%c3_73, %c0_74, %c0_75] : memref<4x8x1xf32, #tpu.memory_space<vmem>>, vector<1x8x1xf32>
    %147 = vector.shape_cast %146 : vector<1x8x1xf32> to vector<8x1xf32>
    %148 = vector.shape_cast %145 : vector<8x1xf32> to vector<1x8x1xf32>
    tpu.vector_store %arg7[%c3_73, %c0_74, %c0_75], %148 {strides = array<i32>} : memref<4x8x1xf32, #tpu.memory_space<vmem>>, vector<1x8x1xf32>,
    %c0_76 = arith.constant 0 : index
    %c24 = arith.constant 24 : index
    %149 = vector.load %arg8[%c0_76, %c24] : memref<8x32xf32, #tpu.memory_space<vmem>>, vector<8x8xf32>
    %150 = vector.broadcast %136 : vector<8x1xf32> to vector<8x8xf32>
    %151 = arith.mulf %150, %149 : vector<8x8xf32>
    %152 = arith.truncf %139 : vector<8x8xf32> to vector<8x8xbf16>
    %cst_77 = arith.constant dense<0.000000e+00> : vector<8x8xf32>
    %153 = tpu.matmul %152, %126, %cst_77 {dimension_numbers = #tpu.dot_dimension_numbers<[1], [0], [0], [1], [0, 0, 1, 1], [], []>} : vector<8x8xbf16>, vector<8x8xbf16>, vector<8x8xf32> -> vector<8x8xf32>
    %154 = arith.addf %151, %153 : vector<8x8xf32>
    %c0_78 = arith.constant 0 : index
    %c24_79 = arith.constant 24 : index
    %155 = vector.load %arg8[%c0_78, %c24_79] : memref<8x32xf32, #tpu.memory_space<vmem>>, vector<8x8xf32>
    tpu.vector_store %arg8[%c0_78, %c24_79], %154 {strides = array<i32>} : memref<8x32xf32, #tpu.memory_space<vmem>>, vector<8x8xf32>,
    %c3_80 = arith.constant 3 : index
    %c0_81 = arith.constant 0 : index
    %c0_82 = arith.constant 0 : index
    %156 = vector.load %arg6[%c3_80, %c0_81, %c0_82] : memref<4x8x1xf32, #tpu.memory_space<vmem>>, vector<1x8x1xf32>
    %157 = vector.shape_cast %156 : vector<1x8x1xf32> to vector<8x1xf32>
    %158 = vector.shape_cast %134 : vector<8x1xf32> to vector<1x8x1xf32>
    tpu.vector_store %arg6[%c3_80, %c0_81, %c0_82], %158 {strides = array<i32>} : memref<4x8x1xf32, #tpu.memory_space<vmem>>, vector<1x8x1xf32>,
    %c0_i32_83 = arith.constant 0 : i32
    %159 = arith.cmpi eq, %arg2, %c0_i32_83 : i32
    %160 = arith.extui %159 : i1 to i32
    %c0_i32_84 = arith.constant 0 : i32
    %161 = arith.cmpi ne, %160, %c0_i32_84 : i32
    scf.if %161 {
      %c0_85 = arith.constant 0 : index
      %c0_86 = arith.constant 0 : index
      %162 = vector.load %arg8[%c0_85, %c0_86] : memref<8x32xf32, #tpu.memory_space<vmem>>, vector<8x8xf32>
      %c0_87 = arith.constant 0 : index
      %c0_88 = arith.constant 0 : index
      %c0_89 = arith.constant 0 : index
      %163 = vector.load %arg7[%c0_87, %c0_88, %c0_89] : memref<4x8x1xf32, #tpu.memory_space<vmem>>, vector<1x8x1xf32>
      %164 = vector.shape_cast %163 : vector<1x8x1xf32> to vector<8x1xf32>
      %165 = vector.broadcast %164 : vector<8x1xf32> to vector<8x8xf32>
      %166 = arith.divf %162, %165 : vector<8x8xf32>
      %c0_90 = arith.constant 0 : index
      %c0_91 = arith.constant 0 : index
      %c0_92 = arith.constant 0 : index
      %167 = vector.load %arg5[%c0_90, %c0_91, %c0_92] : memref<1x8x32xf32, #tpu.memory_space<vmem>>, vector<1x8x8xf32>
      %168 = vector.shape_cast %167 : vector<1x8x8xf32> to vector<8x8xf32>
      %169 = vector.shape_cast %166 : vector<8x8xf32> to vector<1x8x8xf32>
      tpu.vector_store %arg5[%c0_90, %c0_91, %c0_92], %169 {strides = array<i32>} : memref<1x8x32xf32, #tpu.memory_space<vmem>>, vector<1x8x8xf32>,
      %c0_93 = arith.constant 0 : index
      %c8_94 = arith.constant 8 : index
      %170 = vector.load %arg8[%c0_93, %c8_94] : memref<8x32xf32, #tpu.memory_space<vmem>>, vector<8x8xf32>
      %c1_95 = arith.constant 1 : index
      %c0_96 = arith.constant 0 : index
      %c0_97 = arith.constant 0 : index
      %171 = vector.load %arg7[%c1_95, %c0_96, %c0_97] : memref<4x8x1xf32, #tpu.memory_space<vmem>>, vector<1x8x1xf32>
      %172 = vector.shape_cast %171 : vector<1x8x1xf32> to vector<8x1xf32>
      %173 = vector.broadcast %172 : vector<8x1xf32> to vector<8x8xf32>
      %174 = arith.divf %170, %173 : vector<8x8xf32>
      %c0_98 = arith.constant 0 : index
      %c0_99 = arith.constant 0 : index
      %c8_100 = arith.constant 8 : index
      %175 = vector.load %arg5[%c0_98, %c0_99, %c8_100] : memref<1x8x32xf32, #tpu.memory_space<vmem>>, vector<1x8x8xf32>
      %176 = vector.shape_cast %175 : vector<1x8x8xf32> to vector<8x8xf32>
      %177 = vector.shape_cast %174 : vector<8x8xf32> to vector<1x8x8xf32>
      tpu.vector_store %arg5[%c0_98, %c0_99, %c8_100], %177 {strides = array<i32>} : memref<1x8x32xf32, #tpu.memory_space<vmem>>, vector<1x8x8xf32>,
      %c0_101 = arith.constant 0 : index
      %c16_102 = arith.constant 16 : index
      %178 = vector.load %arg8[%c0_101, %c16_102] : memref<8x32xf32, #tpu.memory_space<vmem>>, vector<8x8xf32>
      %c2_103 = arith.constant 2 : index
      %c0_104 = arith.constant 0 : index
      %c0_105 = arith.constant 0 : index
      %179 = vector.load %arg7[%c2_103, %c0_104, %c0_105] : memref<4x8x1xf32, #tpu.memory_space<vmem>>, vector<1x8x1xf32>
      %180 = vector.shape_cast %179 : vector<1x8x1xf32> to vector<8x1xf32>
      %181 = vector.broadcast %180 : vector<8x1xf32> to vector<8x8xf32>
      %182 = arith.divf %178, %181 : vector<8x8xf32>
      %c0_106 = arith.constant 0 : index
      %c0_107 = arith.constant 0 : index
      %c16_108 = arith.constant 16 : index
      %183 = vector.load %arg5[%c0_106, %c0_107, %c16_108] : memref<1x8x32xf32, #tpu.memory_space<vmem>>, vector<1x8x8xf32>
      %184 = vector.shape_cast %183 : vector<1x8x8xf32> to vector<8x8xf32>
      %185 = vector.shape_cast %182 : vector<8x8xf32> to vector<1x8x8xf32>
      tpu.vector_store %arg5[%c0_106, %c0_107, %c16_108], %185 {strides = array<i32>} : memref<1x8x32xf32, #tpu.memory_space<vmem>>, vector<1x8x8xf32>,
      %c0_109 = arith.constant 0 : index
      %c24_110 = arith.constant 24 : index
      %186 = vector.load %arg8[%c0_109, %c24_110] : memref<8x32xf32, #tpu.memory_space<vmem>>, vector<8x8xf32>
      %c3_111 = arith.constant 3 : index
      %c0_112 = arith.constant 0 : index
      %c0_113 = arith.constant 0 : index
      %187 = vector.load %arg7[%c3_111, %c0_112, %c0_113] : memref<4x8x1xf32, #tpu.memory_space<vmem>>, vector<1x8x1xf32>
      %188 = vector.shape_cast %187 : vector<1x8x1xf32> to vector<8x1xf32>
      %189 = vector.broadcast %188 : vector<8x1xf32> to vector<8x8xf32>
      %190 = arith.divf %186, %189 : vector<8x8xf32>
      %c0_114 = arith.constant 0 : index
      %c0_115 = arith.constant 0 : index
      %c24_116 = arith.constant 24 : index
      %191 = vector.load %arg5[%c0_114, %c0_115, %c24_116] : memref<1x8x32xf32, #tpu.memory_space<vmem>>, vector<1x8x8xf32>
      %192 = vector.shape_cast %191 : vector<1x8x8xf32> to vector<8x8xf32>
      %193 = vector.shape_cast %190 : vector<8x8xf32> to vector<1x8x8xf32>
      tpu.vector_store %arg5[%c0_114, %c0_115, %c24_116], %193 {strides = array<i32>} : memref<1x8x32xf32, #tpu.memory_space<vmem>>, vector<1x8x8xf32>,
    } else {
    }
    return
  }
  func.func @transform_0(%arg0: i32, %arg1: i32, %arg2: i32) -> (i32, i32, i32) {
    %c0_i32 = arith.constant 0 : i32
    %c0_i32_0 = arith.constant 0 : i32
    return %arg0, %arg1, %c0_i32 : i32, i32, i32
  }
  func.func @transform_1(%arg0: i32, %arg1: i32, %arg2: i32) -> (i32, i32, i32) {
    %c0_i32 = arith.constant 0 : i32
    %c0_i32_0 = arith.constant 0 : i32
    return %arg0, %arg2, %c0_i32 : i32, i32, i32
  }
  func.func @transform_2(%arg0: i32, %arg1: i32, %arg2: i32) -> (i32, i32, i32) {
    %c0_i32 = arith.constant 0 : i32
    %c0_i32_0 = arith.constant 0 : i32
    return %arg0, %arg1, %c0_i32 : i32, i32, i32
  }
}

module attributes {stable_mosaic.version = 11 : i64} {
  func.func @kernel(%arg0: i32, %arg1: i32, %arg2: i32, %arg3: memref<16x32xf32, #tpu.memory_space<vmem>>, %arg4: memref<32x128xbf16, #tpu.memory_space<vmem>>, %arg5: memref<1x128xf32, #tpu.memory_space<vmem>>, %arg6: memref<16x128xf32, #tpu.memory_space<vmem>>) attributes {dimension_semantics = [#tpu.dimension_semantics<parallel>, #tpu.dimension_semantics<parallel>, #tpu.dimension_semantics<arbitrary>], iteration_bounds = array<i64: 1, 1, 1>, scalar_prefetch = 0 : i64, scratch_operands = 0 : i64, tpu.core_type = #tpu.core_type<tc>, window_params = [{transform_indices = @transform_0, window_bounds = array<i64: 16, 32>}, {transform_indices = @transform_1, window_bounds = array<i64: 32, 128>}, {transform_indices = @transform_2, window_bounds = array<i64: 1, 128>}, {transform_indices = @transform_3, window_bounds = array<i64: 16, 128>}]} {
    %c0 = arith.constant 0 : index
    %c0_0 = arith.constant 0 : index
    %0 = vector.load %arg3[%c0, %c0_0] : memref<16x32xf32, #tpu.memory_space<vmem>>, vector<16x32xf32>
    %1 = arith.truncf %0 : vector<16x32xf32> to vector<16x32xbf16>
    %c0_1 = arith.constant 0 : index
    %c0_2 = arith.constant 0 : index
    %2 = vector.load %arg4[%c0_1, %c0_2] : memref<32x128xbf16, #tpu.memory_space<vmem>>, vector<32x128xbf16>
    %cst = arith.constant dense<0.000000e+00> : vector<16x128xf32>
    %3 = tpu.matmul %1, %2, %cst {dimension_numbers = #tpu.dot_dimension_numbers<[1], [0], [0], [1], [0, 0, 1, 1], [], []>} : vector<16x32xbf16>, vector<32x128xbf16>, vector<16x128xf32> -> vector<16x128xf32>
    %c0_3 = arith.constant 0 : index
    %c0_4 = arith.constant 0 : index
    %4 = vector.load %arg5[%c0_3, %c0_4] : memref<1x128xf32, #tpu.memory_space<vmem>>, vector<1x128xf32>
    %5 = vector.broadcast %4 : vector<1x128xf32> to vector<16x128xf32>
    %6 = arith.addf %3, %5 : vector<16x128xf32>
    %cst_5 = arith.constant 5.000000e-01 : f32
    %7 = vector.broadcast %cst_5 : f32 to vector<16x128xf32>
    %8 = arith.mulf %7, %6 : vector<16x128xf32>
    %cst_6 = arith.constant 0.707106769 : f32
    %9 = vector.broadcast %cst_6 : f32 to vector<16x128xf32>
    %10 = arith.mulf %6, %9 : vector<16x128xf32>
    %11 = math.erf %10 : vector<16x128xf32>
    %cst_7 = arith.constant 1.000000e+00 : f32
    %12 = vector.broadcast %cst_7 : f32 to vector<16x128xf32>
    %13 = arith.addf %12, %11 : vector<16x128xf32>
    %14 = arith.mulf %8, %13 : vector<16x128xf32>
    %c0_8 = arith.constant 0 : index
    %c0_9 = arith.constant 0 : index
    %15 = vector.load %arg6[%c0_8, %c0_9] : memref<16x128xf32, #tpu.memory_space<vmem>>, vector<16x128xf32>
    tpu.vector_store %arg6[%c0_8, %c0_9], %14 {strides = array<i32>} : memref<16x128xf32, #tpu.memory_space<vmem>>, vector<16x128xf32>,
    return
  }
  func.func @transform_0(%arg0: i32, %arg1: i32, %arg2: i32) -> (i32, i32) {
    %c0_i32 = arith.constant 0 : i32
    return %arg0, %arg2 : i32, i32
  }
  func.func @transform_1(%arg0: i32, %arg1: i32, %arg2: i32) -> (i32, i32) {
    %c0_i32 = arith.constant 0 : i32
    return %arg2, %arg1 : i32, i32
  }
  func.func @transform_2(%arg0: i32, %arg1: i32, %arg2: i32) -> (i32, i32) {
    %c0_i32 = arith.constant 0 : i32
    %c0_i32_0 = arith.constant 0 : i32
    return %c0_i32, %arg1 : i32, i32
  }
  func.func @transform_3(%arg0: i32, %arg1: i32, %arg2: i32) -> (i32, i32) {
    %c0_i32 = arith.constant 0 : i32
    return %arg0, %arg1 : i32, i32
  }
}

module attributes {stable_mosaic.version = 11 : i64} {
  func.func @kernel(%arg0: i32, %arg1: i32, %arg2: i32, %arg3: memref<16x128xf32, #tpu.memory_space<vmem>>, %arg4: memref<128x32xbf16, #tpu.memory_space<vmem>>, %arg5: memref<1x32xf32, #tpu.memory_space<vmem>>, %arg6: memref<16x32xf32, #tpu.memory_space<vmem>>, %arg7: memref<1x32xf32, #tpu.memory_space<vmem>>, %arg8: memref<1x32xf32, #tpu.memory_space<vmem>>, %arg9: memref<16x32xf32, #tpu.memory_space<vmem>>, %arg10: memref<16x32xf32, #tpu.memory_space<vmem>>) attributes {dimension_semantics = [#tpu.dimension_semantics<parallel>, #tpu.dimension_semantics<parallel>, #tpu.dimension_semantics<arbitrary>], iteration_bounds = array<i64: 1, 1, 1>, scalar_prefetch = 0 : i64, scratch_operands = 0 : i64, tpu.core_type = #tpu.core_type<tc>, window_params = [{transform_indices = @transform_0, window_bounds = array<i64: 16, 128>}, {transform_indices = @transform_1, window_bounds = array<i64: 128, 32>}, {transform_indices = @transform_2, window_bounds = array<i64: 1, 32>}, {transform_indices = @transform_3, window_bounds = array<i64: 16, 32>}, {transform_indices = @transform_4, window_bounds = array<i64: 1, 32>}, {transform_indices = @transform_5, window_bounds = array<i64: 1, 32>}, {transform_indices = @transform_6, window_bounds = array<i64: 16, 32>}, {transform_indices = @transform_7, window_bounds = array<i64: 16, 32>}]} {
    %c0 = arith.constant 0 : index
    %c0_0 = arith.constant 0 : index
    %0 = vector.load %arg3[%c0, %c0_0] : memref<16x128xf32, #tpu.memory_space<vmem>>, vector<16x128xf32>
    %1 = arith.truncf %0 : vector<16x128xf32> to vector<16x128xbf16>
    %c0_1 = arith.constant 0 : index
    %c0_2 = arith.constant 0 : index
    %2 = vector.load %arg4[%c0_1, %c0_2] : memref<128x32xbf16, #tpu.memory_space<vmem>>, vector<128x32xbf16>
    %cst = arith.constant dense<0.000000e+00> : vector<16x32xf32>
    %3 = tpu.matmul %1, %2, %cst {dimension_numbers = #tpu.dot_dimension_numbers<[1], [0], [0], [1], [0, 0, 1, 1], [], []>} : vector<16x128xbf16>, vector<128x32xbf16>, vector<16x32xf32> -> vector<16x32xf32>
    %c0_3 = arith.constant 0 : index
    %c0_4 = arith.constant 0 : index
    %4 = vector.load %arg5[%c0_3, %c0_4] : memref<1x32xf32, #tpu.memory_space<vmem>>, vector<1x32xf32>
    %5 = vector.broadcast %4 : vector<1x32xf32> to vector<16x32xf32>
    %6 = arith.addf %3, %5 : vector<16x32xf32>
    %c0_5 = arith.constant 0 : index
    %c0_6 = arith.constant 0 : index
    %7 = vector.load %arg6[%c0_5, %c0_6] : memref<16x32xf32, #tpu.memory_space<vmem>>, vector<16x32xf32>
    %8 = arith.addf %6, %7 : vector<16x32xf32>
    %c0_7 = arith.constant 0 : index
    %c0_8 = arith.constant 0 : index
    %9 = vector.load %arg9[%c0_7, %c0_8] : memref<16x32xf32, #tpu.memory_space<vmem>>, vector<16x32xf32>
    tpu.vector_store %arg9[%c0_7, %c0_8], %8 {strides = array<i32>} : memref<16x32xf32, #tpu.memory_space<vmem>>, vector<16x32xf32>,
    %cst_9 = arith.constant dense<0.000000e+00> : vector<16xf32>
    %10 = vector.multi_reduction <add>, %8, %cst_9 [1] : vector<16x32xf32> to vector<16xf32>
    %11 = vector.shape_cast %10 : vector<16xf32> to vector<16x1xf32>
    %cst_10 = arith.constant 3.200000e+01 : f32
    %12 = vector.broadcast %cst_10 : f32 to vector<16x1xf32>
    %13 = arith.divf %11, %12 : vector<16x1xf32>
    %14 = vector.broadcast %13 : vector<16x1xf32> to vector<16x32xf32>
    %15 = arith.subf %8, %14 : vector<16x32xf32>
    %16 = arith.mulf %15, %15 : vector<16x32xf32>
    %cst_11 = arith.constant dense<0.000000e+00> : vector<16xf32>
    %17 = vector.multi_reduction <add>, %16, %cst_11 [1] : vector<16x32xf32> to vector<16xf32>
    %18 = vector.shape_cast %17 : vector<16xf32> to vector<16x1xf32>
    %cst_12 = arith.constant 3.200000e+01 : f32
    %19 = vector.broadcast %cst_12 : f32 to vector<16x1xf32>
    %20 = arith.divf %18, %19 : vector<16x1xf32>
    %21 = vector.broadcast %13 : vector<16x1xf32> to vector<16x32xf32>
    %22 = arith.subf %8, %21 : vector<16x32xf32>
    %cst_13 = arith.constant 9.99999974E-6 : f32
    %23 = vector.broadcast %cst_13 : f32 to vector<16x1xf32>
    %24 = arith.addf %20, %23 : vector<16x1xf32>
    %25 = math.rsqrt %24 : vector<16x1xf32>
    %26 = vector.broadcast %25 : vector<16x1xf32> to vector<16x32xf32>
    %27 = arith.mulf %22, %26 : vector<16x32xf32>
    %c0_14 = arith.constant 0 : index
    %c0_15 = arith.constant 0 : index
    %28 = vector.load %arg7[%c0_14, %c0_15] : memref<1x32xf32, #tpu.memory_space<vmem>>, vector<1x32xf32>
    %29 = vector.broadcast %28 : vector<1x32xf32> to vector<16x32xf32>
    %30 = arith.mulf %27, %29 : vector<16x32xf32>
    %c0_16 = arith.constant 0 : index
    %c0_17 = arith.constant 0 : index
    %31 = vector.load %arg8[%c0_16, %c0_17] : memref<1x32xf32, #tpu.memory_space<vmem>>, vector<1x32xf32>
    %32 = vector.broadcast %31 : vector<1x32xf32> to vector<16x32xf32>
    %33 = arith.addf %30, %32 : vector<16x32xf32>
    %c0_18 = arith.constant 0 : index
    %c0_19 = arith.constant 0 : index
    %34 = vector.load %arg10[%c0_18, %c0_19] : memref<16x32xf32, #tpu.memory_space<vmem>>, vector<16x32xf32>
    tpu.vector_store %arg10[%c0_18, %c0_19], %33 {strides = array<i32>} : memref<16x32xf32, #tpu.memory_space<vmem>>, vector<16x32xf32>,
    return
  }
  func.func @transform_0(%arg0: i32, %arg1: i32, %arg2: i32) -> (i32, i32) {
    %c0_i32 = arith.constant 0 : i32
    return %arg0, %arg2 : i32, i32
  }
  func.func @transform_1(%arg0: i32, %arg1: i32, %arg2: i32) -> (i32, i32) {
    %c0_i32 = arith.constant 0 : i32
    return %arg2, %arg1 : i32, i32
  }
  func.func @transform_2(%arg0: i32, %arg1: i32, %arg2: i32) -> (i32, i32) {
    %c0_i32 = arith.constant 0 : i32
    %c0_i32_0 = arith.constant 0 : i32
    return %c0_i32, %arg1 : i32, i32
  }
  func.func @transform_3(%arg0: i32, %arg1: i32, %arg2: i32) -> (i32, i32) {
    %c0_i32 = arith.constant 0 : i32
    return %arg0, %arg1 : i32, i32
  }
  func.func @transform_4(%arg0: i32, %arg1: i32, %arg2: i32) -> (i32, i32) {
    %c0_i32 = arith.constant 0 : i32
    %c0_i32_0 = arith.constant 0 : i32
    return %c0_i32, %arg1 : i32, i32
  }
  func.func @transform_5(%arg0: i32, %arg1: i32, %arg2: i32) -> (i32, i32) {
    %c0_i32 = arith.constant 0 : i32
    %c0_i32_0 = arith.constant 0 : i32
    return %c0_i32, %arg1 : i32, i32
  }
  func.func @transform_6(%arg0: i32, %arg1: i32, %arg2: i32) -> (i32, i32) {
    %c0_i32 = arith.constant 0 : i32
    return %arg0, %arg1 : i32, i32
  }
  func.func @transform_7(%arg0: i32, %arg1: i32, %arg2: i32) -> (i32, i32) {
    %c0_i32 = arith.constant 0 : i32
    return %arg0, %arg1 : i32, i32
  }
}

module attributes {stable_mosaic.version = 11 : i64} {
  func.func @kernel(%arg0: i32, %arg1: i32, %arg2: i32, %arg3: memref<16x32xf32, #tpu.memory_space<vmem>>, %arg4: memref<32x32xbf16, #tpu.memory_space<vmem>>, %arg5: memref<1x32xf32, #tpu.memory_space<vmem>>, %arg6: memref<16x32xf32, #tpu.memory_space<vmem>>, %arg7: memref<1x32xf32, #tpu.memory_space<vmem>>, %arg8: memref<1x32xf32, #tpu.memory_space<vmem>>, %arg9: memref<16x32xf32, #tpu.memory_space<vmem>>, %arg10: memref<16x32xf32, #tpu.memory_space<vmem>>) attributes {dimension_semantics = [#tpu.dimension_semantics<parallel>, #tpu.dimension_semantics<parallel>, #tpu.dimension_semantics<arbitrary>], iteration_bounds = array<i64: 1, 1, 1>, scalar_prefetch = 0 : i64, scratch_operands = 0 : i64, tpu.core_type = #tpu.core_type<tc>, window_params = [{transform_indices = @transform_0, window_bounds = array<i64: 16, 32>}, {transform_indices = @transform_1, window_bounds = array<i64: 32, 32>}, {transform_indices = @transform_2, window_bounds = array<i64: 1, 32>}, {transform_indices = @transform_3, window_bounds = array<i64: 16, 32>}, {transform_indices = @transform_4, window_bounds = array<i64: 1, 32>}, {transform_indices = @transform_5, window_bounds = array<i64: 1, 32>}, {transform_indices = @transform_6, window_bounds = array<i64: 16, 32>}, {transform_indices = @transform_7, window_bounds = array<i64: 16, 32>}]} {
    %c0 = arith.constant 0 : index
    %c0_0 = arith.constant 0 : index
    %0 = vector.load %arg3[%c0, %c0_0] : memref<16x32xf32, #tpu.memory_space<vmem>>, vector<16x32xf32>
    %1 = arith.truncf %0 : vector<16x32xf32> to vector<16x32xbf16>
    %c0_1 = arith.constant 0 : index
    %c0_2 = arith.constant 0 : index
    %2 = vector.load %arg4[%c0_1, %c0_2] : memref<32x32xbf16, #tpu.memory_space<vmem>>, vector<32x32xbf16>
    %cst = arith.constant dense<0.000000e+00> : vector<16x32xf32>
    %3 = tpu.matmul %1, %2, %cst {dimension_numbers = #tpu.dot_dimension_numbers<[1], [0], [0], [1], [0, 0, 1, 1], [], []>} : vector<16x32xbf16>, vector<32x32xbf16>, vector<16x32xf32> -> vector<16x32xf32>
    %c0_3 = arith.constant 0 : index
    %c0_4 = arith.constant 0 : index
    %4 = vector.load %arg5[%c0_3, %c0_4] : memref<1x32xf32, #tpu.memory_space<vmem>>, vector<1x32xf32>
    %5 = vector.broadcast %4 : vector<1x32xf32> to vector<16x32xf32>
    %6 = arith.addf %3, %5 : vector<16x32xf32>
    %c0_5 = arith.constant 0 : index
    %c0_6 = arith.constant 0 : index
    %7 = vector.load %arg6[%c0_5, %c0_6] : memref<16x32xf32, #tpu.memory_space<vmem>>, vector<16x32xf32>
    %8 = arith.addf %6, %7 : vector<16x32xf32>
    %c0_7 = arith.constant 0 : index
    %c0_8 = arith.constant 0 : index
    %9 = vector.load %arg9[%c0_7, %c0_8] : memref<16x32xf32, #tpu.memory_space<vmem>>, vector<16x32xf32>
    tpu.vector_store %arg9[%c0_7, %c0_8], %8 {strides = array<i32>} : memref<16x32xf32, #tpu.memory_space<vmem>>, vector<16x32xf32>,
    %cst_9 = arith.constant dense<0.000000e+00> : vector<16xf32>
    %10 = vector.multi_reduction <add>, %8, %cst_9 [1] : vector<16x32xf32> to vector<16xf32>
    %11 = vector.shape_cast %10 : vector<16xf32> to vector<16x1xf32>
    %cst_10 = arith.constant 3.200000e+01 : f32
    %12 = vector.broadcast %cst_10 : f32 to vector<16x1xf32>
    %13 = arith.divf %11, %12 : vector<16x1xf32>
    %14 = vector.broadcast %13 : vector<16x1xf32> to vector<16x32xf32>
    %15 = arith.subf %8, %14 : vector<16x32xf32>
    %16 = arith.mulf %15, %15 : vector<16x32xf32>
    %cst_11 = arith.constant dense<0.000000e+00> : vector<16xf32>
    %17 = vector.multi_reduction <add>, %16, %cst_11 [1] : vector<16x32xf32> to vector<16xf32>
    %18 = vector.shape_cast %17 : vector<16xf32> to vector<16x1xf32>
    %cst_12 = arith.constant 3.200000e+01 : f32
    %19 = vector.broadcast %cst_12 : f32 to vector<16x1xf32>
    %20 = arith.divf %18, %19 : vector<16x1xf32>
    %21 = vector.broadcast %13 : vector<16x1xf32> to vector<16x32xf32>
    %22 = arith.subf %8, %21 : vector<16x32xf32>
    %cst_13 = arith.constant 9.99999974E-6 : f32
    %23 = vector.broadcast %cst_13 : f32 to vector<16x1xf32>
    %24 = arith.addf %20, %23 : vector<16x1xf32>
    %25 = math.rsqrt %24 : vector<16x1xf32>
    %26 = vector.broadcast %25 : vector<16x1xf32> to vector<16x32xf32>
    %27 = arith.mulf %22, %26 : vector<16x32xf32>
    %c0_14 = arith.constant 0 : index
    %c0_15 = arith.constant 0 : index
    %28 = vector.load %arg7[%c0_14, %c0_15] : memref<1x32xf32, #tpu.memory_space<vmem>>, vector<1x32xf32>
    %29 = vector.broadcast %28 : vector<1x32xf32> to vector<16x32xf32>
    %30 = arith.mulf %27, %29 : vector<16x32xf32>
    %c0_16 = arith.constant 0 : index
    %c0_17 = arith.constant 0 : index
    %31 = vector.load %arg8[%c0_16, %c0_17] : memref<1x32xf32, #tpu.memory_space<vmem>>, vector<1x32xf32>
    %32 = vector.broadcast %31 : vector<1x32xf32> to vector<16x32xf32>
    %33 = arith.addf %30, %32 : vector<16x32xf32>
    %c0_18 = arith.constant 0 : index
    %c0_19 = arith.constant 0 : index
    %34 = vector.load %arg10[%c0_18, %c0_19] : memref<16x32xf32, #tpu.memory_space<vmem>>, vector<16x32xf32>
    tpu.vector_store %arg10[%c0_18, %c0_19], %33 {strides = array<i32>} : memref<16x32xf32, #tpu.memory_space<vmem>>, vector<16x32xf32>,
    return
  }
  func.func @transform_0(%arg0: i32, %arg1: i32, %arg2: i32) -> (i32, i32) {
    %c0_i32 = arith.constant 0 : i32
    return %arg0, %arg2 : i32, i32
  }
  func.func @transform_1(%arg0: i32, %arg1: i32, %arg2: i32) -> (i32, i32) {
    %c0_i32 = arith.constant 0 : i32
    return %arg2, %arg1 : i32, i32
  }
  func.func @transform_2(%arg0: i32, %arg1: i32, %arg2: i32) -> (i32, i32) {
    %c0_i32 = arith.constant 0 : i32
    %c0_i32_0 = arith.constant 0 : i32
    return %c0_i32, %arg1 : i32, i32
  }
  func.func @transform_3(%arg0: i32, %arg1: i32, %arg2: i32) -> (i32, i32) {
    %c0_i32 = arith.constant 0 : i32
    return %arg0, %arg1 : i32, i32
  }
  func.func @transform_4(%arg0: i32, %arg1: i32, %arg2: i32) -> (i32, i32) {
    %c0_i32 = arith.constant 0 : i32
    %c0_i32_0 = arith.constant 0 : i32
    return %c0_i32, %arg1 : i32, i32
  }
  func.func @transform_5(%arg0: i32, %arg1: i32, %arg2: i32) -> (i32, i32) {
    %c0_i32 = arith.constant 0 : i32
    %c0_i32_0 = arith.constant 0 : i32
    return %c0_i32, %arg1 : i32, i32
  }
  func.func @transform_6(%arg0: i32, %arg1: i32, %arg2: i32) -> (i32, i32) {
    %c0_i32 = arith.constant 0 : i32
    return %arg0, %arg1 : i32, i32
  }
  func.func @transform_7(%arg0: i32, %arg1: i32, %arg2: i32) -> (i32, i32) {
    %c0_i32 = arith.constant 0 : i32
    return %arg0, %arg1 : i32, i32
  }
}

module attributes {stable_mosaic.version = 11 : i64} {
  func.func @kernel(%arg0: i32, %arg1: i32, %arg2: i32, %arg3: memref<16x128xf32, #tpu.memory_space<vmem>>, %arg4: memref<128x32xbf16, #tpu.memory_space<vmem>>, %arg5: memref<1x32xf32, #tpu.memory_space<vmem>>, %arg6: memref<16x32xf32, #tpu.memory_space<vmem>>, %arg7: memref<16x32xf32, #tpu.memory_space<vmem>>) attributes {dimension_semantics = [#tpu.dimension_semantics<parallel>, #tpu.dimension_semantics<parallel>, #tpu.dimension_semantics<arbitrary>], iteration_bounds = array<i64: 1, 1, 1>, scalar_prefetch = 0 : i64, scratch_operands = 0 : i64, tpu.core_type = #tpu.core_type<tc>, window_params = [{transform_indices = @transform_0, window_bounds = array<i64: 16, 128>}, {transform_indices = @transform_1, window_bounds = array<i64: 128, 32>}, {transform_indices = @transform_2, window_bounds = array<i64: 1, 32>}, {transform_indices = @transform_3, window_bounds = array<i64: 16, 32>}, {transform_indices = @transform_4, window_bounds = array<i64: 16, 32>}]} {
    %c0 = arith.constant 0 : index
    %c0_0 = arith.constant 0 : index
    %0 = vector.load %arg3[%c0, %c0_0] : memref<16x128xf32, #tpu.memory_space<vmem>>, vector<16x128xf32>
    %1 = arith.truncf %0 : vector<16x128xf32> to vector<16x128xbf16>
    %c0_1 = arith.constant 0 : index
    %c0_2 = arith.constant 0 : index
    %2 = vector.load %arg4[%c0_1, %c0_2] : memref<128x32xbf16, #tpu.memory_space<vmem>>, vector<128x32xbf16>
    %cst = arith.constant dense<0.000000e+00> : vector<16x32xf32>
    %3 = tpu.matmul %1, %2, %cst {dimension_numbers = #tpu.dot_dimension_numbers<[1], [0], [0], [1], [0, 0, 1, 1], [], []>} : vector<16x128xbf16>, vector<128x32xbf16>, vector<16x32xf32> -> vector<16x32xf32>
    %c0_3 = arith.constant 0 : index
    %c0_4 = arith.constant 0 : index
    %4 = vector.load %arg5[%c0_3, %c0_4] : memref<1x32xf32, #tpu.memory_space<vmem>>, vector<1x32xf32>
    %5 = vector.broadcast %4 : vector<1x32xf32> to vector<16x32xf32>
    %6 = arith.addf %3, %5 : vector<16x32xf32>
    %c0_5 = arith.constant 0 : index
    %c0_6 = arith.constant 0 : index
    %7 = vector.load %arg6[%c0_5, %c0_6] : memref<16x32xf32, #tpu.memory_space<vmem>>, vector<16x32xf32>
    %8 = arith.addf %6, %7 : vector<16x32xf32>
    %c0_7 = arith.constant 0 : index
    %c0_8 = arith.constant 0 : index
    %9 = vector.load %arg7[%c0_7, %c0_8] : memref<16x32xf32, #tpu.memory_space<vmem>>, vector<16x32xf32>
    tpu.vector_store %arg7[%c0_7, %c0_8], %8 {strides = array<i32>} : memref<16x32xf32, #tpu.memory_space<vmem>>, vector<16x32xf32>,
    return
  }
  func.func @transform_0(%arg0: i32, %arg1: i32, %arg2: i32) -> (i32, i32) {
    %c0_i32 = arith.constant 0 : i32
    return %arg0, %arg2 : i32, i32
  }
  func.func @transform_1(%arg0: i32, %arg1: i32, %arg2: i32) -> (i32, i32) {
    %c0_i32 = arith.constant 0 : i32
    return %arg2, %arg1 : i32, i32
  }
  func.func @transform_2(%arg0: i32, %arg1: i32, %arg2: i32) -> (i32, i32) {
    %c0_i32 = arith.constant 0 : i32
    %c0_i32_0 = arith.constant 0 : i32
    return %c0_i32, %arg1 : i32, i32
  }
  func.func @transform_3(%arg0: i32, %arg1: i32, %arg2: i32) -> (i32, i32) {
    %c0_i32 = arith.constant 0 : i32
    return %arg0, %arg1 : i32, i32
  }
  func.func @transform_4(%arg0: i32, %arg1: i32, %arg2: i32) -> (i32, i32) {
    %c0_i32 = arith.constant 0 : i32
    return %arg0, %arg1 : i32, i32
  }
}

module attributes {stable_mosaic.version = 11 : i64} {
  func.func @kernel(%arg0: i32, %arg1: i32, %arg2: i32, %arg3: memref<16x32xf32, #tpu.memory_space<vmem>>, %arg4: memref<32x64xbf16, #tpu.memory_space<vmem>>, %arg5: memref<1x64xf32, #tpu.memory_space<vmem>>, %arg6: memref<16x64xf32, #tpu.memory_space<vmem>>) attributes {dimension_semantics = [#tpu.dimension_semantics<parallel>, #tpu.dimension_semantics<parallel>, #tpu.dimension_semantics<arbitrary>], iteration_bounds = array<i64: 1, 1, 1>, scalar_prefetch = 0 : i64, scratch_operands = 0 : i64, tpu.core_type = #tpu.core_type<tc>, window_params = [{transform_indices = @transform_0, window_bounds = array<i64: 16, 32>}, {transform_indices = @transform_1, window_bounds = array<i64: 32, 64>}, {transform_indices = @transform_2, window_bounds = array<i64: 1, 64>}, {transform_indices = @transform_3, window_bounds = array<i64: 16, 64>}]} {
    %c0 = arith.constant 0 : index
    %c0_0 = arith.constant 0 : index
    %0 = vector.load %arg3[%c0, %c0_0] : memref<16x32xf32, #tpu.memory_space<vmem>>, vector<16x32xf32>
    %1 = arith.truncf %0 : vector<16x32xf32> to vector<16x32xbf16>
    %c0_1 = arith.constant 0 : index
    %c0_2 = arith.constant 0 : index
    %2 = vector.load %arg4[%c0_1, %c0_2] : memref<32x64xbf16, #tpu.memory_space<vmem>>, vector<32x64xbf16>
    %cst = arith.constant dense<0.000000e+00> : vector<16x64xf32>
    %3 = tpu.matmul %1, %2, %cst {dimension_numbers = #tpu.dot_dimension_numbers<[1], [0], [0], [1], [0, 0, 1, 1], [], []>} : vector<16x32xbf16>, vector<32x64xbf16>, vector<16x64xf32> -> vector<16x64xf32>
    %c0_3 = arith.constant 0 : index
    %c0_4 = arith.constant 0 : index
    %4 = vector.load %arg5[%c0_3, %c0_4] : memref<1x64xf32, #tpu.memory_space<vmem>>, vector<1x64xf32>
    %5 = vector.broadcast %4 : vector<1x64xf32> to vector<16x64xf32>
    %6 = arith.addf %3, %5 : vector<16x64xf32>
    %cst_5 = arith.constant 5.000000e-01 : f32
    %7 = vector.broadcast %cst_5 : f32 to vector<16x64xf32>
    %8 = arith.mulf %7, %6 : vector<16x64xf32>
    %cst_6 = arith.constant 0.707106769 : f32
    %9 = vector.broadcast %cst_6 : f32 to vector<16x64xf32>
    %10 = arith.mulf %6, %9 : vector<16x64xf32>
    %11 = math.erf %10 : vector<16x64xf32>
    %cst_7 = arith.constant 1.000000e+00 : f32
    %12 = vector.broadcast %cst_7 : f32 to vector<16x64xf32>
    %13 = arith.addf %12, %11 : vector<16x64xf32>
    %14 = arith.mulf %8, %13 : vector<16x64xf32>
    %c0_8 = arith.constant 0 : index
    %c0_9 = arith.constant 0 : index
    %15 = vector.load %arg6[%c0_8, %c0_9] : memref<16x64xf32, #tpu.memory_space<vmem>>, vector<16x64xf32>
    tpu.vector_store %arg6[%c0_8, %c0_9], %14 {strides = array<i32>} : memref<16x64xf32, #tpu.memory_space<vmem>>, vector<16x64xf32>,
    return
  }
  func.func @transform_0(%arg0: i32, %arg1: i32, %arg2: i32) -> (i32, i32) {
    %c0_i32 = arith.constant 0 : i32
    return %arg0, %arg2 : i32, i32
  }
  func.func @transform_1(%arg0: i32, %arg1: i32, %arg2: i32) -> (i32, i32) {
    %c0_i32 = arith.constant 0 : i32
    return %arg2, %arg1 : i32, i32
  }
  func.func @transform_2(%arg0: i32, %arg1: i32, %arg2: i32) -> (i32, i32) {
    %c0_i32 = arith.constant 0 : i32
    %c0_i32_0 = arith.constant 0 : i32
    return %c0_i32, %arg1 : i32, i32
  }
  func.func @transform_3(%arg0: i32, %arg1: i32, %arg2: i32) -> (i32, i32) {
    %c0_i32 = arith.constant 0 : i32
    return %arg0, %arg1 : i32, i32
  }
}

module attributes {stable_mosaic.version = 11 : i64} {
  func.func @kernel(%arg0: i32, %arg1: i32, %arg2: i32, %arg3: memref<16x64xf32, #tpu.memory_space<vmem>>, %arg4: memref<64x32xbf16, #tpu.memory_space<vmem>>, %arg5: memref<1x32xf32, #tpu.memory_space<vmem>>, %arg6: memref<1x32xf32, #tpu.memory_space<vmem>>, %arg7: memref<1x32xf32, #tpu.memory_space<vmem>>, %arg8: memref<16x32xf32, #tpu.memory_space<vmem>>) attributes {dimension_semantics = [#tpu.dimension_semantics<parallel>, #tpu.dimension_semantics<parallel>, #tpu.dimension_semantics<arbitrary>], iteration_bounds = array<i64: 1, 1, 1>, scalar_prefetch = 0 : i64, scratch_operands = 0 : i64, tpu.core_type = #tpu.core_type<tc>, window_params = [{transform_indices = @transform_0, window_bounds = array<i64: 16, 64>}, {transform_indices = @transform_1, window_bounds = array<i64: 64, 32>}, {transform_indices = @transform_2, window_bounds = array<i64: 1, 32>}, {transform_indices = @transform_3, window_bounds = array<i64: 1, 32>}, {transform_indices = @transform_4, window_bounds = array<i64: 1, 32>}, {transform_indices = @transform_5, window_bounds = array<i64: 16, 32>}]} {
    %c0 = arith.constant 0 : index
    %c0_0 = arith.constant 0 : index
    %0 = vector.load %arg3[%c0, %c0_0] : memref<16x64xf32, #tpu.memory_space<vmem>>, vector<16x64xf32>
    %1 = arith.truncf %0 : vector<16x64xf32> to vector<16x64xbf16>
    %c0_1 = arith.constant 0 : index
    %c0_2 = arith.constant 0 : index
    %2 = vector.load %arg4[%c0_1, %c0_2] : memref<64x32xbf16, #tpu.memory_space<vmem>>, vector<64x32xbf16>
    %cst = arith.constant dense<0.000000e+00> : vector<16x32xf32>
    %3 = tpu.matmul %1, %2, %cst {dimension_numbers = #tpu.dot_dimension_numbers<[1], [0], [0], [1], [0, 0, 1, 1], [], []>} : vector<16x64xbf16>, vector<64x32xbf16>, vector<16x32xf32> -> vector<16x32xf32>
    %c0_3 = arith.constant 0 : index
    %c0_4 = arith.constant 0 : index
    %4 = vector.load %arg5[%c0_3, %c0_4] : memref<1x32xf32, #tpu.memory_space<vmem>>, vector<1x32xf32>
    %5 = vector.broadcast %4 : vector<1x32xf32> to vector<16x32xf32>
    %6 = arith.addf %3, %5 : vector<16x32xf32>
    %cst_5 = arith.constant dense<0.000000e+00> : vector<16xf32>
    %7 = vector.multi_reduction <add>, %6, %cst_5 [1] : vector<16x32xf32> to vector<16xf32>
    %8 = vector.shape_cast %7 : vector<16xf32> to vector<16x1xf32>
    %cst_6 = arith.constant 3.200000e+01 : f32
    %9 = vector.broadcast %cst_6 : f32 to vector<16x1xf32>
    %10 = arith.divf %8, %9 : vector<16x1xf32>
    %11 = vector.broadcast %10 : vector<16x1xf32> to vector<16x32xf32>
    %12 = arith.subf %6, %11 : vector<16x32xf32>
    %13 = arith.mulf %12, %12 : vector<16x32xf32>
    %cst_7 = arith.constant dense<0.000000e+00> : vector<16xf32>
    %14 = vector.multi_reduction <add>, %13, %cst_7 [1] : vector<16x32xf32> to vector<16xf32>
    %15 = vector.shape_cast %14 : vector<16xf32> to vector<16x1xf32>
    %cst_8 = arith.constant 3.200000e+01 : f32
    %16 = vector.broadcast %cst_8 : f32 to vector<16x1xf32>
    %17 = arith.divf %15, %16 : vector<16x1xf32>
    %18 = vector.broadcast %10 : vector<16x1xf32> to vector<16x32xf32>
    %19 = arith.subf %6, %18 : vector<16x32xf32>
    %cst_9 = arith.constant 9.99999974E-6 : f32
    %20 = vector.broadcast %cst_9 : f32 to vector<16x1xf32>
    %21 = arith.addf %17, %20 : vector<16x1xf32>
    %22 = math.rsqrt %21 : vector<16x1xf32>
    %23 = vector.broadcast %22 : vector<16x1xf32> to vector<16x32xf32>
    %24 = arith.mulf %19, %23 : vector<16x32xf32>
    %c0_10 = arith.constant 0 : index
    %c0_11 = arith.constant 0 : index
    %25 = vector.load %arg6[%c0_10, %c0_11] : memref<1x32xf32, #tpu.memory_space<vmem>>, vector<1x32xf32>
    %26 = vector.broadcast %25 : vector<1x32xf32> to vector<16x32xf32>
    %27 = arith.mulf %24, %26 : vector<16x32xf32>
    %c0_12 = arith.constant 0 : index
    %c0_13 = arith.constant 0 : index
    %28 = vector.load %arg7[%c0_12, %c0_13] : memref<1x32xf32, #tpu.memory_space<vmem>>, vector<1x32xf32>
    %29 = vector.broadcast %28 : vector<1x32xf32> to vector<16x32xf32>
    %30 = arith.addf %27, %29 : vector<16x32xf32>
    %c0_14 = arith.constant 0 : index
    %c0_15 = arith.constant 0 : index
    %31 = vector.load %arg8[%c0_14, %c0_15] : memref<16x32xf32, #tpu.memory_space<vmem>>, vector<16x32xf32>
    tpu.vector_store %arg8[%c0_14, %c0_15], %30 {strides = array<i32>} : memref<16x32xf32, #tpu.memory_space<vmem>>, vector<16x32xf32>,
    return
  }
  func.func @transform_0(%arg0: i32, %arg1: i32, %arg2: i32) -> (i32, i32) {
    %c0_i32 = arith.constant 0 : i32
    return %arg0, %arg2 : i32, i32
  }
  func.func @transform_1(%arg0: i32, %arg1: i32, %arg2: i32) -> (i32, i32) {
    %c0_i32 = arith.constant 0 : i32
    return %arg2, %arg1 : i32, i32
  }
  func.func @transform_2(%arg0: i32, %arg1: i32, %arg2: i32) -> (i32, i32) {
    %c0_i32 = arith.constant 0 : i32
    %c0_i32_0 = arith.constant 0 : i32
    return %c0_i32, %arg1 : i32, i32
  }
  func.func @transform_3(%arg0: i32, %arg1: i32, %arg2: i32) -> (i32, i32) {
    %c0_i32 = arith.constant 0 : i32
    %c0_i32_0 = arith.constant 0 : i32
    return %c0_i32, %arg1 : i32, i32
  }
  func.func @transform_4(%arg0: i32, %arg1: i32, %arg2: i32) -> (i32, i32) {
    %c0_i32 = arith.constant 0 : i32
    %c0_i32_0 = arith.constant 0 : i32
    return %c0_i32, %arg1 : i32, i32
  }
  func.func @transform_5(%arg0: i32, %arg1: i32, %arg2: i32) -> (i32, i32) {
    %c0_i32 = arith.constant 0 : i32
    return %arg0, %arg1 : i32, i32
  }
}

</mosaic_0001>

<bundles_post_ra>
// kernel: hybrid_modality_projector_forward.24
= control target key start
LH: loop header
LB: loop body
LE: loop exit
PB: predicated region body
PF: predicated region fallthrough
CT: control target
= control target key end

     0   :  { %s752_s15 = smov 0   ;;  %s754_s16 = smov 0   ;;  %s834_s0 = inlined_call_operand.vmem [shape: f32[2,16,64], index: 0, kind: input, shape index: {}]   ;;  %s835_s1 = inlined_call_operand.vmem [shape: bf16[3,64,32], index: 1, kind: input, shape index: {}]   ;;  %s836_s2 = inlined_call_operand.vmem [shape: f32[1,32], index: 2, kind: input, shape index: {}]   ;;  %s837_s3 = inlined_call_operand.vmem [shape: f32[1,32], index: 3, kind: input, shape index: {}]   ;;  %s838_s4 = inlined_call_operand.vmem [shape: f32[2,16,32], index: 4, kind: output, shape index: {}]  }
   0x1   :  { %s756_s17 = smov 0  }
   0x2 LB: > { %s26_s18 = sadd.s32 1, %s721_s16  ;;  %p589_p0 = scmp.ge.s32.totalorder %s725_s17, 1  ;;  %s725_s17 = sphi %s756_s17, %s14_s17   ;;  %s721_s16 = sphi %s754_s16, %s840_s16   ;;  %s717_s15 = sphi %s752_s15, %s839_s15  }
   0x3   : > { %p28_p1 = scmp.ge.s32.totalorder %s26_s18, 2  ;;  %p201_p2 = scmp.lt.s32.totalorder %s725_s17, 3 }
   0x5   : > { %s842_s18 = smov (%p28_p1, %s26_s18), 0  ;;  %p202_p3 = pnand %p589_p0, %p201_p2 }
   0x6   : > { %p240_p4 = scmp.lt.s32.totalorder (!%p202_p3), %s717_s15, 1 }
   0x7   : > { %205 = sbr.rel (%p202_p3) target bundleno = 177 (0xb1), region = 36 }
   0xc   : > { %v672_v0 = vld [vmem:[%s835_s1 + $0x38] sm:$0xff]  ;;  %v266_v3 = vlaneseq  ;;  %v671_v4 = vld [vmem:[%s835_s1 + $0x30] sm:$0xff]  ;;  %s844_s15 = smov (!%p240_p4, %s717_s15), 1  ;;  %v670_v9 = vld [vmem:[%s835_s1 + $0x28] sm:$0xff]  ;;  %vm325_vm4 = vcmask 523264   ;;  %vm462_vm5 = vcmask 261120  }
   0xd   : > { %v668_v1 = vld [vmem:[%s835_s1 + $0x18] sm:$0xff]  ;;  %333 = vmatpush.bf16.msra.mxu0 %v672_v0  ;;  %v667_v5 = vld [vmem:[%s835_s1 + $0x10] sm:$0xff]  ;;  %s663_s5 = sshll.u32 %s844_s15, 4  ;;  %v666_v10 = vld [vmem:[%s835_s1 + $0x8] sm:$0xff] }
   0xe   : > { %v676_v2 = vld [vmem:[%s835_s1 + $0x58] sm:$0xff]  ;;  %374 = vmatpush.bf16.msra.mxu1 %v668_v1  ;;  %v267_v6 = vshrl.u32 %v266_v3, 7  ;;  %v675_v7 = vld [vmem:[%s835_s1 + $0x50] sm:$0xff]  ;;  %s244_s10 = scalar_lea.vmem %s834_s0, %s663_s5  ;;  %v674_v13 = vld [vmem:[%s835_s1 + $0x48] sm:$0xff]  ;;  %s262_s6 = scalar_lea.vmem %s838_s4, %s663_s5 }
   0xf   : > { %438 = vmatpush.bf16.msra.mxu2 %v676_v2  ;;  %v264_v11 = vld [vmem:[%s244_s10] sm:$0xff]  ;;  %v265_v12 = vld [vmem:[%s244_s10 + $0x8] sm:$0xff] }
  0x10   : > { %v268_v8 = vadd.s32 8, %v267_v6  ;;  %vm271_vm0 = vcmp.lt.s32.totalorder %v267_v6, 1  ;;  %vm274_vm1 = vcmp.ge.s32.totalorder %v267_v6, 1  ;;  %v269_v14 = vrot.slane %v264_v11, 7  ;;  %v669_v19 = vld [vmem:[%s835_s1 + $0x20] sm:$0xff] }
  0x11   : > { %334 = vmatpush.bf16.msra.mxu0 %v671_v4  ;;  %v270_v15 = vrot.slane %v265_v12, 7  ;;  %v384_v16 = vrot.slane %v264_v11, 1  ;;  %vm386_vm2 = vcmp.lt.s32.totalorder %v267_v6, 7  ;;  %v385_v17 = vrot.slane %v265_v12, 1  ;;  %v665_v20 = vld [vmem:[%s835_s1] sm:$0xff] }
  0x12   : > { %375 = vmatpush.bf16.msra.mxu1 %v667_v5  ;;  %vm390_vm3 = vcmp.lt.s32.totalorder %v268_v8, 15  ;;  %v673_v24 = vld [vmem:[%s835_s1 + $0x40] sm:$0xff]  ;;  %v291_v27 = vpack.c.bf16 %v265_v12, %v264_v11 }
  0x13   : > { %439 = vmatpush.bf16.msra.mxu2 %v675_v7  ;;  %v273_v18 = vsel %vm271_vm0, %v270_v15, %v269_v14  ;;  %v272_v21 = vsel %vm271_vm0, %v269_v14, %v270_v15  ;;  %v388_v23 = vsel %vm386_vm2, %v385_v17, %v384_v16  ;;  %v387_v25 = vsel %vm386_vm2, %v384_v16, %v385_v17  ;;  %v701_v33 = vld [vmem:[%s836_s2] ss:$0 sm:$0xff] }
  0x14   : > { %v280_v22 = vsel %vm274_vm1, %v273_v18, 0.0  ;;  %v396_v26 = vsel %vm390_vm3, %v388_v23, 0.0  ;;  %v702_v36 = vld [vmem:[%s837_s3] ss:$0 sm:$0xff] }
  0x15   : > { %335 = vmatpush.bf16.msra.mxu0 %v670_v9  ;;  %v282_v28 = vpack.c.bf16 %v272_v21, %v280_v22  ;;  %v397_v29 = vpack.c.bf16 %v396_v26, %v387_v25 }
  0x16   : > { %376 = vmatpush.bf16.msra.mxu1 %v666_v10 }
  0x17   : > { %440 = vmatpush.bf16.msra.mxu2 %v674_v13 }
  0x19   : > { %336 = vmatpush.bf16.msra.mxu0 %v669_v19 }
  0x1a   : > { %377 = vmatpush.bf16.msra.mxu1 %v665_v20 }
  0x1b   : > { %441 = vmatpush.bf16.msra.mxu2 %v673_v24 }
  0x1c   : > { %618 = vmatmul.msk.bf16.vlgmr.msra.gmra.mxu0 %vm325_vm4, %v291_v27 }
  0x1d   : > { %635 = vmatmul.msk.bf16.vlgmr.msra.gmra.mxu1 %vm325_vm4, %v282_v28 }
  0x1e   : > { %660 = vmatmul.msk.bf16.vlgmr.msra.gmra.mxu2 %vm325_vm4, %v397_v29 }
  0x99   : > { %v338_v30 = vpop.f32.mrf.mxu0 }
  0x9a   : > { %v379_v31 = vpop.f32.mrf.mxu1 }
  0x9b   : > { %v380_v32 = vadd.f32 %v379_v31, %v338_v30 }
  0xa1   : > { %v443_v34 = vpop.f32.mrf.mxu2  ;;  %v340_v38 = vpop.f32.mrf.mxu0 }
  0xa2   : > { %v448_v35 = vadd.f32 %v443_v34, %v380_v32  ;;  %v381_v39 = vpop.f32.mrf.mxu1 }
  0xa3   : > { %v382_v41 = vadd.f32 %v381_v39, %v340_v38 }
  0xa4   : > { %v454_v37 = vmul.f32 %v701_v33, %v448_v35 }
  0xa6   : > { %v460_v40 = vadd.f32 %v702_v36, %v454_v37 }
  0xa8   : > { %463 = vst.msk [vmem:[%s262_s6] sm:$0xff] %vm462_vm5, %v460_v40 }
  0xa9   : > { %v445_v42 = vpop.f32.mrf.mxu2 }
  0xaa   : > { %v449_v43 = vadd.f32 %v445_v42, %v382_v41 }
  0xac   : > { %v455_v44 = vmul.f32 %v701_v33, %v449_v43 }
  0xae   : > { %v461_v45 = vadd.f32 %v702_v36, %v455_v44 }
  0xb0   : > { %464 = vst.msk [vmem:[%s262_s6 + $0x8] sm:$0xff] %vm462_vm5, %v461_v45 }
  0xb1 PF: > { %s14_s17 = sadd.s32 1, %s725_s17   ;;  %s839_s15 = smov %s721_s16 }
  0xb2   : > { %p11_p5 = scmp.ge.s32.totalorder %s14_s17, 4   ;;  %s840_s16 = smov %s842_s18 }
  0xb4   :  { %13 = sbr.rel (!%p11_p5) target bundleno = 2 (0x2), region = 77 }

// kernel: hybrid_modality_projector_forward.22
= control target key start
LH: loop header
LB: loop body
LE: loop exit
PB: predicated region body
PF: predicated region fallthrough
CT: control target
= control target key end

     0   :  { %9 = vsyncpa [#allocation3], 0  ;;  %s971_s0 = inlined_call_operand.hbm [shape: f32[2,16,16], index: 0, kind: input, shape index: {}]   ;;  %s972_s1 = inlined_call_operand.vmem [shape: bf16[3,16,32], index: 1, kind: input, shape index: {}]   ;;  %s973_s2 = inlined_call_operand.vmem [shape: f32[1,32], index: 2, kind: input, shape index: {}]   ;;  %s974_s3 = inlined_call_operand.vmem [shape: f32[1,32], index: 3, kind: input, shape index: {}]   ;;  %s975_s4 = inlined_call_operand.vmem [shape: f32[2,16,32], index: 4, kind: output, shape index: {}]  }
   0x1   :  { %11 = vsyncpa [#allocation3 + $0x1], 0  ;;  %s845_s15 = smov 0   ;;  %s847_s16 = smov 0  }
   0x2   :  { %s849_s17 = smov 0   ;;  %s851_s18 = smov 0  }
   0x3   :  { %s853_s19 = smov 0   ;;  %s855_s20 = smov 0  }
   0x4 LB: > { %s631_s21 = sadd.s32 4294967295, %s816_s20   ;;  %s29_s22 = sadd.s32 1, %s812_s19  ;;  %s816_s20 = sphi %s855_s20, %s17_s20   ;;  %s812_s19 = sphi %s853_s19, %s982_s19   ;;  %s808_s18 = sphi %s851_s18, %s981_s18   ;;  %s804_s17 = sphi %s849_s17, %s980_s17   ;;  %s800_s16 = sphi %s847_s16, %s979_s16   ;;  %s796_s15 = sphi %s845_s15, %s978_s15  }
   0x5   : > { %p31_p0 = scmp.ge.s32.totalorder %s29_s22, 2  ;;  %s36_s23 = sadd.s32 1, %s804_s17 }
   0x6   : > { %p43_p1 = scmp.ne.s32.totalorder %s804_s17, %s800_s16  ;;  %p44_p2 = scmp.eq.s32.totalorder %s816_s20, 0 }
   0x7   : > { %s984_s22 = smov (%p31_p0, %s29_s22), 0  ;;  %p49_p4 = scmp.ne.s32.totalorder %s800_s16, %s796_s15 }
   0x8   : > { %p881_p3 = por %p44_p2, %p43_p1  ;;  %s33_s25 = ssub.s32 %s812_s19, %s984_s22 }
   0x9   : > { %p50_p5 = scmp.eq.s32.totalorder %s631_s21, 0  ;;  %p34_p6 = scmp.eq.s32.totalorder %s33_s25, 0 }
   0xa   : > { %p679_p8 = scmp.lt.s32.totalorder %s816_s20, 2  ;;  %s198_s28 = sand.u32 1, %s804_s17  }
   0xb   : > { %p888_p7 = por %p50_p5, %p49_p4  ;;  %s668_s29 = sshll.u32 %s812_s19, 4 }
   0xc   : > { %s894_s27 = scalar_select %p34_p6, %s804_s17, %s36_s23  }
   0xd   : > { %s638_s30 = sshll.u32 %s198_s28, 4  ;;  %s207_s7 = scalar_lea.hbm %s971_s0, %s668_s29 }
   0xe   : > { %s208_s8 = sshll.u32 %s207_s7, 4  ;;  %s202_s9 = scalar_lea.vmem [#allocation2], %s638_s30  ;;  %s209_s8 = int_to_ptr.hbm [resolvable:$true] %s208_s8 }
   0xf   : > { %s210_s10 = sshll.u32 %s202_s9, 4  ;;  %p676_p9 = pnand %p679_p8, %p881_p3  ;;  %s211_s10 = int_to_ptr.vmem [resolvable:$true] %s210_s10 }
  0x10   : > { %p641_p10 = scmp.ge.s32.totalorder %s816_s20, 1  ;;  %p218_p11 = scmp.lt.s32.totalorder %s816_s20, 3 }
  0x11   : > { %s199_s11 = scalar_lea.sflag [#allocation3], %s198_s28  ;;  %s818_s12 = smov 128  }
  0x12   : > { %s819_s13 = smov 8   ;;  %p219_p12 = pnand %p641_p10, %p218_p11 }
  0x13   : > { %678 = dma.hbm_to_vmem [thread:$0]  (!%p676_p9), %s209_s8, 256, %s211_s10, %s199_s11, %s818_s12, %s818_s12, %s819_s13  }
  0x14   : > { %222 = sbr.rel (%p219_p12) target bundleno = 234 (0xea), region = 36  ;;  %s224_s14 = sand.u32 (!%p219_p12), 1, %s800_s16  }
  0x15   : > { %s642_s15 = sshll.u32 (!%p219_p12), %s224_s14, 4  ;;  %s225_s21 = scalar_lea.sflag (!%p219_p12), [#allocation3], %s224_s14 }
  0x16   : > { %s228_s23 = scalar_lea.vmem (!%p219_p12), [#allocation2], %s642_s15 }
  0x19   : > { %791 = dma.done.wait (%p888_p7), %s225_s21, 256  }
  0x1a   : > { %793 = vsyncadd (%p888_p7), %s225_s21, 4294967040  ;;  %v288_v0 = vlaneseq  ;;  %v671_v3 = vld [vmem:[%s972_s1 + $0x8] sm:$0xff]  ;;  %v670_v4 = vld [vmem:[%s972_s1] sm:$0xff]  ;;  %vm317_vm0 = vcmask 130048   ;;  %p277_p13 = scmp.lt.s32.totalorder %s808_s18, 1  ;;  %vm500_vm10 = vcmask 261120  }
  0x1b   : > { %v672_v5 = vld [vmem:[%s972_s1 + $0x10] sm:$0xff]  ;;  %v287_v7 = vld [vmem:[%s228_s23 + $0x8] sm:$0xff]  ;;  %328 = vmatpush.bf16.msra.mxu0 %v671_v3  ;;  %351 = vmatpush.bf16.msra.mxu1 %v670_v4  ;;  %v730_v24 = vld [vmem:[%s973_s2] ss:$0 sm:$0xff] }
  0x1c   : > { %v289_v1 = vshrl.u32 %v288_v0, 7  ;;  %v286_v6 = vld [vmem:[%s228_s23] sm:$0xff]  ;;  %v292_v9 = vrot.slane %v287_v7, 7  ;;  %391 = vmatpush.bf16.msra.mxu2 %v672_v5  ;;  %v359_v12 = vrot.slane %v287_v7, 1  ;;  %s986_s18 = smov (!%p277_p13, %s808_s18), 1 }
  0x1d   : > { %v291_v8 = vrot.slane %v286_v6, 7  ;;  %v307_v10 = vpack.c.bf16 %v287_v7, %v286_v6  ;;  %v358_v11 = vrot.slane %v286_v6, 1  ;;  %v731_v27 = vld [vmem:[%s974_s3] ss:$0 sm:$0xff]  ;;  %s669_s9 = sshll.u32 %s986_s18, 4 }
  0x1e   : > { %v290_v2 = vadd.s32 8, %v289_v1  ;;  %vm293_vm1 = vcmp.lt.s32.totalorder %v289_v1, 1  ;;  %vm296_vm2 = vcmp.ge.s32.totalorder %v289_v1, 1  ;;  %vm360_vm3 = vcmp.lt.s32.totalorder %v289_v1, 7  ;;  %s284_s12 = scalar_lea.vmem %s975_s4, %s669_s9 }
  0x1f   : > { %v294_v13 = vsel %vm293_vm1, %v291_v8, %v292_v9  ;;  %v295_v14 = vsel %vm293_vm1, %v292_v9, %v291_v8  ;;  %651 = vmatmul.msk.bf16.vlgmr.msra.gmra.mxu0 %vm317_vm0, %v307_v10  ;;  %v361_v16 = vsel %vm360_vm3, %v358_v11, %v359_v12  ;;  %v362_v17 = vsel %vm360_vm3, %v359_v12, %v358_v11 }
  0x20   : > { %vm364_vm4 = vcmp.lt.s32.totalorder %v290_v2, 15  ;;  %v302_v15 = vsel %vm296_vm2, %v295_v14, 0.0 }
  0x21   : > { %v304_v18 = vpack.c.bf16 %v294_v13, %v302_v15  ;;  %v370_v19 = vsel %vm364_vm4, %v362_v17, 0.0 }
  0x22   : > { %v371_v20 = vpack.c.bf16 %v370_v19, %v361_v16 }
  0x23   : > { %656 = vmatmul.msk.bf16.vlgmr.msra.gmra.mxu1 %vm317_vm0, %v304_v18 }
  0x24   : > { %663 = vmatmul.msk.bf16.vlgmr.msra.gmra.mxu2 %vm317_vm0, %v371_v20 }
  0x9c   : > { %v330_v22 = vpop.f32.mrf.mxu0 }
  0xa0   : > { %v353_v21 = vpop.f32.mrf.mxu1 }
  0xa1   : > { %v354_v23 = vadd.f32 %v353_v21, %v330_v22 }
  0xa4   : > { %v332_v31 = vpop.f32.mrf.mxu0 }
  0xa7   : > { %v393_v25 = vpop.f32.mrf.mxu2 }
  0xa8   : > { %v398_v26 = vadd.f32 %v393_v25, %v354_v23  ;;  %v355_v29 = vpop.f32.mrf.mxu1 }
  0xa9   : > { %v356_v33 = vadd.f32 %v355_v29, %v332_v31 }
  0xaa   : > { %v404_v28 = vmul.f32 %v730_v24, %v398_v26 }
  0xac   : > { %v928_v30 = vadd.f32 %v731_v27, %v404_v28 }
  0xae   : > { %v931_v32 = vmul.f32 0.70710677, %v928_v30 }
  0xaf   : > { %v395_v34 = vpop.f32.mrf.mxu2 }
  0xb0   : > { %v416_v35 = vmul.f32 %v931_v32, %v931_v32  ;;  %v399_v36 = vadd.f32 %v395_v34, %v356_v33 }
  0xb2   : > { %v417_v37 = vmin.f32 %v416_v35, 16.0  ;;  %v405_v38 = vmul.f32 %v730_v24, %v399_v36 }
  0xb4   : > { %v418_v39 = vmul.f32 2.1237322e-06, %v417_v37  ;;  %v429_v40 = vmul.f32 3.8918573e-05, %v417_v37  ;;  %v935_v41 = vadd.f32 %v731_v27, %v405_v38 }
  0xb6   : > { %v419_v42 = vadd.f32 0.00028619796, %v418_v39  ;;  %v430_v43 = vadd.f32 0.001143296, %v429_v40  ;;  %v938_v44 = vmul.f32 0.70710677, %v935_v41 }
  0xb7   : > { %v412_v40 = vmul.f32 0.5, %v928_v30 }
  0xb8   : > { %v420_v45 = vmul.f32 %v419_v42, %v417_v37  ;;  %v431_v46 = vmul.f32 %v430_v43, %v417_v37  ;;  %v456_v47 = vmul.f32 %v938_v44, %v938_v44 }
  0xba   : > { %v432_v48 = vadd.f32 0.014752088, %v431_v46  ;;  %v421_v49 = vadd.f32 0.0036580483, %v420_v45  ;;  %v457_v50 = vmin.f32 %v456_v47, 16.0 }
  0xbc   : > { %v433_v51 = vmul.f32 %v432_v48, %v417_v37  ;;  %v458_v52 = vmul.f32 2.1237322e-06, %v457_v50  ;;  %v469_v53 = vmul.f32 3.8918573e-05, %v457_v50  ;;  %v422_v55 = vmul.f32 %v421_v49, %v417_v37 }
  0xbe   : > { %v434_v54 = vadd.f32 0.112945676, %v433_v51  ;;  %v459_v56 = vadd.f32 0.00028619796, %v458_v52  ;;  %v470_v57 = vadd.f32 0.001143296, %v469_v53 }
  0xbf   : > { %v423_v62 = vadd.f32 0.05243302, %v422_v55 }
  0xc0   : > { %v435_v58 = vmul.f32 %v434_v54, %v417_v37  ;;  %v460_v59 = vmul.f32 %v459_v56, %v457_v50  ;;  %v471_v60 = vmul.f32 %v470_v57, %v457_v50 }
  0xc1   : > { %v424_v4 = vmul.f32 %v423_v62, %v417_v37 }
  0xc2   : > { %v436_v61 = vadd.f32 0.4994258, %v435_v58  ;;  %v472_v63 = vadd.f32 0.014752088, %v471_v60  ;;  %v461_v1 = vadd.f32 0.0036580483, %v460_v59 }
  0xc3   : > { %v425_v8 = vadd.f32 0.18741608, %v424_v4 }
  0xc4   : > { %v437_v0 = vmul.f32 %v436_v61, %v417_v37  ;;  %v473_v2 = vmul.f32 %v472_v63, %v457_v50  ;;  %v462_v6 = vmul.f32 %v461_v1, %v457_v50 }
  0xc5   : > { %v426_v13 = vmul.f32 %v425_v8, %v417_v37 }
  0xc6   : > { %v438_v3 = vadd.f32 1.0, %v437_v0  ;;  %v474_v5 = vadd.f32 0.112945676, %v473_v2  ;;  %v463_v10 = vadd.f32 0.05243302, %v462_v6 }
  0xc7   : > { %v427_v19 = vadd.f32 1.1283791, %v426_v13 }
  0xc8   : > { %732 = vrcp.f32 %v438_v3  ;;  %v475_v7 = vmul.f32 %v474_v5, %v457_v50  ;;  %v464_v16 = vmul.f32 %v463_v10, %v457_v50  ;;  %v450_v18 = vand.u32 2147483648, %v438_v3 }
  0xc9   : > { %v448_v21 = vand.u32 2147483647, %v438_v3  ;;  %vm444_vm6 = vweird.f32 %v438_v3  ;;  %v428_v26 = vmul.f32 %v427_v19, %v931_v32 }
  0xca   : > { %v476_v9 = vadd.f32 0.4994258, %v475_v7  ;;  %v465_v22 = vadd.f32 0.18741608, %v464_v16  ;;  %v451_v24 = vor.u32 1.1754944e-38, %v450_v18 }
  0xcb   : > { %vm449_vm8 = vcmp.eq.f32.partialorder %v448_v21, 8.507059e+37 }
  0xcc   : > { %v477_v11 = vmul.f32 %v476_v9, %v457_v50  ;;  %v466_v29 = vmul.f32 %v465_v22, %v457_v50  ;;  %v413_v50 = vmul.f32 0.5, %v935_v41 }
  0xce   : > { %v733_v12 = vpop.eup %732  ;;  %v478_v15 = vadd.f32 1.0, %v477_v11  ;;  %v467_v37 = vadd.f32 1.1283791, %v466_v29 }
  0xcf   : > { %v440_v14 = vmul.f32 %v733_v12, %v438_v3  ;;  %vm445_vm5 = vweird.f32 %v733_v12 }
  0xd0   : > { %734 = vrcp.f32 %v478_v15  ;;  %vm446_vm7 = vmor %vm444_vm6, %vm445_vm5  ;;  %v490_v36 = vand.u32 2147483648, %v478_v15  ;;  %v488_v39 = vand.u32 2147483647, %v478_v15  ;;  %vm484_vm11 = vweird.f32 %v478_v15 }
  0xd1   : > { %v441_v17 = vsub.f32 1.0, %v440_v14  ;;  %v468_v46 = vmul.f32 %v467_v37, %v938_v44 }
  0xd2   : > { %v491_v45 = vor.u32 1.1754944e-38, %v490_v36  ;;  %vm489_vm13 = vcmp.eq.f32.partialorder %v488_v39, 8.507059e+37 }
  0xd3   : > { %v442_v20 = vmul.f32 %v733_v12, %v441_v17 }
  0xd5   : > { %v443_v23 = vadd.f32 %v733_v12, %v442_v20 }
  0xd6   : > { %v735_v25 = vpop.eup %734 }
  0xd7   : > { %v447_v27 = vsel %vm446_vm7, %v733_v12, %v443_v23  ;;  %v480_v31 = vmul.f32 %v735_v25, %v478_v15  ;;  %vm485_vm9 = vweird.f32 %v735_v25 }
  0xd8   : > { %v452_v28 = vsel %vm449_vm8, %v451_v24, %v447_v27  ;;  %vm486_vm12 = vmor %vm484_vm11, %vm485_vm9 }
  0xd9   : > { %v453_v33 = vmul.f32 %v452_v28, %v428_v26  ;;  %v481_v34 = vsub.f32 1.0, %v480_v31 }
  0xdb   : > { %v664_v35 = vclamps-f32 %v453_v33, 1.0  ;;  %v482_v38 = vmul.f32 %v735_v25, %v481_v34 }
  0xdd   : > { %v496_v42 = vadd.f32 1.0, %v664_v35  ;;  %v483_v32 = vadd.f32 %v735_v25, %v482_v38 }
  0xdf   : > { %v498_v43 = vmul.f32 %v496_v42, %v412_v40  ;;  %v487_v47 = vsel %vm486_vm12, %v735_v25, %v483_v32 }
  0xe0   : > { %v492_v48 = vsel %vm489_vm13, %v491_v45, %v487_v47 }
  0xe1   : > { %501 = vst.msk [vmem:[%s284_s12] sm:$0xff] %vm500_vm10, %v498_v43  ;;  %v493_v49 = vmul.f32 %v492_v48, %v468_v46 }
  0xe3   : > { %v665_v30 = vclamps-f32 %v493_v49, 1.0 }
  0xe5   : > { %v497_v51 = vadd.f32 1.0, %v665_v30 }
  0xe7   : > { %v499_v52 = vmul.f32 %v497_v51, %v413_v50 }
  0xe9   : > { %502 = vst.msk [vmem:[%s284_s12 + $0x8] sm:$0xff] %vm500_vm10, %v499_v52 }
  0xea PF: > { %s17_s20 = sadd.s32 1, %s816_s20   ;;  %s978_s15 = smov %s800_s16 }
  0xeb   : > { %p14_p0 = scmp.ge.s32.totalorder %s17_s20, 4   ;;  %s979_s16 = smov %s804_s17 }
  0xec   : > { %s980_s17 = smov %s894_s27  ;;  %s981_s18 = smov %s812_s19 }
  0xed   : > { %s982_s19 = smov %s984_s22  ;;  %16 = sbr.rel (!%p14_p0) target bundleno = 4 (0x4), region = 87 }
  0xf2   :  { %530 = vsyncpa [#allocation3], 1 }
  0xf3   :  { %532 = vsyncpa [#allocation3 + $0x1], 1 }

// kernel: hybrid_modality_projector_forward.23
= control target key start
LH: loop header
LB: loop body
LE: loop exit
PB: predicated region body
PF: predicated region fallthrough
CT: control target
= control target key end

     0   :  { %s760_s15 = smov 0   ;;  %s762_s16 = smov 0   ;;  %s847_s0 = inlined_call_operand.vmem [shape: f32[2,16,32], index: 0, kind: input, shape index: {}]   ;;  %s848_s1 = inlined_call_operand.vmem [shape: bf16[3,32,64], index: 1, kind: input, shape index: {}]   ;;  %s849_s2 = inlined_call_operand.vmem [shape: f32[1,64], index: 2, kind: input, shape index: {}]   ;;  %s850_s3 = inlined_call_operand.vmem [shape: f32[1,64], index: 3, kind: input, shape index: {}]   ;;  %s851_s4 = inlined_call_operand.vmem [shape: f32[2,16,64], index: 4, kind: output, shape index: {}]  }
   0x1   :  { %s764_s17 = smov 0  }
   0x2 LB: > { %s26_s18 = sadd.s32 1, %s729_s16  ;;  %p629_p0 = scmp.ge.s32.totalorder %s733_s17, 1  ;;  %s733_s17 = sphi %s764_s17, %s14_s17   ;;  %s729_s16 = sphi %s762_s16, %s853_s16   ;;  %s725_s15 = sphi %s760_s15, %s852_s15  }
   0x3   : > { %p28_p1 = scmp.ge.s32.totalorder %s26_s18, 2  ;;  %p201_p2 = scmp.lt.s32.totalorder %s733_s17, 3 }
   0x5   : > { %s855_s18 = smov (%p28_p1, %s26_s18), 0  ;;  %p202_p3 = pnand %p629_p0, %p201_p2 }
   0x6   : > { %p240_p4 = scmp.lt.s32.totalorder (!%p202_p3), %s725_s15, 1 }
   0x7   : > { %205 = sbr.rel (%p202_p3) target bundleno = 222 (0xde), region = 36 }
   0xc   : > { %v678_v0 = vld [vmem:[%s848_s1 + $0x18] sm:$0xff]  ;;  %v676_v1 = vld [vmem:[%s848_s1 + $0x8] sm:$0xff]  ;;  %v266_v3 = vlaneseq  ;;  %v677_v4 = vld [vmem:[%s848_s1 + $0x10] sm:$0xff]  ;;  %s857_s15 = smov (!%p240_p4, %s725_s15), 1  ;;  %vm305_vm0 = vcmask 261120   ;;  %vm502_vm10 = vcmask 523264  }
   0xd   : > { %v680_v2 = vld [vmem:[%s848_s1 + $0x28] sm:$0xff]  ;;  %v675_v5 = vld [vmem:[%s848_s1] sm:$0xff]  ;;  %315 = vmatpush.bf16.msra.mxu0 %v678_v0  ;;  %344 = vmatpush.bf16.msra.mxu1 %v676_v1  ;;  %s673_s5 = sshll.u32 %s857_s15, 4 }
   0xe   : > { %v267_v6 = vshrl.u32 %v266_v3, 7  ;;  %392 = vmatpush.bf16.msra.mxu2 %v680_v2  ;;  %v679_v7 = vld [vmem:[%s848_s1 + $0x20] sm:$0xff]  ;;  %s244_s8 = scalar_lea.vmem %s847_s0, %s673_s5  ;;  %s262_s19 = scalar_lea.vmem %s851_s4, %s673_s5 }
   0xf   : > { %v264_v9 = vld [vmem:[%s244_s8] sm:$0xff]  ;;  %v265_v10 = vld [vmem:[%s244_s8 + $0x8] sm:$0xff] }
  0x10   : > { %v268_v8 = vadd.s32 8, %v267_v6  ;;  %vm271_vm1 = vcmp.lt.s32.totalorder %v267_v6, 1  ;;  %vm274_vm2 = vcmp.ge.s32.totalorder %v267_v6, 1  ;;  %vm354_vm3 = vcmp.lt.s32.totalorder %v267_v6, 7  ;;  %v705_v27 = vld [vmem:[%s849_s2] ss:$0 sm:$0xff] }
  0x11   : > { %316 = vmatpush.bf16.msra.mxu0 %v677_v4  ;;  %345 = vmatpush.bf16.msra.mxu1 %v675_v5  ;;  %v269_v11 = vrot.slane %v264_v9, 7  ;;  %v270_v12 = vrot.slane %v265_v10, 7  ;;  %v287_v13 = vpack.c.bf16 %v265_v10, %v264_v9  ;;  %v352_v14 = vrot.slane %v264_v9, 1  ;;  %v706_v30 = vld [vmem:[%s850_s3] ss:$0 sm:$0xff] }
  0x12   : > { %393 = vmatpush.bf16.msra.mxu2 %v679_v7  ;;  %v353_v15 = vrot.slane %v265_v10, 1  ;;  %vm358_vm4 = vcmp.lt.s32.totalorder %v268_v8, 15 }
  0x13   : > { %v272_v16 = vsel %vm271_vm1, %v269_v11, %v270_v12  ;;  %v273_v17 = vsel %vm271_vm1, %v270_v12, %v269_v11 }
  0x14   : > { %646 = vmatmul.msk.bf16.vlgmr.msra.gmra.mxu0 %vm305_vm0, %v287_v13  ;;  %v280_v18 = vsel %vm274_vm2, %v273_v17, 0.0  ;;  %v355_v19 = vsel %vm354_vm3, %v352_v14, %v353_v15  ;;  %v356_v20 = vsel %vm354_vm3, %v353_v15, %v352_v14 }
  0x15   : > { %v282_v21 = vpack.c.bf16 %v272_v16, %v280_v18  ;;  %v364_v22 = vsel %vm358_vm4, %v356_v20, 0.0 }
  0x16   : > { %v365_v23 = vpack.c.bf16 %v364_v22, %v355_v19 }
  0x17   : > { %655 = vmatmul.msk.bf16.vlgmr.msra.gmra.mxu1 %vm305_vm0, %v282_v21 }
  0x18   : > { %668 = vmatmul.msk.bf16.vlgmr.msra.gmra.mxu2 %vm305_vm0, %v365_v23 }
  0x91   : > { %v318_v25 = vpop.f32.mrf.mxu0 }
  0x94   : > { %v347_v24 = vpop.f32.mrf.mxu1 }
  0x95   : > { %v348_v26 = vadd.f32 %v347_v24, %v318_v25 }
  0x99   : > { %v320_v34 = vpop.f32.mrf.mxu0 }
  0x9b   : > { %v395_v28 = vpop.f32.mrf.mxu2 }
  0x9c   : > { %v400_v29 = vadd.f32 %v395_v28, %v348_v26  ;;  %v349_v32 = vpop.f32.mrf.mxu1 }
  0x9d   : > { %v350_v36 = vadd.f32 %v349_v32, %v320_v34 }
  0x9e   : > { %v406_v31 = vmul.f32 %v705_v27, %v400_v29 }
  0xa0   : > { %v813_v33 = vadd.f32 %v706_v30, %v406_v31 }
  0xa2   : > { %v816_v35 = vmul.f32 0.70710677, %v813_v33 }
  0xa3   : > { %v397_v37 = vpop.f32.mrf.mxu2 }
  0xa4   : > { %v418_v38 = vmul.f32 %v816_v35, %v816_v35  ;;  %v401_v39 = vadd.f32 %v397_v37, %v350_v36 }
  0xa6   : > { %v419_v40 = vmin.f32 %v418_v38, 16.0  ;;  %v407_v41 = vmul.f32 %v705_v27, %v401_v39 }
  0xa8   : > { %v420_v42 = vmul.f32 2.1237322e-06, %v419_v40  ;;  %v431_v43 = vmul.f32 3.8918573e-05, %v419_v40  ;;  %v820_v44 = vadd.f32 %v706_v30, %v407_v41 }
  0xaa   : > { %v421_v45 = vadd.f32 0.00028619796, %v420_v42  ;;  %v432_v46 = vadd.f32 0.001143296, %v431_v43  ;;  %v823_v47 = vmul.f32 0.70710677, %v820_v44 }
  0xab   : > { %v414_v43 = vmul.f32 0.5, %v813_v33 }
  0xac   : > { %v422_v48 = vmul.f32 %v421_v45, %v419_v40  ;;  %v433_v49 = vmul.f32 %v432_v46, %v419_v40  ;;  %v458_v50 = vmul.f32 %v823_v47, %v823_v47 }
  0xae   : > { %v434_v51 = vadd.f32 0.014752088, %v433_v49  ;;  %v423_v52 = vadd.f32 0.0036580483, %v422_v48  ;;  %v459_v53 = vmin.f32 %v458_v50, 16.0 }
  0xb0   : > { %v435_v54 = vmul.f32 %v434_v51, %v419_v40  ;;  %v460_v55 = vmul.f32 2.1237322e-06, %v459_v53  ;;  %v471_v56 = vmul.f32 3.8918573e-05, %v459_v53  ;;  %v424_v58 = vmul.f32 %v423_v52, %v419_v40 }
  0xb2   : > { %v436_v57 = vadd.f32 0.112945676, %v435_v54  ;;  %v461_v59 = vadd.f32 0.00028619796, %v460_v55  ;;  %v472_v60 = vadd.f32 0.001143296, %v471_v56 }
  0xb3   : > { %v425_v1 = vadd.f32 0.05243302, %v424_v58 }
  0xb4   : > { %v437_v61 = vmul.f32 %v436_v57, %v419_v40  ;;  %v462_v62 = vmul.f32 %v461_v59, %v459_v53  ;;  %v473_v63 = vmul.f32 %v472_v60, %v459_v53 }
  0xb5   : > { %v426_v7 = vmul.f32 %v425_v1, %v419_v40 }
  0xb6   : > { %v438_v0 = vadd.f32 0.4994258, %v437_v61  ;;  %v474_v2 = vadd.f32 0.014752088, %v473_v63  ;;  %v463_v4 = vadd.f32 0.0036580483, %v462_v62 }
  0xb7   : > { %v427_v11 = vadd.f32 0.18741608, %v426_v7 }
  0xb8   : > { %v439_v3 = vmul.f32 %v438_v0, %v419_v40  ;;  %v475_v5 = vmul.f32 %v474_v2, %v459_v53  ;;  %v464_v9 = vmul.f32 %v463_v4, %v459_v53 }
  0xb9   : > { %v428_v16 = vmul.f32 %v427_v11, %v419_v40 }
  0xba   : > { %v440_v6 = vadd.f32 1.0, %v439_v3  ;;  %v476_v8 = vadd.f32 0.112945676, %v475_v5  ;;  %v465_v13 = vadd.f32 0.05243302, %v464_v9 }
  0xbb   : > { %v429_v22 = vadd.f32 1.1283791, %v428_v16 }
  0xbc   : > { %707 = vrcp.f32 %v440_v6  ;;  %v477_v10 = vmul.f32 %v476_v8, %v459_v53  ;;  %v466_v19 = vmul.f32 %v465_v13, %v459_v53  ;;  %v452_v21 = vand.u32 2147483648, %v440_v6 }
  0xbd   : > { %v450_v24 = vand.u32 2147483647, %v440_v6  ;;  %vm446_vm6 = vweird.f32 %v440_v6  ;;  %v430_v29 = vmul.f32 %v429_v22, %v816_v35 }
  0xbe   : > { %v478_v12 = vadd.f32 0.4994258, %v477_v10  ;;  %v467_v25 = vadd.f32 0.18741608, %v466_v19  ;;  %v453_v27 = vor.u32 1.1754944e-38, %v452_v21 }
  0xbf   : > { %vm451_vm8 = vcmp.eq.f32.partialorder %v450_v24, 8.507059e+37 }
  0xc0   : > { %v479_v14 = vmul.f32 %v478_v12, %v459_v53  ;;  %v468_v32 = vmul.f32 %v467_v25, %v459_v53  ;;  %v415_v53 = vmul.f32 0.5, %v820_v44 }
  0xc2   : > { %v708_v15 = vpop.eup %707  ;;  %v480_v18 = vadd.f32 1.0, %v479_v14  ;;  %v469_v40 = vadd.f32 1.1283791, %v468_v32 }
  0xc3   : > { %v442_v17 = vmul.f32 %v708_v15, %v440_v6  ;;  %vm447_vm5 = vweird.f32 %v708_v15 }
  0xc4   : > { %709 = vrcp.f32 %v480_v18  ;;  %vm448_vm7 = vmor %vm446_vm6, %vm447_vm5  ;;  %v492_v39 = vand.u32 2147483648, %v480_v18  ;;  %v490_v42 = vand.u32 2147483647, %v480_v18  ;;  %vm486_vm11 = vweird.f32 %v480_v18 }
  0xc5   : > { %v443_v20 = vsub.f32 1.0, %v442_v17  ;;  %v470_v49 = vmul.f32 %v469_v40, %v823_v47 }
  0xc6   : > { %v493_v48 = vor.u32 1.1754944e-38, %v492_v39  ;;  %vm491_vm13 = vcmp.eq.f32.partialorder %v490_v42, 8.507059e+37 }
  0xc7   : > { %v444_v23 = vmul.f32 %v708_v15, %v443_v20 }
  0xc9   : > { %v445_v26 = vadd.f32 %v708_v15, %v444_v23 }
  0xca   : > { %v710_v28 = vpop.eup %709 }
  0xcb   : > { %v449_v30 = vsel %vm448_vm7, %v708_v15, %v445_v26  ;;  %v482_v34 = vmul.f32 %v710_v28, %v480_v18  ;;  %vm487_vm9 = vweird.f32 %v710_v28 }
  0xcc   : > { %v454_v31 = vsel %vm451_vm8, %v453_v27, %v449_v30  ;;  %vm488_vm12 = vmor %vm486_vm11, %vm487_vm9 }
  0xcd   : > { %v455_v36 = vmul.f32 %v454_v31, %v430_v29  ;;  %v483_v37 = vsub.f32 1.0, %v482_v34 }
  0xcf   : > { %v669_v38 = vclamps-f32 %v455_v36, 1.0  ;;  %v484_v41 = vmul.f32 %v710_v28, %v483_v37 }
  0xd1   : > { %v498_v45 = vadd.f32 1.0, %v669_v38  ;;  %v485_v35 = vadd.f32 %v710_v28, %v484_v41 }
  0xd3   : > { %v500_v46 = vmul.f32 %v498_v45, %v414_v43  ;;  %v489_v50 = vsel %vm488_vm12, %v710_v28, %v485_v35 }
  0xd4   : > { %v494_v51 = vsel %vm491_vm13, %v493_v48, %v489_v50 }
  0xd5   : > { %503 = vst.msk [vmem:[%s262_s19] sm:$0xff] %vm502_vm10, %v500_v46  ;;  %v495_v33 = vmul.f32 %v494_v51, %v470_v49 }
  0xd7   : > { %v670_v52 = vclamps-f32 %v495_v33, 1.0 }
  0xd9   : > { %v499_v54 = vadd.f32 1.0, %v670_v52 }
  0xdb   : > { %v501_v55 = vmul.f32 %v499_v54, %v415_v53 }
  0xdd   : > { %504 = vst.msk [vmem:[%s262_s19 + $0x8] sm:$0xff] %vm502_vm10, %v501_v55 }
  0xde PF: > { %s14_s17 = sadd.s32 1, %s733_s17   ;;  %s852_s15 = smov %s729_s16 }
  0xdf   : > { %p11_p5 = scmp.ge.s32.totalorder %s14_s17, 4   ;;  %s853_s16 = smov %s855_s18 }
  0xe1   :  { %13 = sbr.rel (!%p11_p5) target bundleno = 2 (0x2), region = 77 }

// kernel: hybrid_modality_projector_forward.26
= control target key start
LH: loop header
LB: loop body
LE: loop exit
PB: predicated region body
PF: predicated region fallthrough
CT: control target
= control target key end

     0   :  { %vm41_vm0 = vcmask 261120   ;;  %vm67_vm1 = vcmask 523264   ;;  %s144_s1 = inlined_call_operand.vmem [shape: bf16[32,64], index: 1, kind: input, shape index: {}]   ;;  %s145_s0 = inlined_call_operand.vmem [shape: f32[32,32], index: 0, kind: input, shape index: {}]   ;;  %s146_s2 = inlined_call_operand.vmem [shape: f32[1,64], index: 2, kind: input, shape index: {}]   ;;  %s147_s3 = inlined_call_operand.vmem [shape: f32[32,64], index: 3, kind: output, shape index: {}]  }
   0x1   :  { %v87_v0 = vld [vmem:[%s144_s1 + $0x8] sm:$0xff]  ;;  %v86_v1 = vld [vmem:[%s144_s1] sm:$0xff]  ;;  %v17_v4 = vld [vmem:[%s145_s0 + $0x10] sm:$0xff] }
   0x2   :  { %v15_v2 = vld [vmem:[%s145_s0] sm:$0xff]  ;;  %v16_v3 = vld [vmem:[%s145_s0 + $0x8] sm:$0xff]  ;;  %54 = vmatpush.bf16.msra.mxu0 %v87_v0  ;;  %88 = vmatpush.bf16.msra.mxu1 %v87_v0  ;;  %v18_v5 = vld [vmem:[%s145_s0 + $0x18] sm:$0xff] }
   0x3   :  { %v19_v6 = vpack.c.bf16 %v16_v3, %v15_v2  ;;  %v20_v7 = vpack.c.bf16 %v18_v5, %v17_v4  ;;  %v90_v8 = vld [vmem:[%s146_s2] ss:$0 sm:$0xff] }
   0x6   :  { %55 = vmatpush.bf16.msra.mxu0 %v86_v1  ;;  %89 = vmatpush.bf16.msra.mxu1 %v86_v1 }
   0x9   :  { %84 = vmatmul.msk.bf16.vlgmr.msra.gmra.mxu0 %vm41_vm0, %v19_v6  ;;  %85 = vmatmul.msk.bf16.vlgmr.msra.gmra.mxu1 %vm41_vm0, %v20_v7 }
  0x86   :  { %v57_v9 = vpop.f32.mrf.mxu0  ;;  %v62_v10 = vpop.f32.mrf.mxu1 }
  0x87   :  { %v58_v11 = vadd.f32 %v90_v8, %v57_v9  ;;  %v63_v12 = vadd.f32 %v90_v8, %v62_v10 }
  0x89   :  { %68 = vst.msk [vmem:[%s147_s3] sm:$0xff] %vm67_vm1, %v58_v11 }
  0x8a   :  { %70 = vst.msk [vmem:[%s147_s3 + $0x10] sm:$0xff] %vm67_vm1, %v63_v12 }
  0x8e   :  { %v59_v13 = vpop.f32.mrf.mxu0  ;;  %v64_v14 = vpop.f32.mrf.mxu1 }
  0x8f   :  { %v60_v15 = vadd.f32 %v90_v8, %v59_v13  ;;  %v65_v16 = vadd.f32 %v90_v8, %v64_v14 }
  0x91   :  { %69 = vst.msk [vmem:[%s147_s3 + $0x8] sm:$0xff] %vm67_vm1, %v60_v15 }
  0x92   :  { %71 = vst.msk [vmem:[%s147_s3 + $0x18] sm:$0xff] %vm67_vm1, %v65_v16 }

// kernel: hybrid_modality_projector_forward.25
= control target key start
LH: loop header
LB: loop body
LE: loop exit
PB: predicated region body
PF: predicated region fallthrough
CT: control target
= control target key end

     0   :  { %vm37_vm0 = vcmask 261120   ;;  %s106_s1 = inlined_call_operand.vmem [shape: bf16[32,32], index: 1, kind: input, shape index: {}]   ;;  %s107_s0 = inlined_call_operand.vmem [shape: f32[8,32], index: 0, kind: input, shape index: {}]   ;;  %s108_s2 = inlined_call_operand.vmem [shape: f32[1,32], index: 2, kind: input, shape index: {}]   ;;  %s109_s3 = inlined_call_operand.vmem [shape: f32[8,32], index: 3, kind: output, shape index: {}]  }
   0x1   :  { %v69_v0 = vld [vmem:[%s106_s1 + $0x8] sm:$0xff]  ;;  %v68_v1 = vld [vmem:[%s106_s1] sm:$0xff] }
   0x2   :  { %47 = vmatpush.bf16.msra.mxu0 %v69_v0  ;;  %v15_v2 = vld [vmem:[%s107_s0] sm:$0xff] }
   0x3   :  { %v16_v3 = vpack.c.bf16 %v15_v2, %v15_v2  ;;  %v70_v4 = vld [vmem:[%s108_s2] ss:$0 sm:$0xff] }
   0x6   :  { %48 = vmatpush.bf16.msra.mxu0 %v68_v1 }
   0x9   :  { %67 = vmatmul.msk.bf16.vlgmr.msra.gmra.mxu0 %vm37_vm0, %v16_v3 }
  0x86   :  { %v50_v5 = vpop.f32.mrf.mxu0 }
  0x87   :  { %v51_v6 = vadd.f32 %v70_v4, %v50_v5 }
  0x89   :  { %54 = vst.msk [vmem:[%s109_s3] sm:$0xff] %vm37_vm0, %v51_v6 }
  0x8e   :  { %v52_v7 = vpop.f32.mrf.mxu0 }

// kernel: hybrid_modality_projector_forward.29
= control target key start
LH: loop header
LB: loop body
LE: loop exit
PB: predicated region body
PF: predicated region fallthrough
CT: control target
= control target key end

     0   :  { %vm16_vm0 = vcmask 261120   ;;  %v95_v4 = vmov 32.0   ;;  %s140_s0 = inlined_call_operand.vmem [shape: f32[16,32], index: 0, kind: input, shape index: {}]   ;;  %s141_s1 = inlined_call_operand.vmem [shape: f32[1,32], index: 1, kind: input, shape index: {}]   ;;  %s142_s2 = inlined_call_operand.vmem [shape: f32[1,32], index: 2, kind: input, shape index: {}]   ;;  %s143_s3 = inlined_call_operand.vmem [shape: f32[16,32], index: 3, kind: output, shape index: {}]  }
   0x1   :  { %v14_v0 = vld [vmem:[%s140_s0] sm:$0xff]  ;;  %v15_v2 = vld [vmem:[%s140_s0 + $0x8] sm:$0xff]  ;;  %89 = vrcp.f32 %v95_v4 }
   0x2   :  { %v17_v1 = vsel %vm16_vm0, %v14_v0, 0.0  ;;  %v20_v3 = vsel %vm16_vm0, %v15_v2, 0.0  ;;  %v87_v35 = vld [vmem:[%s141_s1] ss:$0 sm:$0xff] }
   0x3   :  { %18 = vadd.xlane.f32.xlu0 %v17_v1  ;;  %v88_v38 = vld [vmem:[%s142_s2] ss:$0 sm:$0xff] }
   0x7   :  { %v90_v5 = vpop.eup %89 }
   0x8   :  { %v24_v6 = vmul.f32 32.0, %v90_v5  ;;  %vm28_vm1 = vweird.f32 %v90_v5 }
   0xa   :  { %v25_v7 = vsub.f32 1.0, %v24_v6 }
   0xb   :  { %21 = vadd.xlane.f32.xlu0 %v20_v3 }
   0xc   :  { %v26_v8 = vmul.f32 %v90_v5, %v25_v7 }
   0xe   :  { %v27_v9 = vadd.f32 %v90_v5, %v26_v8 }
  0x10   :  { %v29_v10 = vsel %vm28_vm1, %v90_v5, %v27_v9 }
  0x76   :  { %v19_v11 = vpop.xlane.xlu0 %18 }
  0x77   :  { %v30_v12 = vmul.f32 %v29_v10, %v19_v11 }
  0x79   :  { %v32_v13 = vsub.f32 %v14_v0, %v30_v12 }
  0x7b   :  { %v34_v14 = vmul.f32 %v32_v13, %v32_v13 }
  0x7d   :  { %v36_v15 = vsel %vm16_vm0, %v34_v14, 0.0 }
  0x7e   :  { %37 = vadd.xlane.f32.xlu1 %v36_v15  ;;  %v22_v16 = vpop.xlane.xlu0 %21 }
  0x7f   :  { %v31_v17 = vmul.f32 %v29_v10, %v22_v16 }
  0x81   :  { %v33_v18 = vsub.f32 %v15_v2, %v31_v17 }
  0x83   :  { %v35_v19 = vmul.f32 %v33_v18, %v33_v18 }
  0x85   :  { %v39_v20 = vsel %vm16_vm0, %v35_v19, 0.0 }
  0x86   :  { %40 = vadd.xlane.f32.xlu1 %v39_v20 }
  0xf1   :  { %v38_v21 = vpop.xlane.xlu1 %37 }
  0xf2   :  { %v42_v22 = vmul.f32 %v38_v21, %v29_v10 }
  0xf4   :  { %v44_v23 = vadd.f32 1e-05, %v42_v22 }
  0xf6   :  { %91 = vrsqrt.f32 %v44_v23  ;;  %vm52_vm3 = vweird.f32 %v44_v23 }
  0xf9   :  { %v41_v24 = vpop.xlane.xlu1 %40 }
  0xfa   :  { %v43_v25 = vmul.f32 %v41_v24, %v29_v10 }
  0xfc   :  { %v92_v26 = vpop.eup %91  ;;  %v45_v27 = vadd.f32 1e-05, %v43_v25 }
  0xfd   :  { %v47_v28 = vmul.f32 %v92_v26, %v44_v23  ;;  %vm53_vm2 = vweird.f32 %v92_v26 }
  0xfe   :  { %93 = vrsqrt.f32 %v45_v27  ;;  %vm54_vm4 = vmor %vm52_vm3, %vm53_vm2  ;;  %vm62_vm6 = vweird.f32 %v45_v27 }
  0xff   :  { %v48_v29 = vmul.f32 %v92_v26, %v47_v28 }
 0x101   :  { %v49_v30 = vmul.f32 0.5, %v48_v29 }
 0x103   :  { %v50_v31 = vsub.f32 1.5, %v49_v30 }
 0x104   :  { %v94_v32 = vpop.eup %93 }
 0x105   :  { %v51_v33 = vmul.f32 %v92_v26, %v50_v31  ;;  %v57_v34 = vmul.f32 %v94_v32, %v45_v27  ;;  %vm63_vm5 = vweird.f32 %v94_v32 }
 0x106   :  { %vm64_vm7 = vmor %vm62_vm6, %vm63_vm5 }
 0x107   :  { %v55_v36 = vsel %vm54_vm4, %v92_v26, %v51_v33  ;;  %v58_v37 = vmul.f32 %v94_v32, %v57_v34 }
 0x108   :  { %v66_v39 = vmul.f32 %v55_v36, %v32_v13 }
 0x109   :  { %v59_v40 = vmul.f32 0.5, %v58_v37 }
 0x10a   :  { %v72_v41 = vmul.f32 %v87_v35, %v66_v39 }
 0x10b   :  { %v60_v42 = vsub.f32 1.5, %v59_v40 }
 0x10c   :  { %v78_v43 = vadd.f32 %v88_v38, %v72_v41 }
 0x10d   :  { %v61_v44 = vmul.f32 %v94_v32, %v60_v42 }
 0x10e   :  { %80 = vst.msk [vmem:[%s143_s3] sm:$0xff] %vm16_vm0, %v78_v43 }
 0x10f   :  { %v65_v45 = vsel %vm64_vm7, %v94_v32, %v61_v44 }
 0x110   :  { %v67_v46 = vmul.f32 %v65_v45, %v33_v18 }
 0x112   :  { %v73_v47 = vmul.f32 %v87_v35, %v67_v46 }
 0x114   :  { %v79_v48 = vadd.f32 %v88_v38, %v73_v47 }
 0x116   :  { %81 = vst.msk [vmem:[%s143_s3 + $0x8] sm:$0xff] %vm16_vm0, %v79_v48 }

// kernel: hybrid_modality_projector_forward.28
= control target key start
LH: loop header
LB: loop body
LE: loop exit
PB: predicated region body
PF: predicated region fallthrough
CT: control target
= control target key end

     0   :  { %vm44_vm0 = vcmask 261120   ;;  %v152_v12 = vmov 32.0   ;;  %s217_s1 = inlined_call_operand.vmem [shape: bf16[32,32], index: 1, kind: input, shape index: {}]   ;;  %s218_s0 = inlined_call_operand.vmem [shape: f32[16,32], index: 0, kind: input, shape index: {}]   ;;  %s219_s2 = inlined_call_operand.vmem [shape: f32[1,32], index: 2, kind: input, shape index: {}]   ;;  %s220_s3 = inlined_call_operand.vmem [shape: f32[1,32], index: 3, kind: input, shape index: {}]   ;;  %s221_s4 = inlined_call_operand.vmem [shape: f32[1,32], index: 4, kind: input, shape index: {}]   ;;  %s222_s5 = inlined_call_operand.vmem [shape: f32[16,32], index: 5, kind: output, shape index: {}]  }
   0x1   :  { %v141_v0 = vld [vmem:[%s217_s1 + $0x8] sm:$0xff]  ;;  %v140_v1 = vld [vmem:[%s217_s1] sm:$0xff]  ;;  %146 = vrcp.f32 %v152_v12 }
   0x2   :  { %54 = vmatpush.bf16.msra.mxu0 %v141_v0  ;;  %v21_v2 = vld [vmem:[%s218_s0] sm:$0xff]  ;;  %v22_v3 = vld [vmem:[%s218_s0 + $0x8] sm:$0xff] }
   0x3   :  { %v23_v4 = vpack.c.bf16 %v22_v3, %v21_v2  ;;  %v143_v5 = vld [vmem:[%s219_s2] ss:$0 sm:$0xff] }
   0x4   :  { %v144_v43 = vld [vmem:[%s220_s3] ss:$0 sm:$0xff] }
   0x5   :  { %v145_v46 = vld [vmem:[%s221_s4] ss:$0 sm:$0xff] }
   0x6   :  { %55 = vmatpush.bf16.msra.mxu0 %v140_v1 }
   0x7   :  { %v147_v13 = vpop.eup %146 }
   0x8   :  { %v69_v14 = vmul.f32 32.0, %v147_v13  ;;  %vm73_vm1 = vweird.f32 %v147_v13 }
   0x9   :  { %139 = vmatmul.msk.bf16.vlgmr.msra.gmra.mxu0 %vm44_vm0, %v23_v4 }
   0xa   :  { %v70_v15 = vsub.f32 1.0, %v69_v14 }
   0xc   :  { %v71_v16 = vmul.f32 %v147_v13, %v70_v15 }
   0xe   :  { %v72_v17 = vadd.f32 %v147_v13, %v71_v16 }
  0x10   :  { %v74_v18 = vsel %vm73_vm1, %v147_v13, %v72_v17 }
  0x86   :  { %v57_v6 = vpop.f32.mrf.mxu0 }
  0x87   :  { %v58_v7 = vadd.f32 %v143_v5, %v57_v6 }
  0x89   :  { %v62_v8 = vsel %vm44_vm0, %v58_v7, 0.0 }
  0x8a   :  { %63 = vadd.xlane.f32.xlu0 %v62_v8 }
  0x8e   :  { %v59_v9 = vpop.f32.mrf.mxu0 }
  0x8f   :  { %v60_v10 = vadd.f32 %v143_v5, %v59_v9 }
  0x91   :  { %v65_v11 = vsel %vm44_vm0, %v60_v10, 0.0 }
  0x92   :  { %66 = vadd.xlane.f32.xlu0 %v65_v11 }
  0xfd   :  { %v64_v19 = vpop.xlane.xlu0 %63 }
  0xfe   :  { %v75_v20 = vmul.f32 %v74_v18, %v64_v19 }
 0x100   :  { %v77_v21 = vsub.f32 %v58_v7, %v75_v20 }
 0x102   :  { %v79_v22 = vmul.f32 %v77_v21, %v77_v21 }
 0x104   :  { %v81_v23 = vsel %vm44_vm0, %v79_v22, 0.0 }
 0x105   :  { %82 = vadd.xlane.f32.xlu1 %v81_v23  ;;  %v67_v24 = vpop.xlane.xlu0 %66 }
 0x106   :  { %v76_v25 = vmul.f32 %v74_v18, %v67_v24 }
 0x108   :  { %v78_v26 = vsub.f32 %v60_v10, %v76_v25 }
 0x10a   :  { %v80_v27 = vmul.f32 %v78_v26, %v78_v26 }
 0x10c   :  { %v84_v28 = vsel %vm44_vm0, %v80_v27, 0.0 }
 0x10d   :  { %85 = vadd.xlane.f32.xlu1 %v84_v28 }
 0x178   :  { %v83_v29 = vpop.xlane.xlu1 %82 }
 0x179   :  { %v87_v30 = vmul.f32 %v83_v29, %v74_v18 }
 0x17b   :  { %v89_v31 = vadd.f32 1e-05, %v87_v30 }
 0x17d   :  { %148 = vrsqrt.f32 %v89_v31  ;;  %vm97_vm3 = vweird.f32 %v89_v31 }
 0x180   :  { %v86_v32 = vpop.xlane.xlu1 %85 }
 0x181   :  { %v88_v33 = vmul.f32 %v86_v32, %v74_v18 }
 0x183   :  { %v149_v34 = vpop.eup %148  ;;  %v90_v35 = vadd.f32 1e-05, %v88_v33 }
 0x184   :  { %v92_v36 = vmul.f32 %v149_v34, %v89_v31  ;;  %vm98_vm2 = vweird.f32 %v149_v34 }
 0x185   :  { %150 = vrsqrt.f32 %v90_v35  ;;  %vm99_vm4 = vmor %vm97_vm3, %vm98_vm2  ;;  %vm107_vm6 = vweird.f32 %v90_v35 }
 0x186   :  { %v93_v37 = vmul.f32 %v149_v34, %v92_v36 }
 0x188   :  { %v94_v38 = vmul.f32 0.5, %v93_v37 }
 0x18a   :  { %v95_v39 = vsub.f32 1.5, %v94_v38 }
 0x18b   :  { %v151_v40 = vpop.eup %150 }
 0x18c   :  { %v96_v41 = vmul.f32 %v149_v34, %v95_v39  ;;  %v102_v42 = vmul.f32 %v151_v40, %v90_v35  ;;  %vm108_vm5 = vweird.f32 %v151_v40 }
 0x18d   :  { %vm109_vm7 = vmor %vm107_vm6, %vm108_vm5 }
 0x18e   :  { %v100_v44 = vsel %vm99_vm4, %v149_v34, %v96_v41  ;;  %v103_v45 = vmul.f32 %v151_v40, %v102_v42 }
 0x18f   :  { %v111_v47 = vmul.f32 %v100_v44, %v77_v21 }
 0x190   :  { %v104_v48 = vmul.f32 0.5, %v103_v45 }
 0x191   :  { %v117_v49 = vmul.f32 %v144_v43, %v111_v47 }
 0x192   :  { %v105_v50 = vsub.f32 1.5, %v104_v48 }
 0x193   :  { %v123_v51 = vadd.f32 %v145_v46, %v117_v49 }
 0x194   :  { %v106_v52 = vmul.f32 %v151_v40, %v105_v50 }
 0x195   :  { %125 = vst.msk [vmem:[%s222_s5] sm:$0xff] %vm44_vm0, %v123_v51 }
 0x196   :  { %v110_v53 = vsel %vm109_vm7, %v151_v40, %v106_v52 }
 0x197   :  { %v112_v54 = vmul.f32 %v110_v53, %v78_v26 }
 0x199   :  { %v118_v55 = vmul.f32 %v144_v43, %v112_v54 }
 0x19b   :  { %v124_v56 = vadd.f32 %v145_v46, %v118_v55 }
 0x19d   :  { %126 = vst.msk [vmem:[%s222_s5 + $0x8] sm:$0xff] %vm44_vm0, %v124_v56 }

// kernel: hybrid_modality_projector_forward.27
= control target key start
LH: loop header
LB: loop body
LE: loop exit
PB: predicated region body
PF: predicated region fallthrough
CT: control target
= control target key end

     0   :  { %s880_s9 = smov 0   ;;  %s882_s10 = smov 0   ;;  %s1013_s0 = inlined_call_operand.vmem [shape: f32[1,8,32], index: 0, kind: input, shape index: {}]   ;;  %s1014_s1 = inlined_call_operand.vmem [shape: f32[2,16,64], index: 1, kind: input, shape index: {}]   ;;  %s1015_s2 = inlined_call_operand.vmem [shape: f32[2,8,32], index: 2, kind: output, shape index: {}]  }
   0x1   :  { %s884_s11 = smov 0  }
   0x2 LB: > { %s31_s12 = sadd.s32 1, %s846_s10  ;;  %p749_p0 = scmp.ge.s32.totalorder %s850_s11, 1  ;;  %s850_s11 = sphi %s884_s11, %s12_s11   ;;  %s846_s10 = sphi %s882_s10, %s1017_s10   ;;  %s842_s9 = sphi %s880_s9, %s1016_s9  }
   0x3   : > { %p33_p1 = scmp.ge.s32.totalorder %s31_s12, 2  ;;  %p149_p2 = scmp.lt.s32.totalorder %s850_s11, 3 }
   0x5   : > { %s1019_s12 = smov (%p33_p1, %s31_s12), 0  ;;  %p150_p3 = pnand %p749_p0, %p149_p2 }
   0x6   : > { %p186_p4 = scmp.lt.s32.totalorder (!%p150_p3), %s842_s9, 1  ;;  %s853_s19 = smov (!%p150_p3), 96  }
   0x7   : > { %153 = sbr.rel (%p150_p3) target bundleno = 1188 (0x4a4), region = 28  ;;  %s854_s20 = smov (!%p150_p3), 112  }
   0x8   : > { %s855_s21 = smov (!%p150_p3), 120   ;;  %s856_s22 = smov (!%p150_p3), 104  }
   0x9   : > { %s859_s23 = smov (!%p150_p3), 88   ;;  %s860_s24 = smov (!%p150_p3), 80  }
   0xa   : > { %s861_s25 = smov (!%p150_p3), 72   ;;  %s862_s26 = smov (!%p150_p3), 8  }
   0xb   : > { %s863_s27 = smov (!%p150_p3), 16   ;;  %s864_s28 = smov (!%p150_p3), 24  }
   0xc   : > { %s1021_s9 = smov (!%p186_p4, %s842_s9), 1  ;;  %vm223_vm0 = vcmask 64512   ;;  %v218_v4 = vld [vmem:[%s1013_s0] sm:$0xff]  ;;  %vm207_vm1 = vcmask 7168   ;;  %v852_v6 = vmov -inf   ;;  %vm245_vm2 = vcmask 130048  }
   0xd   : > { %s763_s13 = sshll.u32 %s1021_s9, 4  ;;  %v221_v5 = vpack.c.bf16 %v218_v4, %v218_v4  ;;  %208 = vst.msk [vmem:[#allocation2] sm:$0xff] %vm207_vm1, %v852_v6  ;;  %v857_v11 = vmov 0   ;;  %v858_v12 = vmov 0.0   ;;  %vm216_vm3 = vcmask 261120   ;;  %s752_s29 = sshll.u32 %s1021_s9, 3 }
   0xe   : > { %s193_s16 = scalar_lea.vmem %s1014_s1, %s763_s13  ;;  %209 = vst.msk [vmem:[#allocation2 + $0x8] sm:$0xff] %vm207_vm1, %v852_v6  ;;  %801 = vset.pattern.permute.xlu1 %v857_v11  ;;  %802 = vset.pattern.permute.xlu2 %v857_v11  ;;  %vm382_vm4 = vcmask 130112   ;;  %vm466_vm5 = vcmask 195712   ;;  %vm550_vm6 = vcmask 261312   ;;  %s994_s4 = scalar_lea.vmem %s1015_s2, %s752_s29 }
   0xf   : > { %v219_v0 = vld [vmem:[%s193_s16] sm:$0xff]  ;;  %v220_v1 = vld [vmem:[%s193_s16 + $0x8] sm:$0xff]  ;;  %210 = vst.msk [vmem:[#allocation2 + $0x10] sm:$0xff] %vm207_vm1, %v852_v6  ;;  %803 = vset.pattern.permute.xlu0 %v857_v11 }
  0x10   : > { %v904_v2 = vpack.c.bf16 %v220_v1, %v219_v0  ;;  %211 = vst.msk [vmem:[#allocation2 + $0x18] sm:$0xff] %vm207_vm1, %v852_v6 }
  0x11   : > { %212 = vst.msk [vmem:[#allocation3] sm:$0xff] %vm207_vm1, %v858_v12 }
  0x12   : > { %v228_v3 = vsel %vm223_vm0, %v904_v2, 0  ;;  %278 = vrot.lane.b32.xlu2 %v904_v2, %s853_s19  ;;  %213 = vst.msk [vmem:[#allocation3 + $0x8] sm:$0xff] %vm207_vm1, %v858_v12 }
  0x13   : > { %237 = vmatpush.bf16.xpose.msra.mxu0 %v228_v3  ;;  %214 = vst.msk [vmem:[#allocation3 + $0x10] sm:$0xff] %vm207_vm1, %v858_v12 }
  0x14   : > { %215 = vst.msk [vmem:[#allocation3 + $0x18] sm:$0xff] %vm207_vm1, %v858_v12  ;;  %v929_v14 = vld [vmem:[#allocation2] sm:$0xff] }
  0x15   : > { %v326_v46 = vld [vmem:[#allocation2 + $0x8] sm:$0xff]  ;;  %217 = vst.msk [vmem:[#allocation4] sm:$0xff] %vm216_vm3, %v858_v12 }
  0x16   : > { %v410_v53 = vld [vmem:[#allocation2 + $0x10] sm:$0xff] }
  0x17   : > { %v494_v49 = vld [vmem:[#allocation2 + $0x18] sm:$0xff] }
  0x1a   : > { %753 = vmatmul.msk.bf16.vlgmr.msra.gmra.mxu0 %vm223_vm0, %v221_v5  ;;  %387 = vrot.lane.b32.xlu2 %v904_v2, %s854_s20 }
  0x1c   : > { %v269_v12 = vld [vmem:[#allocation4] sm:$0xff] }
  0x22   : > { %471 = vrot.lane.b32.xlu2 %v904_v2, %s856_s22 }
  0x6c   : > { %v279_v13 = vpop.permute.xlu2 %278 }
  0x6d   : > { %291 = vmatpush.bf16.msra.mxu1 %v279_v13 }
  0x74   : > { %v388_v20 = vpop.permute.xlu2 %387 }
  0x75   : > { %v393_v23 = vsel %vm223_vm0, %v388_v20, 0 }
  0x76   : > { %402 = vmatpush.bf16.xpose.msrb.mxu1 %v393_v23 }
  0x7c   : > { %v472_v21 = vpop.permute.xlu2 %471 }
  0x7d   : > { %v477_v22 = vsel %vm223_vm0, %v472_v21, 0 }
  0x7e   : > { %486 = vmatpush.bf16.xpose.msrb.mxu0 %v477_v22 }
  0x97   : > { %v239_v7 = vpop.f32.mrf.mxu0 }
  0x98   : > { %v243_v8 = vmul.f32 0.35355338, %v239_v7 }
  0x9a   : > { %v246_v9 = vsel %vm245_vm2, %v243_v8, -inf }
  0x9b   : > { %247 = vmax.xlane.f32.xlu0 %v246_v9 }
  0x9f   : > { %v241_v10 = vpop.f32.mrf.mxu0 }
  0xaf   : > { %303 = vrot.lane.b32.xlu0 %v904_v2, %s855_s21 }
 0x10e   : > { %v248_v15 = vpop.xlane.xlu0 %247 }
 0x10f   : > { %v932_v16 = vmax.f32 %v929_v14, %v248_v15 }
 0x111   : > { %v250_v17 = vsub.f32 %v929_v14, %v932_v16  ;;  %299 = vst.msk [vmem:[#allocation2] sm:$0xff] %vm207_vm1, %v932_v16  ;;  %255 = vperm.xlu1 %801, %v932_v16  }
 0x113   : > { %v251_v55 = vmul.f32 1.442695, %v250_v17 }
 0x119   : > { %301 = vrot.lane.b32.xlu1 %v221_v5, %s855_s21 }
 0x121   : > { %385 = vrot.lane.b32.xlu1 %v221_v5, %s854_s20  ;;  %v304_v18 = vpop.permute.xlu0 %303 }
 0x122   : > { %v309_v19 = vsel %vm223_vm0, %v304_v18, 0 }
 0x123   : > { %318 = vmatpush.bf16.xpose.msra.mxu2 %v309_v19 }
 0x129   : > { %469 = vrot.lane.b32.xlu1 %v221_v5, %s856_s22 }
 0x183   : > { %v256_v24 = vpop.permute.xlu1 %255 }
 0x184   : > { %v258_v25 = vsub.f32 %v243_v8, %v256_v24 }
 0x186   : > { %v259_v26 = vmul.f32 1.442695, %v258_v25 }
 0x188   : > { %804 = vpow2.f32 %v259_v26 }
 0x189   : > { %806 = vpow2.f32 %v251_v55 }
 0x18b   : > { %v302_v27 = vpop.permute.xlu1 %301 }
 0x18c   : > { %755 = vmatmul.msk.bf16.vlgmr.msra.gmra.mxu2 %vm223_vm0, %v302_v27  ;;  %v261_v27 = vld [vmem:[#allocation3] sm:$0xff] }
 0x18e   : > { %v805_v28 = vpop.eup %804 }
 0x18f   : > { %v276_v29 = vpack.c.bf16 %v805_v28, %v805_v28  ;;  %v807_v59 = vpop.eup %806  ;;  %v263_v61 = vsel %vm245_vm2, %v805_v28, 0.0 }
 0x190   : > { %v262_v28 = vmul.f32 %v807_v59, %v261_v27 }
 0x191   : > { %754 = vmatmul.msk.bf16.vlgmr.msra.gmra.mxu1 %vm245_vm2, %v276_v29 }
 0x193   : > { %v386_v30 = vpop.permute.xlu1 %385 }
 0x19b   : > { %v470_v31 = vpop.permute.xlu1 %469 }
 0x19c   : > { %759 = vmatmul.msk.bf16.vlgmr.msrb.gmra.mxu0 %vm223_vm0, %v470_v31 }
 0x1a1   : > { %757 = vmatmul.msk.bf16.vlgmr.msrb.gmra.mxu1 %vm223_vm0, %v386_v30 }
 0x20e   : > { %v946_v32 = vpop.f32.mrf.mxu1 }
 0x20f   : > { %v320_v33 = vpop.f32.mrf.mxu2 }
 0x210   : > { %v948_v34 = vmul.f32 0.35355338, %v320_v33 }
 0x212   : > { %v327_v35 = vsel %vm245_vm2, %v948_v34, -inf }
 0x213   : > { %328 = vmax.xlane.f32.xlu2 %v327_v35 }
 0x216   : > { %v295_v36 = vpop.f32.mrf.mxu1 }
 0x217   : > { %v322_v37 = vpop.f32.mrf.mxu2 }
 0x219   : > { %v488_v38 = vpop.f32.mrf.mxu0 }
 0x21a   : > { %v952_v39 = vmul.f32 0.35355338, %v488_v38 }
 0x21c   : > { %v495_v40 = vsel %vm245_vm2, %v952_v39, -inf }
 0x21d   : > { %496 = vmax.xlane.f32.xlu1 %v495_v40 }
 0x21e   : > { %v404_v41 = vpop.f32.mrf.mxu1 }
 0x21f   : > { %v956_v42 = vmul.f32 0.35355338, %v404_v41 }
 0x221   : > { %v411_v43 = vsel %vm245_vm2, %v956_v42, -inf  ;;  %v490_v44 = vpop.f32.mrf.mxu0 }
 0x222   : > { %412 = vmax.xlane.f32.xlu0 %v411_v43 }
 0x226   : > { %v406_v45 = vpop.f32.mrf.mxu1 }
 0x236   : > { %358 = vrot.lane.b32.xlu0 %v904_v2, %s859_s23 }
 0x286   : > { %v329_v47 = vpop.xlane.xlu2 %328 }
 0x287   : > { %v330_v48 = vmax.f32 %v326_v46, %v329_v47 }
 0x289   : > { %384 = vst.msk [vmem:[#allocation2 + $0x8] sm:$0xff] %vm207_vm1, %v330_v48  ;;  %336 = vperm.xlu2 %802, %v330_v48   ;;  %v331_v57 = vsub.f32 %v326_v46, %v330_v48 }
 0x28b   : > { %v332_v58 = vmul.f32 1.442695, %v331_v57 }
 0x28d   : > { %808 = vpow2.f32 %v332_v58 }
 0x290   : > { %v497_v50 = vpop.xlane.xlu1 %496 }
 0x291   : > { %v498_v51 = vmax.f32 %v494_v49, %v497_v50  ;;  %442 = vrot.lane.b32.xlu2 %v904_v2, %s860_s24 }
 0x293   : > { %v499_v52 = vsub.f32 %v494_v49, %v498_v51  ;;  %552 = vst.msk [vmem:[#allocation2 + $0x18] sm:$0xff] %vm207_vm1, %v498_v51  ;;  %504 = vperm.xlu0 %803, %v498_v51   ;;  %v809_v60 = vpop.eup %808 }
 0x295   : > { %v413_v54 = vpop.xlane.xlu0 %412  ;;  %v500_v1 = vmul.f32 1.442695, %v499_v52 }
 0x296   : > { %v414_v56 = vmax.f32 %v410_v53, %v413_v54 }
 0x298   : > { %468 = vst.msk [vmem:[#allocation2 + $0x10] sm:$0xff] %vm207_vm1, %v414_v56  ;;  %420 = vperm.xlu1 %801, %v414_v56   ;;  %v415_v62 = vsub.f32 %v410_v53, %v414_v56 }
 0x299   : > { %526 = vrot.lane.b32.xlu2 %v904_v2, %s861_s25 }
 0x29a   : > { %v416_v0 = vmul.f32 1.442695, %v415_v62 }
 0x29c   : > { %810 = vpow2.f32 %v416_v0 }
 0x29d   : > { %812 = vpow2.f32 %v500_v1 }
 0x2a1   : > { %272 = vperm.xlu2 %802, %v807_v59  }
 0x2a2   : > { %v968_v2 = vpop.eup %810 }
 0x2a3   : > { %v813_v3 = vpop.eup %812 }
 0x2a8   : > { %v359_v63 = vpop.permute.xlu0 %358 }
 0x2a9   : > { %353 = vperm.xlu2 %802, %v809_v60   ;;  %371 = vmatpush.bf16.msra.mxu3 %v359_v63 }
 0x2c2   : > { %264 = vadd.xlane.f32.xlu1 %v263_v61  ;;  %v427_v61 = vld [vmem:[#allocation3 + $0x10] sm:$0xff] }
 0x2c3   : > { %v428_v1 = vmul.f32 %v968_v2, %v427_v61 }
 0x2db   : > { %437 = vperm.xlu1 %801, %v968_v2  }
 0x2e3   : > { %v337_v4 = vpop.permute.xlu2 %336  ;;  %521 = vperm.xlu1 %801, %v813_v3  }
 0x2e4   : > { %v339_v5 = vsub.f32 %v948_v34, %v337_v4 }
 0x2e6   : > { %v340_v6 = vmul.f32 1.442695, %v339_v5 }
 0x2e8   : > { %814 = vpow2.f32 %v340_v6 }
 0x2eb   : > { %v443_v7 = vpop.permute.xlu2 %442 }
 0x2ec   : > { %455 = vmatpush.bf16.msrb.mxu3 %v443_v7 }
 0x2ee   : > { %v815_v8 = vpop.eup %814 }
 0x2ef   : > { %v345_v9 = vsel %vm245_vm2, %v815_v8, 0.0  ;;  %v357_v10 = vpack.c.bf16 %v815_v8, %v815_v8 }
 0x2f0   : > { %346 = vadd.xlane.f32.xlu0 %v345_v9 }
 0x2f1   : > { %756 = vmatmul.msk.bf16.vlgmr.msra.gmra.mxu3 %vm245_vm2, %v357_v10 }
 0x2f3   : > { %v527_v11 = vpop.permute.xlu2 %526 }
 0x2f4   : > { %539 = vmatpush.bf16.msrb.mxu2 %v527_v11 }
 0x2fb   : > { %v273_v13 = vpop.permute.xlu2 %272 }
 0x2fc   : > { %v275_v14 = vmul.f32 %v273_v13, %v269_v12 }
 0x2fe   : > { %v297_v15 = vadd.f32 %v946_v32, %v275_v14  ;;  %v343_v32 = vld [vmem:[#allocation3 + $0x8] sm:$0xff] }
 0x2ff   : > { %v344_v33 = vmul.f32 %v809_v60, %v343_v32 }
 0x300   : > { %298 = vst.msk [vmem:[#allocation4] sm:$0xff] %vm223_vm0, %v297_v15 }
 0x303   : > { %v354_v49 = vpop.permute.xlu2 %353 }
 0x305   : > { %v505_v16 = vpop.permute.xlu0 %504 }
 0x306   : > { %v507_v17 = vsub.f32 %v952_v39, %v505_v16  ;;  %v511_v39 = vld [vmem:[#allocation3 + $0x18] sm:$0xff] }
 0x307   : > { %v512_v40 = vmul.f32 %v813_v3, %v511_v39  ;;  %v350_v50 = vld [vmem:[#allocation4] sm:$0xff] }
 0x308   : > { %v508_v18 = vmul.f32 1.442695, %v507_v17  ;;  %v356_v51 = vmul.f32 %v354_v49, %v350_v50 }
 0x30a   : > { %816 = vpow2.f32 %v508_v18  ;;  %v421_v19 = vpop.permute.xlu1 %420 }
 0x30b   : > { %v423_v20 = vsub.f32 %v956_v42, %v421_v19 }
 0x30d   : > { %v424_v21 = vmul.f32 1.442695, %v423_v20 }
 0x30f   : > { %818 = vpow2.f32 %v424_v21 }
 0x310   : > { %v817_v22 = vpop.eup %816 }
 0x311   : > { %v513_v23 = vsel %vm245_vm2, %v817_v22, 0.0  ;;  %v525_v24 = vpack.c.bf16 %v817_v22, %v817_v22 }
 0x312   : > { %514 = vadd.xlane.f32.xlu0 %v513_v23 }
 0x313   : > { %760 = vmatmul.msk.bf16.vlgmr.msrb.gmra.mxu2 %vm245_vm2, %v525_v24 }
 0x315   : > { %v819_v25 = vpop.eup %818 }
 0x316   : > { %v441_v26 = vpack.c.bf16 %v819_v25, %v819_v25  ;;  %v429_v45 = vsel %vm245_vm2, %v819_v25, 0.0 }
 0x318   : > { %758 = vmatmul.msk.bf16.vlgmr.msrb.gmra.mxu3 %vm245_vm2, %v441_v26 }
 0x335   : > { %v265_v29 = vpop.xlane.xlu1 %264 }
 0x336   : > { %v266_v30 = vadd.f32 %v265_v29, %v262_v28 }
 0x338   : > { %268 = vst.msk [vmem:[#allocation3] sm:$0xff] %vm207_vm1, %v266_v30 }
 0x33f   : > { %v557_v31 = vld [vmem:[#allocation3] sm:$0xff] }
 0x340   : > { %560 = vperm.xlu1 %801, %v557_v31  }
 0x34d   : > { %v438_v54 = vpop.permute.xlu1 %437 }
 0x355   : > { %v522_v55 = vpop.permute.xlu1 %521 }
 0x363   : > { %v347_v34 = vpop.xlane.xlu0 %346 }
 0x364   : > { %v348_v35 = vadd.f32 %v347_v34, %v344_v33 }
 0x366   : > { %349 = vst.msk [vmem:[#allocation3 + $0x8] sm:$0xff] %vm207_vm1, %v348_v35 }
 0x36d   : > { %v580_v36 = vld [vmem:[#allocation3 + $0x8] sm:$0xff] }
 0x36e   : > { %583 = vperm.xlu0 %803, %v580_v36  }
 0x374   : > { %v373_v37 = vpop.f32.mrf.mxu3 }
 0x375   : > { %378 = vrot.lane.b32.xlu2 %v373_v37, %s862_s26 }
 0x37c   : > { %v375_v38 = vpop.f32.mrf.mxu3 }
 0x385   : > { %v515_v41 = vpop.xlane.xlu0 %514 }
 0x386   : > { %v516_v42 = vadd.f32 %v515_v41, %v512_v40 }
 0x388   : > { %517 = vst.msk [vmem:[#allocation3 + $0x18] sm:$0xff] %vm207_vm1, %v516_v42 }
 0x38f   : > { %v626_v48 = vld [vmem:[#allocation3 + $0x18] sm:$0xff] }
 0x396   : > { %v541_v43 = vpop.f32.mrf.mxu2 }
 0x39b   : > { %v457_v44 = vpop.f32.mrf.mxu3 }
 0x39c   : > { %462 = vrot.lane.b32.xlu0 %v457_v44, %s863_s27 }
 0x39e   : > { %v543_v46 = vpop.f32.mrf.mxu2  ;;  %430 = vadd.xlane.f32.xlu2 %v429_v45 }
 0x3a3   : > { %v459_v47 = vpop.f32.mrf.mxu3 }
 0x3a4   : > { %629 = vperm.xlu0 %803, %v626_v48  }
 0x3b2   : > { %v561_v56 = vpop.permute.xlu1 %560 }
 0x3b3   : > { %820 = vrcp.f32 %v561_v56  ;;  %vm568_vm9 = vweird.f32 %v561_v56  ;;  %v574_v17 = vand.u32 2147483648, %v561_v56  ;;  %v572_v19 = vand.u32 2147483647, %v561_v56 }
 0x3b5   : > { %v575_v23 = vor.u32 1.1754944e-38, %v574_v17  ;;  %vm573_vm13 = vcmp.eq.f32.partialorder %v572_v19, 8.507059e+37 }
 0x3b6   : > { %546 = vrot.lane.b32.xlu2 %v541_v43, %s864_s28 }
 0x3b9   : > { %v821_v59 = vpop.eup %820 }
 0x3ba   : > { %v564_v3 = vmul.f32 %v821_v59, %v561_v56  ;;  %vm569_vm7 = vweird.f32 %v821_v59 }
 0x3bb   : > { %vm570_vm10 = vmor %vm568_vm9, %vm569_vm7 }
 0x3bc   : > { %v565_v7 = vsub.f32 1.0, %v564_v3 }
 0x3be   : > { %v566_v10 = vmul.f32 %v821_v59, %v565_v7 }
 0x3c0   : > { %v567_v2 = vadd.f32 %v821_v59, %v566_v10 }
 0x3c2   : > { %v571_v21 = vsel %vm570_vm10, %v821_v59, %v567_v2 }
 0x3c3   : > { %v576_v25 = vsel %vm573_vm13, %v575_v23, %v571_v21 }
 0x3cf   : > { %v379_v52 = vpop.permute.xlu2 %378 }
 0x3d0   : > { %v381_v53 = vadd.f32 %v379_v52, %v356_v51 }
 0x3d2   : > { %383 = vst.msk [vmem:[#allocation4] sm:$0xff] %vm382_vm4, %v381_v53 }
 0x3d9   : > { %v434_v58 = vld [vmem:[#allocation4] sm:$0xff] }
 0x3da   : > { %v440_v60 = vmul.f32 %v438_v54, %v434_v58 }
 0x3e0   : > { %v584_v57 = vpop.permute.xlu0 %583 }
 0x3e1   : > { %822 = vrcp.f32 %v584_v57  ;;  %v597_v18 = vand.u32 2147483648, %v584_v57  ;;  %vm591_vm11 = vweird.f32 %v584_v57  ;;  %v595_v20 = vand.u32 2147483647, %v584_v57 }
 0x3e3   : > { %v598_v24 = vor.u32 1.1754944e-38, %v597_v18  ;;  %vm596_vm14 = vcmp.eq.f32.partialorder %v595_v20, 8.507059e+37 }
 0x3e7   : > { %v823_v62 = vpop.eup %822 }
 0x3e8   : > { %v587_v4 = vmul.f32 %v823_v62, %v584_v57  ;;  %vm592_vm8 = vweird.f32 %v823_v62 }
 0x3e9   : > { %vm593_vm12 = vmor %vm591_vm11, %vm592_vm8 }
 0x3ea   : > { %v588_v8 = vsub.f32 1.0, %v587_v4 }
 0x3ec   : > { %v589_v11 = vmul.f32 %v823_v62, %v588_v8 }
 0x3ee   : > { %v590_v16 = vadd.f32 %v823_v62, %v589_v11 }
 0x3f0   : > { %v594_v22 = vsel %vm593_vm12, %v823_v62, %v590_v16 }
 0x3f1   : > { %v599_v26 = vsel %vm596_vm14, %v598_v24, %v594_v22 }
 0x40e   : > { %v463_v63 = vpop.permute.xlu0 %462 }
 0x40f   : > { %v465_v0 = vadd.f32 %v463_v63, %v440_v60 }
 0x411   : > { %467 = vst.msk [vmem:[#allocation4] sm:$0xff] %vm466_vm5, %v465_v0  ;;  %v431_v5 = vpop.xlane.xlu2 %430 }
 0x412   : > { %v432_v6 = vadd.f32 %v431_v5, %v428_v1 }
 0x414   : > { %433 = vst.msk [vmem:[#allocation3 + $0x10] sm:$0xff] %vm207_vm1, %v432_v6 }
 0x416   : > { %v630_v30 = vpop.permute.xlu0 %629 }
 0x417   : > { %824 = vrcp.f32 %v630_v30  ;;  %v643_v39 = vand.u32 2147483648, %v630_v30  ;;  %vm637_vm1 = vweird.f32 %v630_v30  ;;  %v641_v41 = vand.u32 2147483647, %v630_v30 }
 0x418   : > { %v518_v9 = vld [vmem:[#allocation4] sm:$0xff] }
 0x419   : > { %v547_v12 = vpop.permute.xlu2 %546  ;;  %v524_v13 = vmul.f32 %v522_v55, %v518_v9  ;;  %v644_v46 = vor.u32 1.1754944e-38, %v643_v39 }
 0x41b   : > { %v549_v14 = vadd.f32 %v547_v12, %v524_v13  ;;  %v603_v15 = vld [vmem:[#allocation3 + $0x10] sm:$0xff] }
 0x41c   : > { %606 = vperm.xlu1 %801, %v603_v15  }
 0x41d   : > { %551 = vst.msk [vmem:[#allocation4] sm:$0xff] %vm550_vm6, %v549_v14  ;;  %v825_v31 = vpop.eup %824 }
 0x41e   : > { %v633_v32 = vmul.f32 %v825_v31, %v630_v30  ;;  %vm638_vm15 = vweird.f32 %v825_v31 }
 0x420   : > { %v634_v34 = vsub.f32 1.0, %v633_v32 }
 0x422   : > { %v635_v35 = vmul.f32 %v825_v31, %v634_v34 }
 0x424   : > { %v556_v27 = vld [vmem:[#allocation4] sm:$0xff]  ;;  %v636_v38 = vadd.f32 %v825_v31, %v635_v35 }
 0x425   : > { %v577_v28 = vmul.f32 %v576_v25, %v556_v27  ;;  %v600_v29 = vmul.f32 %v599_v26, %v556_v27 }
 0x427   : > { %578 = vst.msk [vmem:[%s994_s4] sm:$0xff] %vm223_vm0, %v577_v28  ;;  %vm639_vm0 = vmor %vm637_vm1, %vm638_vm15 }
 0x428   : > { %601 = vst.msk [vmem:[%s994_s4] sm:$0xff] %vm382_vm4, %v600_v29  ;;  %v640_v45 = vsel %vm639_vm0, %v825_v31, %v636_v38  ;;  %vm642_vm4 = vcmp.eq.f32.partialorder %v641_v41, 8.507059e+37 }
 0x429   : > { %v645_v49 = vsel %vm642_vm4, %v644_v46, %v640_v45 }
 0x42a   : > { %v646_v53 = vmul.f32 %v645_v49, %v556_v27 }
 0x48e   : > { %v607_v33 = vpop.permute.xlu1 %606 }
 0x48f   : > { %826 = vrcp.f32 %v607_v33  ;;  %v620_v42 = vand.u32 2147483648, %v607_v33  ;;  %v618_v44 = vand.u32 2147483647, %v607_v33  ;;  %vm614_vm3 = vweird.f32 %v607_v33 }
 0x491   : > { %v621_v48 = vor.u32 1.1754944e-38, %v620_v42  ;;  %vm619_vm8 = vcmp.eq.f32.partialorder %v618_v44, 8.507059e+37 }
 0x495   : > { %v827_v36 = vpop.eup %826 }
 0x496   : > { %v610_v37 = vmul.f32 %v827_v36, %v607_v33  ;;  %vm615_vm2 = vweird.f32 %v827_v36 }
 0x497   : > { %vm616_vm7 = vmor %vm614_vm3, %vm615_vm2 }
 0x498   : > { %v611_v40 = vsub.f32 1.0, %v610_v37 }
 0x49a   : > { %v612_v43 = vmul.f32 %v827_v36, %v611_v40 }
 0x49c   : > { %v613_v47 = vadd.f32 %v827_v36, %v612_v43 }
 0x49e   : > { %v617_v50 = vsel %vm616_vm7, %v827_v36, %v613_v47 }
 0x49f   : > { %v622_v51 = vsel %vm619_vm8, %v621_v48, %v617_v50 }
 0x4a0   : > { %v623_v52 = vmul.f32 %v622_v51, %v556_v27 }
 0x4a2   : > { %624 = vst.msk [vmem:[%s994_s4] sm:$0xff] %vm466_vm5, %v623_v52 }
 0x4a3   : > { %647 = vst.msk [vmem:[%s994_s4] sm:$0xff] %vm550_vm6, %v646_v53 }
 0x4a4 PF: > { %s12_s11 = sadd.s32 1, %s850_s11   ;;  %s1016_s9 = smov %s846_s10 }
 0x4a5   : > { %p9_p5 = scmp.ge.s32.totalorder %s12_s11, 4   ;;  %s1017_s10 = smov %s1019_s12 }
 0x4a7   :  { %11 = sbr.rel (!%p9_p5) target bundleno = 2 (0x2), region = 75 }

// kernel: hybrid_modality_projector_forward.30
= control target key start
LH: loop header
LB: loop body
LE: loop exit
PB: predicated region body
PF: predicated region fallthrough
CT: control target
= control target key end

     0   :  { %vm38_vm0 = vcmask 261120   ;;  %s115_s1 = inlined_call_operand.vmem [shape: bf16[32,32], index: 1, kind: input, shape index: {}]   ;;  %s116_s0 = inlined_call_operand.vmem [shape: f32[16,32], index: 0, kind: input, shape index: {}]   ;;  %s117_s2 = inlined_call_operand.vmem [shape: f32[1,32], index: 2, kind: input, shape index: {}]   ;;  %s118_s3 = inlined_call_operand.vmem [shape: f32[16,32], index: 3, kind: output, shape index: {}]  }
   0x1   :  { %v72_v0 = vld [vmem:[%s115_s1 + $0x8] sm:$0xff]  ;;  %v71_v1 = vld [vmem:[%s115_s1] sm:$0xff] }
   0x2   :  { %48 = vmatpush.bf16.msra.mxu0 %v72_v0  ;;  %v15_v2 = vld [vmem:[%s116_s0] sm:$0xff]  ;;  %v16_v3 = vld [vmem:[%s116_s0 + $0x8] sm:$0xff] }
   0x3   :  { %v17_v4 = vpack.c.bf16 %v16_v3, %v15_v2  ;;  %v73_v5 = vld [vmem:[%s117_s2] ss:$0 sm:$0xff] }
   0x6   :  { %49 = vmatpush.bf16.msra.mxu0 %v71_v1 }
   0x9   :  { %70 = vmatmul.msk.bf16.vlgmr.msra.gmra.mxu0 %vm38_vm0, %v17_v4 }
  0x86   :  { %v51_v6 = vpop.f32.mrf.mxu0 }
  0x87   :  { %v52_v7 = vadd.f32 %v73_v5, %v51_v6 }
  0x89   :  { %56 = vst.msk [vmem:[%s118_s3] sm:$0xff] %vm38_vm0, %v52_v7 }
  0x8e   :  { %v53_v8 = vpop.f32.mrf.mxu0 }
  0x8f   :  { %v54_v9 = vadd.f32 %v73_v5, %v53_v8 }
  0x91   :  { %57 = vst.msk [vmem:[%s118_s3 + $0x8] sm:$0xff] %vm38_vm0, %v54_v9 }

// kernel: hybrid_modality_projector_forward.31
= control target key start
LH: loop header
LB: loop body
LE: loop exit
PB: predicated region body
PF: predicated region fallthrough
CT: control target
= control target key end

     0   :  { %vm38_vm0 = vcmask 261120   ;;  %vm56_vm1 = vcmask 523264   ;;  %s116_s1 = inlined_call_operand.vmem [shape: bf16[32,64], index: 1, kind: input, shape index: {}]   ;;  %s117_s0 = inlined_call_operand.vmem [shape: f32[16,32], index: 0, kind: input, shape index: {}]   ;;  %s118_s2 = inlined_call_operand.vmem [shape: f32[1,64], index: 2, kind: input, shape index: {}]   ;;  %s119_s3 = inlined_call_operand.vmem [shape: f32[16,64], index: 3, kind: output, shape index: {}]  }
   0x1   :  { %v73_v0 = vld [vmem:[%s116_s1 + $0x8] sm:$0xff]  ;;  %v72_v1 = vld [vmem:[%s116_s1] sm:$0xff] }
   0x2   :  { %48 = vmatpush.bf16.msra.mxu0 %v73_v0  ;;  %v15_v2 = vld [vmem:[%s117_s0] sm:$0xff]  ;;  %v16_v3 = vld [vmem:[%s117_s0 + $0x8] sm:$0xff] }
   0x3   :  { %v17_v4 = vpack.c.bf16 %v16_v3, %v15_v2  ;;  %v74_v5 = vld [vmem:[%s118_s2] ss:$0 sm:$0xff] }
   0x6   :  { %49 = vmatpush.bf16.msra.mxu0 %v72_v1 }
   0x9   :  { %71 = vmatmul.msk.bf16.vlgmr.msra.gmra.mxu0 %vm38_vm0, %v17_v4 }
  0x86   :  { %v51_v6 = vpop.f32.mrf.mxu0 }
  0x87   :  { %v52_v7 = vadd.f32 %v74_v5, %v51_v6 }
  0x89   :  { %57 = vst.msk [vmem:[%s119_s3] sm:$0xff] %vm56_vm1, %v52_v7 }
  0x8e   :  { %v53_v8 = vpop.f32.mrf.mxu0 }
  0x8f   :  { %v54_v9 = vadd.f32 %v74_v5, %v53_v8 }
  0x91   :  { %58 = vst.msk [vmem:[%s119_s3 + $0x8] sm:$0xff] %vm56_vm1, %v54_v9 }

// kernel: hybrid_modality_projector_forward.32
= control target key start
LH: loop header
LB: loop body
LE: loop exit
PB: predicated region body
PF: predicated region fallthrough
CT: control target
= control target key end

     0   :  { %s884_s9 = smov 0   ;;  %s886_s10 = smov 0   ;;  %s1025_s0 = inlined_call_operand.vmem [shape: f32[2,8,32], index: 0, kind: input, shape index: {}]   ;;  %s1026_s1 = inlined_call_operand.vmem [shape: f32[2,8,64], index: 1, kind: input, shape index: {}]   ;;  %s1027_s2 = inlined_call_operand.vmem [shape: f32[2,8,32], index: 2, kind: output, shape index: {}]  }
   0x1   :  { %s888_s11 = smov 0  }
   0x2 LB: > { %s31_s12 = sadd.s32 1, %s850_s10  ;;  %p754_p0 = scmp.ge.s32.totalorder %s854_s11, 1  ;;  %s854_s11 = sphi %s888_s11, %s12_s11   ;;  %s850_s10 = sphi %s886_s10, %s1029_s10   ;;  %s846_s9 = sphi %s884_s9, %s1028_s9  }
   0x3   : > { %p33_p1 = scmp.ge.s32.totalorder %s31_s12, 2  ;;  %p151_p2 = scmp.lt.s32.totalorder %s854_s11, 3 }
   0x5   : > { %s1031_s12 = smov (%p33_p1, %s31_s12), 0  ;;  %p152_p3 = pnand %p754_p0, %p151_p2 }
   0x6   : > { %p184_p4 = scmp.lt.s32.totalorder (!%p152_p3), %s846_s9, 1  ;;  %s857_s20 = smov (!%p152_p3), 96  }
   0x7   : > { %155 = sbr.rel (%p152_p3) target bundleno = 1188 (0x4a4), region = 28  ;;  %s858_s21 = smov (!%p152_p3), 112  }
   0x8   : > { %s859_s22 = smov (!%p152_p3), 120   ;;  %s860_s23 = smov (!%p152_p3), 104  }
   0x9   : > { %s863_s24 = smov (!%p152_p3), 88   ;;  %s864_s25 = smov (!%p152_p3), 80  }
   0xa   : > { %s865_s26 = smov (!%p152_p3), 72   ;;  %s866_s27 = smov (!%p152_p3), 8  }
   0xb   : > { %s867_s28 = smov (!%p152_p3), 16   ;;  %s868_s29 = smov (!%p152_p3), 24  }
   0xc   : > { %s1033_s9 = smov (!%p184_p4, %s846_s9), 1  ;;  %vm225_vm0 = vcmask 64512   ;;  %vm210_vm1 = vcmask 7168   ;;  %v856_v5 = vmov -inf   ;;  %v861_v10 = vmov 0  }
   0xd   : > { %s902_s13 = sshll.u32 %s1033_s9, 3  ;;  %211 = vst.msk [vmem:[#allocation2] sm:$0xff] %vm210_vm1, %v856_v5  ;;  %805 = vset.pattern.permute.xlu1 %v861_v10  ;;  %806 = vset.pattern.permute.xlu2 %v861_v10  ;;  %v862_v11 = vmov 0.0   ;;  %vm284_vm2 = vcmask 1043456   ;;  %vm219_vm3 = vcmask 261120   ;;  %vm388_vm4 = vcmask 130112  }
   0xe   : > { %s197_s16 = scalar_lea.vmem %s1026_s1, %s902_s13  ;;  %s190_s19 = scalar_lea.vmem %s1025_s0, %s902_s13  ;;  %212 = vst.msk [vmem:[#allocation2 + $0x8] sm:$0xff] %vm210_vm1, %v856_v5  ;;  %807 = vset.pattern.permute.xlu0 %v861_v10  ;;  %vm474_vm5 = vcmask 195712   ;;  %vm560_vm6 = vcmask 261312  }
   0xf   : > { %v222_v0 = vld [vmem:[%s197_s16] sm:$0xff]  ;;  %213 = vst.msk [vmem:[#allocation2 + $0x10] sm:$0xff] %vm210_vm1, %v856_v5  ;;  %s1006_s4 = scalar_lea.vmem %s1027_s2, %s902_s13 }
  0x10   : > { %v908_v1 = vpack.c.bf16 %v222_v0, %v222_v0  ;;  %v221_v3 = vld [vmem:[%s190_s19] sm:$0xff]  ;;  %214 = vst.msk [vmem:[#allocation2 + $0x18] sm:$0xff] %vm210_vm1, %v856_v5 }
  0x11   : > { %v223_v4 = vpack.c.bf16 %v221_v3, %v221_v3  ;;  %215 = vst.msk [vmem:[#allocation3] sm:$0xff] %vm210_vm1, %v862_v11 }
  0x12   : > { %v230_v2 = vsel %vm225_vm0, %v908_v1, 0  ;;  %279 = vrot.lane.b32.xlu2 %v908_v1, %s857_s20  ;;  %216 = vst.msk [vmem:[#allocation3 + $0x8] sm:$0xff] %vm210_vm1, %v862_v11 }
  0x13   : > { %239 = vmatpush.bf16.xpose.msra.mxu0 %v230_v2  ;;  %217 = vst.msk [vmem:[#allocation3 + $0x10] sm:$0xff] %vm210_vm1, %v862_v11 }
  0x14   : > { %218 = vst.msk [vmem:[#allocation3 + $0x18] sm:$0xff] %vm210_vm1, %v862_v11  ;;  %v934_v12 = vld [vmem:[#allocation2] sm:$0xff] }
  0x15   : > { %v330_v46 = vld [vmem:[#allocation2 + $0x8] sm:$0xff]  ;;  %220 = vst.msk [vmem:[#allocation4] sm:$0xff] %vm219_vm3, %v862_v11 }
  0x16   : > { %v416_v53 = vld [vmem:[#allocation2 + $0x10] sm:$0xff] }
  0x17   : > { %v502_v49 = vld [vmem:[#allocation2 + $0x18] sm:$0xff] }
  0x1a   : > { %758 = vmatmul.msk.bf16.vlgmr.msra.gmra.mxu0 %vm225_vm0, %v223_v4  ;;  %393 = vrot.lane.b32.xlu2 %v908_v1, %s858_s21 }
  0x22   : > { %479 = vrot.lane.b32.xlu2 %v908_v1, %s860_s23 }
  0x6c   : > { %v280_v16 = vpop.permute.xlu2 %279 }
  0x6d   : > { %v286_v20 = vsel %vm284_vm2, %v280_v16, 0 }
  0x6e   : > { %295 = vmatpush.bf16.msra.mxu1 %v286_v20 }
  0x74   : > { %v394_v19 = vpop.permute.xlu2 %393 }
  0x75   : > { %v399_v23 = vsel %vm225_vm0, %v394_v19, 0 }
  0x76   : > { %408 = vmatpush.bf16.xpose.msrb.mxu1 %v399_v23 }
  0x7c   : > { %v480_v21 = vpop.permute.xlu2 %479 }
  0x7d   : > { %v485_v22 = vsel %vm225_vm0, %v480_v21, 0 }
  0x7e   : > { %494 = vmatpush.bf16.xpose.msrb.mxu0 %v485_v22 }
  0x97   : > { %v241_v6 = vpop.f32.mrf.mxu0 }
  0x98   : > { %v245_v7 = vmul.f32 0.35355338, %v241_v6 }
  0x9a   : > { %v247_v8 = vsel %vm225_vm0, %v245_v7, -inf }
  0x9b   : > { %248 = vmax.xlane.f32.xlu0 %v247_v8 }
  0x9f   : > { %v243_v9 = vpop.f32.mrf.mxu0 }
  0xaf   : > { %307 = vrot.lane.b32.xlu0 %v908_v1, %s859_s22 }
 0x10e   : > { %v249_v13 = vpop.xlane.xlu0 %248 }
 0x10f   : > { %v937_v14 = vmax.f32 %v934_v12, %v249_v13 }
 0x111   : > { %v251_v15 = vsub.f32 %v934_v12, %v937_v14  ;;  %303 = vst.msk [vmem:[#allocation2] sm:$0xff] %vm210_vm1, %v937_v14  ;;  %256 = vperm.xlu1 %805, %v937_v14  }
 0x113   : > { %v252_v55 = vmul.f32 1.442695, %v251_v15  ;;  %v270_v15 = vld [vmem:[#allocation4] sm:$0xff] }
 0x119   : > { %305 = vrot.lane.b32.xlu1 %v223_v4, %s859_s22 }
 0x121   : > { %391 = vrot.lane.b32.xlu1 %v223_v4, %s858_s21  ;;  %v308_v17 = vpop.permute.xlu0 %307 }
 0x122   : > { %v313_v18 = vsel %vm225_vm0, %v308_v17, 0 }
 0x123   : > { %322 = vmatpush.bf16.xpose.msra.mxu2 %v313_v18 }
 0x129   : > { %477 = vrot.lane.b32.xlu1 %v223_v4, %s860_s23 }
 0x183   : > { %v257_v24 = vpop.permute.xlu1 %256 }
 0x184   : > { %v259_v25 = vsub.f32 %v245_v7, %v257_v24 }
 0x186   : > { %v260_v26 = vmul.f32 1.442695, %v259_v25 }
 0x188   : > { %808 = vpow2.f32 %v260_v26 }
 0x189   : > { %810 = vpow2.f32 %v252_v55 }
 0x18b   : > { %v306_v27 = vpop.permute.xlu1 %305 }
 0x18c   : > { %760 = vmatmul.msk.bf16.vlgmr.msra.gmra.mxu2 %vm225_vm0, %v306_v27 }
 0x18e   : > { %v809_v28 = vpop.eup %808 }
 0x18f   : > { %v277_v29 = vpack.c.bf16 %v809_v28, %v809_v28  ;;  %v811_v59 = vpop.eup %810  ;;  %v264_v61 = vsel %vm225_vm0, %v809_v28, 0.0 }
 0x191   : > { %759 = vmatmul.msk.bf16.vlgmr.msra.gmra.mxu1 %vm225_vm0, %v277_v29 }
 0x193   : > { %v392_v30 = vpop.permute.xlu1 %391 }
 0x19b   : > { %v478_v31 = vpop.permute.xlu1 %477 }
 0x19c   : > { %764 = vmatmul.msk.bf16.vlgmr.msrb.gmra.mxu0 %vm225_vm0, %v478_v31 }
 0x1a1   : > { %762 = vmatmul.msk.bf16.vlgmr.msrb.gmra.mxu1 %vm225_vm0, %v392_v30  ;;  %v262_v30 = vld [vmem:[#allocation3] sm:$0xff] }
 0x1a2   : > { %v263_v31 = vmul.f32 %v811_v59, %v262_v30 }
 0x20e   : > { %v952_v32 = vpop.f32.mrf.mxu1 }
 0x20f   : > { %v324_v33 = vpop.f32.mrf.mxu2 }
 0x210   : > { %v954_v34 = vmul.f32 0.35355338, %v324_v33 }
 0x212   : > { %v331_v35 = vsel %vm225_vm0, %v954_v34, -inf }
 0x213   : > { %332 = vmax.xlane.f32.xlu2 %v331_v35  ;;  %v347_v35 = vld [vmem:[#allocation3 + $0x8] sm:$0xff] }
 0x216   : > { %v299_v36 = vpop.f32.mrf.mxu1 }
 0x217   : > { %v326_v37 = vpop.f32.mrf.mxu2 }
 0x219   : > { %v496_v38 = vpop.f32.mrf.mxu0 }
 0x21a   : > { %v958_v39 = vmul.f32 0.35355338, %v496_v38 }
 0x21c   : > { %v503_v40 = vsel %vm225_vm0, %v958_v39, -inf }
 0x21d   : > { %504 = vmax.xlane.f32.xlu1 %v503_v40 }
 0x21e   : > { %v410_v41 = vpop.f32.mrf.mxu1 }
 0x21f   : > { %v962_v42 = vmul.f32 0.35355338, %v410_v41 }
 0x221   : > { %v417_v43 = vsel %vm225_vm0, %v962_v42, -inf  ;;  %v498_v44 = vpop.f32.mrf.mxu0 }
 0x222   : > { %418 = vmax.xlane.f32.xlu0 %v417_v43 }
 0x226   : > { %v412_v45 = vpop.f32.mrf.mxu1 }
 0x236   : > { %362 = vrot.lane.b32.xlu0 %v908_v1, %s863_s24 }
 0x286   : > { %v333_v47 = vpop.xlane.xlu2 %332 }
 0x287   : > { %v334_v48 = vmax.f32 %v330_v46, %v333_v47 }
 0x289   : > { %390 = vst.msk [vmem:[#allocation2 + $0x8] sm:$0xff] %vm210_vm1, %v334_v48  ;;  %340 = vperm.xlu2 %806, %v334_v48   ;;  %v335_v57 = vsub.f32 %v330_v46, %v334_v48 }
 0x28b   : > { %v336_v58 = vmul.f32 1.442695, %v335_v57 }
 0x28d   : > { %812 = vpow2.f32 %v336_v58 }
 0x290   : > { %v505_v50 = vpop.xlane.xlu1 %504 }
 0x291   : > { %v506_v51 = vmax.f32 %v502_v49, %v505_v50  ;;  %448 = vrot.lane.b32.xlu2 %v908_v1, %s864_s25 }
 0x293   : > { %v507_v52 = vsub.f32 %v502_v49, %v506_v51  ;;  %562 = vst.msk [vmem:[#allocation2 + $0x18] sm:$0xff] %vm210_vm1, %v506_v51  ;;  %512 = vperm.xlu0 %807, %v506_v51   ;;  %v813_v60 = vpop.eup %812 }
 0x294   : > { %v348_v36 = vmul.f32 %v813_v60, %v347_v35 }
 0x295   : > { %v419_v54 = vpop.xlane.xlu0 %418 }
 0x296   : > { %v420_v56 = vmax.f32 %v416_v53, %v419_v54 }
 0x298   : > { %476 = vst.msk [vmem:[#allocation2 + $0x10] sm:$0xff] %vm210_vm1, %v420_v56  ;;  %426 = vperm.xlu1 %805, %v420_v56   ;;  %v421_v62 = vsub.f32 %v416_v53, %v420_v56 }
 0x299   : > { %534 = vrot.lane.b32.xlu2 %v908_v1, %s865_s26  ;;  %v508_v1 = vmul.f32 1.442695, %v507_v52 }
 0x29a   : > { %v422_v2 = vmul.f32 1.442695, %v421_v62 }
 0x29c   : > { %814 = vpow2.f32 %v422_v2 }
 0x29d   : > { %816 = vpow2.f32 %v508_v1 }
 0x2a1   : > { %273 = vperm.xlu2 %806, %v811_v59  }
 0x2a2   : > { %v978_v3 = vpop.eup %814 }
 0x2a3   : > { %v817_v4 = vpop.eup %816 }
 0x2a8   : > { %v363_v63 = vpop.permute.xlu0 %362 }
 0x2a9   : > { %357 = vperm.xlu2 %806, %v813_v60   ;;  %v368_v0 = vsel %vm284_vm2, %v363_v63, 0 }
 0x2aa   : > { %377 = vmatpush.bf16.msra.mxu3 %v368_v0  ;;  %v433_v0 = vld [vmem:[#allocation3 + $0x10] sm:$0xff] }
 0x2c2   : > { %265 = vadd.xlane.f32.xlu1 %v264_v61 }
 0x2db   : > { %443 = vperm.xlu1 %805, %v978_v3  }
 0x2e3   : > { %v341_v5 = vpop.permute.xlu2 %340  ;;  %529 = vperm.xlu1 %805, %v817_v4  }
 0x2e4   : > { %v343_v6 = vsub.f32 %v954_v34, %v341_v5  ;;  %v434_v5 = vmul.f32 %v978_v3, %v433_v0 }
 0x2e6   : > { %v344_v7 = vmul.f32 1.442695, %v343_v6 }
 0x2e8   : > { %818 = vpow2.f32 %v344_v7 }
 0x2eb   : > { %v449_v8 = vpop.permute.xlu2 %448 }
 0x2ec   : > { %v454_v13 = vsel %vm284_vm2, %v449_v8, 0 }
 0x2ed   : > { %463 = vmatpush.bf16.msrb.mxu3 %v454_v13 }
 0x2ee   : > { %v819_v9 = vpop.eup %818 }
 0x2ef   : > { %v349_v10 = vsel %vm225_vm0, %v819_v9, 0.0  ;;  %v361_v12 = vpack.c.bf16 %v819_v9, %v819_v9 }
 0x2f0   : > { %350 = vadd.xlane.f32.xlu0 %v349_v10 }
 0x2f1   : > { %761 = vmatmul.msk.bf16.vlgmr.msra.gmra.mxu3 %vm225_vm0, %v361_v12 }
 0x2f3   : > { %v535_v11 = vpop.permute.xlu2 %534 }
 0x2f4   : > { %v540_v14 = vsel %vm284_vm2, %v535_v11, 0 }
 0x2f5   : > { %549 = vmatpush.bf16.msrb.mxu2 %v540_v14 }
 0x2fb   : > { %v274_v16 = vpop.permute.xlu2 %273 }
 0x2fc   : > { %v276_v17 = vmul.f32 %v274_v16, %v270_v15 }
 0x2fe   : > { %v301_v18 = vadd.f32 %v952_v32, %v276_v17 }
 0x300   : > { %302 = vst.msk [vmem:[#allocation4] sm:$0xff] %vm225_vm0, %v301_v18 }
 0x303   : > { %v358_v52 = vpop.permute.xlu2 %357 }
 0x305   : > { %v513_v19 = vpop.permute.xlu0 %512 }
 0x306   : > { %v515_v20 = vsub.f32 %v958_v39, %v513_v19 }
 0x307   : > { %v354_v53 = vld [vmem:[#allocation4] sm:$0xff] }
 0x308   : > { %v516_v21 = vmul.f32 1.442695, %v515_v20  ;;  %v360_v54 = vmul.f32 %v358_v52, %v354_v53 }
 0x30a   : > { %820 = vpow2.f32 %v516_v21  ;;  %v427_v22 = vpop.permute.xlu1 %426 }
 0x30b   : > { %v429_v23 = vsub.f32 %v962_v42, %v427_v22  ;;  %v519_v42 = vld [vmem:[#allocation3 + $0x18] sm:$0xff] }
 0x30c   : > { %v520_v43 = vmul.f32 %v817_v4, %v519_v42 }
 0x30d   : > { %v430_v24 = vmul.f32 1.442695, %v429_v23 }
 0x30f   : > { %822 = vpow2.f32 %v430_v24 }
 0x310   : > { %v821_v25 = vpop.eup %820 }
 0x311   : > { %v521_v26 = vsel %vm225_vm0, %v821_v25, 0.0  ;;  %v533_v27 = vpack.c.bf16 %v821_v25, %v821_v25 }
 0x312   : > { %522 = vadd.xlane.f32.xlu0 %v521_v26 }
 0x313   : > { %765 = vmatmul.msk.bf16.vlgmr.msrb.gmra.mxu2 %vm225_vm0, %v533_v27 }
 0x315   : > { %v823_v28 = vpop.eup %822 }
 0x316   : > { %v447_v29 = vpack.c.bf16 %v823_v28, %v823_v28  ;;  %v435_v48 = vsel %vm225_vm0, %v823_v28, 0.0 }
 0x318   : > { %763 = vmatmul.msk.bf16.vlgmr.msrb.gmra.mxu3 %vm225_vm0, %v447_v29 }
 0x335   : > { %v266_v32 = vpop.xlane.xlu1 %265 }
 0x336   : > { %v267_v33 = vadd.f32 %v266_v32, %v263_v31 }
 0x338   : > { %269 = vst.msk [vmem:[#allocation3] sm:$0xff] %vm210_vm1, %v267_v33 }
 0x33f   : > { %v567_v34 = vld [vmem:[#allocation3] sm:$0xff] }
 0x340   : > { %570 = vperm.xlu1 %805, %v567_v34  }
 0x34d   : > { %v444_v57 = vpop.permute.xlu1 %443 }
 0x355   : > { %v530_v58 = vpop.permute.xlu1 %529 }
 0x363   : > { %v351_v37 = vpop.xlane.xlu0 %350 }
 0x364   : > { %v352_v38 = vadd.f32 %v351_v37, %v348_v36 }
 0x366   : > { %353 = vst.msk [vmem:[#allocation3 + $0x8] sm:$0xff] %vm210_vm1, %v352_v38 }
 0x36d   : > { %v590_v39 = vld [vmem:[#allocation3 + $0x8] sm:$0xff] }
 0x36e   : > { %593 = vperm.xlu0 %807, %v590_v39  }
 0x374   : > { %v379_v40 = vpop.f32.mrf.mxu3 }
 0x375   : > { %384 = vrot.lane.b32.xlu2 %v379_v40, %s866_s27 }
 0x37c   : > { %v381_v41 = vpop.f32.mrf.mxu3 }
 0x385   : > { %v523_v44 = vpop.xlane.xlu0 %522 }
 0x386   : > { %v524_v45 = vadd.f32 %v523_v44, %v520_v43 }
 0x388   : > { %525 = vst.msk [vmem:[#allocation3 + $0x18] sm:$0xff] %vm210_vm1, %v524_v45 }
 0x38f   : > { %v636_v51 = vld [vmem:[#allocation3 + $0x18] sm:$0xff] }
 0x396   : > { %v551_v46 = vpop.f32.mrf.mxu2 }
 0x39b   : > { %v465_v47 = vpop.f32.mrf.mxu3 }
 0x39c   : > { %470 = vrot.lane.b32.xlu0 %v465_v47, %s867_s28 }
 0x39e   : > { %v553_v49 = vpop.f32.mrf.mxu2  ;;  %436 = vadd.xlane.f32.xlu2 %v435_v48 }
 0x3a3   : > { %v467_v50 = vpop.f32.mrf.mxu3 }
 0x3a4   : > { %639 = vperm.xlu0 %807, %v636_v51  }
 0x3b2   : > { %v571_v59 = vpop.permute.xlu1 %570 }
 0x3b3   : > { %824 = vrcp.f32 %v571_v59  ;;  %vm578_vm9 = vweird.f32 %v571_v59  ;;  %v584_v20 = vand.u32 2147483648, %v571_v59  ;;  %v582_v22 = vand.u32 2147483647, %v571_v59 }
 0x3b5   : > { %v585_v26 = vor.u32 1.1754944e-38, %v584_v20  ;;  %vm583_vm13 = vcmp.eq.f32.partialorder %v582_v22, 8.507059e+37 }
 0x3b6   : > { %556 = vrot.lane.b32.xlu2 %v551_v46, %s868_s29 }
 0x3b9   : > { %v825_v62 = vpop.eup %824 }
 0x3ba   : > { %v574_v6 = vmul.f32 %v825_v62, %v571_v59  ;;  %vm579_vm7 = vweird.f32 %v825_v62 }
 0x3bb   : > { %vm580_vm10 = vmor %vm578_vm9, %vm579_vm7 }
 0x3bc   : > { %v575_v10 = vsub.f32 1.0, %v574_v6 }
 0x3be   : > { %v576_v13 = vmul.f32 %v825_v62, %v575_v10 }
 0x3c0   : > { %v577_v3 = vadd.f32 %v825_v62, %v576_v13 }
 0x3c2   : > { %v581_v24 = vsel %vm580_vm10, %v825_v62, %v577_v3 }
 0x3c3   : > { %v586_v28 = vsel %vm583_vm13, %v585_v26, %v581_v24 }
 0x3cf   : > { %v385_v55 = vpop.permute.xlu2 %384 }
 0x3d0   : > { %v387_v56 = vadd.f32 %v385_v55, %v360_v54 }
 0x3d2   : > { %389 = vst.msk [vmem:[#allocation4] sm:$0xff] %vm388_vm4, %v387_v56 }
 0x3d9   : > { %v440_v61 = vld [vmem:[#allocation4] sm:$0xff] }
 0x3da   : > { %v446_v63 = vmul.f32 %v444_v57, %v440_v61 }
 0x3e0   : > { %v594_v60 = vpop.permute.xlu0 %593 }
 0x3e1   : > { %826 = vrcp.f32 %v594_v60  ;;  %v607_v21 = vand.u32 2147483648, %v594_v60  ;;  %vm601_vm11 = vweird.f32 %v594_v60  ;;  %v605_v23 = vand.u32 2147483647, %v594_v60 }
 0x3e3   : > { %v608_v27 = vor.u32 1.1754944e-38, %v607_v21  ;;  %vm606_vm14 = vcmp.eq.f32.partialorder %v605_v23, 8.507059e+37 }
 0x3e7   : > { %v827_v2 = vpop.eup %826 }
 0x3e8   : > { %v597_v7 = vmul.f32 %v827_v2, %v594_v60  ;;  %vm602_vm8 = vweird.f32 %v827_v2 }
 0x3e9   : > { %vm603_vm12 = vmor %vm601_vm11, %vm602_vm8 }
 0x3ea   : > { %v598_v12 = vsub.f32 1.0, %v597_v7 }
 0x3ec   : > { %v599_v14 = vmul.f32 %v827_v2, %v598_v12 }
 0x3ee   : > { %v600_v19 = vadd.f32 %v827_v2, %v599_v14 }
 0x3f0   : > { %v604_v25 = vsel %vm603_vm12, %v827_v2, %v600_v19 }
 0x3f1   : > { %v609_v29 = vsel %vm606_vm14, %v608_v27, %v604_v25 }
 0x40e   : > { %v471_v1 = vpop.permute.xlu0 %470 }
 0x40f   : > { %v473_v4 = vadd.f32 %v471_v1, %v446_v63 }
 0x411   : > { %475 = vst.msk [vmem:[#allocation4] sm:$0xff] %vm474_vm5, %v473_v4  ;;  %v437_v8 = vpop.xlane.xlu2 %436 }
 0x412   : > { %v438_v9 = vadd.f32 %v437_v8, %v434_v5 }
 0x414   : > { %439 = vst.msk [vmem:[#allocation3 + $0x10] sm:$0xff] %vm210_vm1, %v438_v9 }
 0x416   : > { %v640_v33 = vpop.permute.xlu0 %639 }
 0x417   : > { %828 = vrcp.f32 %v640_v33  ;;  %v653_v42 = vand.u32 2147483648, %v640_v33  ;;  %vm647_vm1 = vweird.f32 %v640_v33  ;;  %v651_v44 = vand.u32 2147483647, %v640_v33 }
 0x418   : > { %v526_v11 = vld [vmem:[#allocation4] sm:$0xff] }
 0x419   : > { %v557_v15 = vpop.permute.xlu2 %556  ;;  %v532_v16 = vmul.f32 %v530_v58, %v526_v11  ;;  %v654_v49 = vor.u32 1.1754944e-38, %v653_v42 }
 0x41b   : > { %v559_v17 = vadd.f32 %v557_v15, %v532_v16  ;;  %v613_v18 = vld [vmem:[#allocation3 + $0x10] sm:$0xff] }
 0x41c   : > { %616 = vperm.xlu1 %805, %v613_v18  }
 0x41d   : > { %561 = vst.msk [vmem:[#allocation4] sm:$0xff] %vm560_vm6, %v559_v17  ;;  %v829_v34 = vpop.eup %828 }
 0x41e   : > { %v643_v35 = vmul.f32 %v829_v34, %v640_v33  ;;  %vm648_vm15 = vweird.f32 %v829_v34 }
 0x420   : > { %v644_v37 = vsub.f32 1.0, %v643_v35 }
 0x422   : > { %v645_v38 = vmul.f32 %v829_v34, %v644_v37 }
 0x424   : > { %v566_v30 = vld [vmem:[#allocation4] sm:$0xff]  ;;  %v646_v41 = vadd.f32 %v829_v34, %v645_v38 }
 0x425   : > { %v587_v31 = vmul.f32 %v586_v28, %v566_v30  ;;  %v610_v32 = vmul.f32 %v609_v29, %v566_v30 }
 0x427   : > { %588 = vst.msk [vmem:[%s1006_s4] sm:$0xff] %vm225_vm0, %v587_v31  ;;  %vm649_vm0 = vmor %vm647_vm1, %vm648_vm15 }
 0x428   : > { %611 = vst.msk [vmem:[%s1006_s4] sm:$0xff] %vm388_vm4, %v610_v32  ;;  %v650_v48 = vsel %vm649_vm0, %v829_v34, %v646_v41  ;;  %vm652_vm4 = vcmp.eq.f32.partialorder %v651_v44, 8.507059e+37 }
 0x429   : > { %v655_v52 = vsel %vm652_vm4, %v654_v49, %v650_v48 }
 0x42a   : > { %v656_v56 = vmul.f32 %v655_v52, %v566_v30 }
 0x48e   : > { %v617_v36 = vpop.permute.xlu1 %616 }
 0x48f   : > { %830 = vrcp.f32 %v617_v36  ;;  %v630_v45 = vand.u32 2147483648, %v617_v36  ;;  %v628_v47 = vand.u32 2147483647, %v617_v36  ;;  %vm624_vm3 = vweird.f32 %v617_v36 }
 0x491   : > { %v631_v51 = vor.u32 1.1754944e-38, %v630_v45  ;;  %vm629_vm8 = vcmp.eq.f32.partialorder %v628_v47, 8.507059e+37 }
 0x495   : > { %v831_v39 = vpop.eup %830 }
 0x496   : > { %v620_v40 = vmul.f32 %v831_v39, %v617_v36  ;;  %vm625_vm2 = vweird.f32 %v831_v39 }
 0x497   : > { %vm626_vm7 = vmor %vm624_vm3, %vm625_vm2 }
 0x498   : > { %v621_v43 = vsub.f32 1.0, %v620_v40 }
 0x49a   : > { %v622_v46 = vmul.f32 %v831_v39, %v621_v43 }
 0x49c   : > { %v623_v50 = vadd.f32 %v831_v39, %v622_v46 }
 0x49e   : > { %v627_v53 = vsel %vm626_vm7, %v831_v39, %v623_v50 }
 0x49f   : > { %v632_v54 = vsel %vm629_vm8, %v631_v51, %v627_v53 }
 0x4a0   : > { %v633_v55 = vmul.f32 %v632_v54, %v566_v30 }
 0x4a2   : > { %634 = vst.msk [vmem:[%s1006_s4] sm:$0xff] %vm474_vm5, %v633_v55 }
 0x4a3   : > { %657 = vst.msk [vmem:[%s1006_s4] sm:$0xff] %vm560_vm6, %v656_v56 }
 0x4a4 PF: > { %s12_s11 = sadd.s32 1, %s854_s11   ;;  %s1028_s9 = smov %s850_s10 }
 0x4a5   : > { %p9_p5 = scmp.ge.s32.totalorder %s12_s11, 4   ;;  %s1029_s10 = smov %s1031_s12 }
 0x4a7   :  { %11 = sbr.rel (!%p9_p5) target bundleno = 2 (0x2), region = 75 }

// kernel: hybrid_modality_projector_forward.34
= control target key start
LH: loop header
LB: loop body
LE: loop exit
PB: predicated region body
PF: predicated region fallthrough
CT: control target
= control target key end

     0   :  { %vm38_vm0 = vcmask 261120   ;;  %s222_s1 = inlined_call_operand.vmem [shape: bf16[32,128], index: 1, kind: input, shape index: {}]   ;;  %s223_s0 = inlined_call_operand.vmem [shape: f32[16,32], index: 0, kind: input, shape index: {}]   ;;  %s224_s2 = inlined_call_operand.vmem [shape: f32[1,128], index: 2, kind: input, shape index: {}]   ;;  %s225_s3 = inlined_call_operand.vmem [shape: f32[16,128], index: 3, kind: output, shape index: {}]  }
   0x1   :  { %v162_v0 = vld [vmem:[%s222_s1 + $0x8] sm:$0xff]  ;;  %v161_v1 = vld [vmem:[%s222_s1] sm:$0xff] }
   0x2   :  { %48 = vmatpush.bf16.msra.mxu0 %v162_v0  ;;  %v15_v2 = vld [vmem:[%s223_s0] sm:$0xff]  ;;  %v16_v3 = vld [vmem:[%s223_s0 + $0x8] sm:$0xff] }
   0x3   :  { %v17_v4 = vpack.c.bf16 %v16_v3, %v15_v2  ;;  %v163_v5 = vld [vmem:[%s224_s2] ss:$0 sm:$0xff] }
   0x6   :  { %49 = vmatpush.bf16.msra.mxu0 %v161_v1 }
   0x9   :  { %158 = vmatmul.msk.bf16.vlgmr.msra.gmra.mxu0 %vm38_vm0, %v17_v4 }
  0x86   :  { %v51_v6 = vpop.f32.mrf.mxu0 }
  0x87   :  { %v203_v7 = vadd.f32 %v163_v5, %v51_v6 }
  0x89   :  { %v58_v8 = vmul.f32 0.70710677, %v203_v7 }
  0x8b   :  { %v60_v9 = vmul.f32 %v58_v8, %v58_v8 }
  0x8d   :  { %v61_v10 = vmin.f32 %v60_v9, 16.0 }
  0x8e   :  { %v53_v11 = vpop.f32.mrf.mxu0 }
  0x8f   :  { %v62_v12 = vmul.f32 2.1237322e-06, %v61_v10  ;;  %v73_v13 = vmul.f32 3.8918573e-05, %v61_v10  ;;  %v206_v14 = vadd.f32 %v163_v5, %v53_v11 }
  0x91   :  { %v63_v15 = vadd.f32 0.00028619796, %v62_v12  ;;  %v74_v16 = vadd.f32 0.001143296, %v73_v13  ;;  %v209_v17 = vmul.f32 0.70710677, %v206_v14 }
  0x92   :  { %v56_v13 = vmul.f32 0.5, %v203_v7 }
  0x93   :  { %v64_v18 = vmul.f32 %v63_v15, %v61_v10  ;;  %v75_v19 = vmul.f32 %v74_v16, %v61_v10  ;;  %v100_v20 = vmul.f32 %v209_v17, %v209_v17 }
  0x95   :  { %v76_v21 = vadd.f32 0.014752088, %v75_v19  ;;  %v65_v22 = vadd.f32 0.0036580483, %v64_v18  ;;  %v101_v23 = vmin.f32 %v100_v20, 16.0 }
  0x97   :  { %v77_v24 = vmul.f32 %v76_v21, %v61_v10  ;;  %v102_v25 = vmul.f32 2.1237322e-06, %v101_v23  ;;  %v113_v26 = vmul.f32 3.8918573e-05, %v101_v23  ;;  %v66_v28 = vmul.f32 %v65_v22, %v61_v10 }
  0x99   :  { %v78_v27 = vadd.f32 0.112945676, %v77_v24  ;;  %v103_v29 = vadd.f32 0.00028619796, %v102_v25  ;;  %v114_v30 = vadd.f32 0.001143296, %v113_v26 }
  0x9a   :  { %v67_v35 = vadd.f32 0.05243302, %v66_v28  ;;  %v57_v24 = vmul.f32 0.5, %v206_v14 }
  0x9b   :  { %v79_v31 = vmul.f32 %v78_v27, %v61_v10  ;;  %v104_v32 = vmul.f32 %v103_v29, %v101_v23  ;;  %v115_v33 = vmul.f32 %v114_v30, %v101_v23 }
  0x9c   :  { %v68_v41 = vmul.f32 %v67_v35, %v61_v10 }
  0x9d   :  { %v80_v34 = vadd.f32 0.4994258, %v79_v31  ;;  %v116_v36 = vadd.f32 0.014752088, %v115_v33  ;;  %v105_v38 = vadd.f32 0.0036580483, %v104_v32 }
  0x9e   :  { %v69_v45 = vadd.f32 0.18741608, %v68_v41 }
  0x9f   :  { %v81_v37 = vmul.f32 %v80_v34, %v61_v10  ;;  %v117_v39 = vmul.f32 %v116_v36, %v101_v23  ;;  %v106_v43 = vmul.f32 %v105_v38, %v101_v23 }
  0xa0   :  { %v70_v50 = vmul.f32 %v69_v45, %v61_v10 }
  0xa1   :  { %v82_v40 = vadd.f32 1.0, %v81_v37  ;;  %v118_v42 = vadd.f32 0.112945676, %v117_v39  ;;  %v107_v47 = vadd.f32 0.05243302, %v106_v43 }
  0xa2   :  { %v71_v56 = vadd.f32 1.1283791, %v70_v50 }
  0xa3   :  { %164 = vrcp.f32 %v82_v40  ;;  %v119_v44 = vmul.f32 %v118_v42, %v101_v23  ;;  %v108_v53 = vmul.f32 %v107_v47, %v101_v23  ;;  %v94_v55 = vand.u32 2147483648, %v82_v40 }
  0xa4   :  { %v92_v58 = vand.u32 2147483647, %v82_v40  ;;  %vm88_vm2 = vweird.f32 %v82_v40  ;;  %v72_v63 = vmul.f32 %v71_v56, %v58_v8 }
  0xa5   :  { %v120_v46 = vadd.f32 0.4994258, %v119_v44  ;;  %v109_v59 = vadd.f32 0.18741608, %v108_v53  ;;  %v95_v61 = vor.u32 1.1754944e-38, %v94_v55 }
  0xa6   :  { %vm93_vm4 = vcmp.eq.f32.partialorder %v92_v58, 8.507059e+37 }
  0xa7   :  { %v121_v48 = vmul.f32 %v120_v46, %v101_v23  ;;  %v110_v2 = vmul.f32 %v109_v59, %v101_v23 }
  0xa9   :  { %v165_v49 = vpop.eup %164  ;;  %v122_v52 = vadd.f32 1.0, %v121_v48  ;;  %v111_v10 = vadd.f32 1.1283791, %v110_v2 }
  0xaa   :  { %v84_v51 = vmul.f32 %v165_v49, %v82_v40  ;;  %vm89_vm1 = vweird.f32 %v165_v49 }
  0xab   :  { %166 = vrcp.f32 %v122_v52  ;;  %vm90_vm3 = vmor %vm88_vm2, %vm89_vm1  ;;  %v134_v9 = vand.u32 2147483648, %v122_v52  ;;  %v132_v12 = vand.u32 2147483647, %v122_v52  ;;  %vm128_vm6 = vweird.f32 %v122_v52 }
  0xac   :  { %v85_v54 = vsub.f32 1.0, %v84_v51  ;;  %v112_v19 = vmul.f32 %v111_v10, %v209_v17 }
  0xad   :  { %v135_v8 = vor.u32 1.1754944e-38, %v134_v9  ;;  %vm133_vm8 = vcmp.eq.f32.partialorder %v132_v12, 8.507059e+37 }
  0xae   :  { %v86_v57 = vmul.f32 %v165_v49, %v85_v54 }
  0xb0   :  { %v87_v60 = vadd.f32 %v165_v49, %v86_v57 }
  0xb1   :  { %v167_v62 = vpop.eup %166 }
  0xb2   :  { %v91_v0 = vsel %vm90_vm3, %v165_v49, %v87_v60  ;;  %v124_v3 = vmul.f32 %v167_v62, %v122_v52  ;;  %vm129_vm5 = vweird.f32 %v167_v62 }
  0xb3   :  { %v96_v1 = vsel %vm93_vm4, %v95_v61, %v91_v0  ;;  %vm130_vm7 = vmor %vm128_vm6, %vm129_vm5 }
  0xb4   :  { %v97_v4 = vmul.f32 %v96_v1, %v72_v63  ;;  %v125_v5 = vsub.f32 1.0, %v124_v3 }
  0xb6   :  { %v159_v6 = vclamps-f32 %v97_v4, 1.0  ;;  %v126_v11 = vmul.f32 %v167_v62, %v125_v5 }
  0xb8   :  { %v140_v15 = vadd.f32 1.0, %v159_v6  ;;  %v127_v16 = vadd.f32 %v167_v62, %v126_v11 }
  0xba   :  { %v142_v18 = vmul.f32 %v140_v15, %v56_v13  ;;  %v131_v20 = vsel %vm130_vm7, %v167_v62, %v127_v16 }
  0xbb   :  { %v136_v21 = vsel %vm133_vm8, %v135_v8, %v131_v20 }
  0xbc   :  { %144 = vst [vmem:[%s225_s3] sm:$0xff] %v142_v18  ;;  %v137_v22 = vmul.f32 %v136_v21, %v112_v19 }
  0xbe   :  { %v160_v23 = vclamps-f32 %v137_v22, 1.0 }
  0xc0   :  { %v141_v7 = vadd.f32 1.0, %v160_v23 }
  0xc2   :  { %v143_v25 = vmul.f32 %v141_v7, %v57_v24 }
  0xc4   :  { %145 = vst [vmem:[%s225_s3 + $0x8] sm:$0xff] %v143_v25 }

// kernel: hybrid_modality_projector_forward.35
= control target key start
LH: loop header
LB: loop body
LE: loop exit
PB: predicated region body
PF: predicated region fallthrough
CT: control target
= control target key end

     0   :  { %vm114_vm0 = vcmask 261120   ;;  %v240_v22 = vmov 32.0   ;;  %s346_s1 = inlined_call_operand.vmem [shape: bf16[128,32], index: 1, kind: input, shape index: {}]   ;;  %s347_s2 = inlined_call_operand.vmem [shape: f32[1,32], index: 2, kind: input, shape index: {}]   ;;  %s348_s0 = inlined_call_operand.vmem [shape: f32[16,128], index: 0, kind: input, shape index: {}]   ;;  %s349_s3 = inlined_call_operand.vmem [shape: f32[16,32], index: 3, kind: input, shape index: {}]   ;;  %s350_s6 = inlined_call_operand.vmem [shape: f32[16,32], index: 6, kind: output, shape index: {0}]   ;;  %s351_s4 = inlined_call_operand.vmem [shape: f32[1,32], index: 4, kind: input, shape index: {}]   ;;  %s352_s5 = inlined_call_operand.vmem [shape: f32[1,32], index: 5, kind: input, shape index: {}]   ;;  %s353_s7 = inlined_call_operand.vmem [shape: f32[16,32], index: 7, kind: output, shape index: {1}]  }
   0x1   :  { %v229_v0 = vld [vmem:[%s346_s1 + $0x38] sm:$0xff]  ;;  %v228_v1 = vld [vmem:[%s346_s1 + $0x30] sm:$0xff]  ;;  %v227_v2 = vld [vmem:[%s346_s1 + $0x28] sm:$0xff]  ;;  %234 = vrcp.f32 %v240_v22 }
   0x2   :  { %96 = vmatpush.bf16.msra.mxu0 %v229_v0  ;;  %v226_v3 = vld [vmem:[%s346_s1 + $0x20] sm:$0xff]  ;;  %v225_v4 = vld [vmem:[%s346_s1 + $0x18] sm:$0xff]  ;;  %v224_v5 = vld [vmem:[%s346_s1 + $0x10] sm:$0xff] }
   0x3   :  { %v223_v6 = vld [vmem:[%s346_s1 + $0x8] sm:$0xff]  ;;  %v222_v7 = vld [vmem:[%s346_s1] sm:$0xff] }
   0x4   :  { %v25_v8 = vld [vmem:[%s348_s0] sm:$0xff]  ;;  %v26_v9 = vld [vmem:[%s348_s0 + $0x8] sm:$0xff] }
   0x5   :  { %v27_v10 = vpack.c.bf16 %v26_v9, %v25_v8  ;;  %v231_v11 = vld [vmem:[%s347_s2] ss:$0 sm:$0xff]  ;;  %v111_v18 = vld [vmem:[%s349_s3 + $0x8] sm:$0xff] }
   0x6   :  { %97 = vmatpush.bf16.msra.mxu0 %v228_v1  ;;  %v110_v13 = vld [vmem:[%s349_s3] sm:$0xff] }
   0x7   :  { %v235_v23 = vpop.eup %234  ;;  %v232_v53 = vld [vmem:[%s351_s4] ss:$0 sm:$0xff] }
   0x8   :  { %v124_v24 = vmul.f32 32.0, %v235_v23  ;;  %vm128_vm1 = vweird.f32 %v235_v23  ;;  %v233_v56 = vld [vmem:[%s352_s5] ss:$0 sm:$0xff] }
   0xa   :  { %98 = vmatpush.bf16.msra.mxu0 %v227_v2  ;;  %v125_v25 = vsub.f32 1.0, %v124_v24 }
   0xc   :  { %v126_v26 = vmul.f32 %v235_v23, %v125_v25 }
   0xe   :  { %99 = vmatpush.bf16.msra.mxu0 %v226_v3  ;;  %v127_v27 = vadd.f32 %v235_v23, %v126_v26 }
  0x10   :  { %v129_v28 = vsel %vm128_vm1, %v235_v23, %v127_v27 }
  0x12   :  { %100 = vmatpush.bf16.msra.mxu0 %v225_v4 }
  0x16   :  { %101 = vmatpush.bf16.msra.mxu0 %v224_v5 }
  0x1a   :  { %102 = vmatpush.bf16.msra.mxu0 %v223_v6 }
  0x1e   :  { %103 = vmatpush.bf16.msra.mxu0 %v222_v7 }
  0x21   :  { %104 = vmatmul.bf16.vlgmr.msra.gmra.mxu0 %v27_v10 }
  0x9e   :  { %v105_v12 = vpop.f32.mrf.mxu0 }
  0x9f   :  { %v106_v14 = vadd.f32 %v231_v11, %v105_v12 }
  0xa1   :  { %v112_v15 = vadd.f32 %v110_v13, %v106_v14 }
  0xa3   :  { %115 = vst.msk [vmem:[%s350_s6] sm:$0xff] %vm114_vm0, %v112_v15  ;;  %v117_v16 = vsel %vm114_vm0, %v112_v15, 0.0 }
  0xa4   :  { %118 = vadd.xlane.f32.xlu0 %v117_v16 }
  0xa6   :  { %v107_v17 = vpop.f32.mrf.mxu0 }
  0xa7   :  { %v108_v19 = vadd.f32 %v231_v11, %v107_v17 }
  0xa9   :  { %v113_v20 = vadd.f32 %v111_v18, %v108_v19 }
  0xab   :  { %116 = vst.msk [vmem:[%s350_s6 + $0x8] sm:$0xff] %vm114_vm0, %v113_v20  ;;  %v120_v21 = vsel %vm114_vm0, %v113_v20, 0.0 }
  0xac   :  { %121 = vadd.xlane.f32.xlu0 %v120_v21 }
 0x117   :  { %v119_v29 = vpop.xlane.xlu0 %118 }
 0x118   :  { %v130_v30 = vmul.f32 %v129_v28, %v119_v29 }
 0x11a   :  { %v132_v31 = vsub.f32 %v112_v15, %v130_v30 }
 0x11c   :  { %v134_v32 = vmul.f32 %v132_v31, %v132_v31 }
 0x11e   :  { %v136_v33 = vsel %vm114_vm0, %v134_v32, 0.0 }
 0x11f   :  { %137 = vadd.xlane.f32.xlu1 %v136_v33  ;;  %v122_v34 = vpop.xlane.xlu0 %121 }
 0x120   :  { %v131_v35 = vmul.f32 %v129_v28, %v122_v34 }
 0x122   :  { %v133_v36 = vsub.f32 %v113_v20, %v131_v35 }
 0x124   :  { %v135_v37 = vmul.f32 %v133_v36, %v133_v36 }
 0x126   :  { %v139_v38 = vsel %vm114_vm0, %v135_v37, 0.0 }
 0x127   :  { %140 = vadd.xlane.f32.xlu1 %v139_v38 }
 0x192   :  { %v138_v39 = vpop.xlane.xlu1 %137 }
 0x193   :  { %v142_v40 = vmul.f32 %v138_v39, %v129_v28 }
 0x195   :  { %v144_v41 = vadd.f32 1e-05, %v142_v40 }
 0x197   :  { %236 = vrsqrt.f32 %v144_v41  ;;  %vm152_vm3 = vweird.f32 %v144_v41 }
 0x19a   :  { %v141_v42 = vpop.xlane.xlu1 %140 }
 0x19b   :  { %v143_v43 = vmul.f32 %v141_v42, %v129_v28 }
 0x19d   :  { %v237_v44 = vpop.eup %236  ;;  %v145_v45 = vadd.f32 1e-05, %v143_v43 }
 0x19e   :  { %v147_v46 = vmul.f32 %v237_v44, %v144_v41  ;;  %vm153_vm2 = vweird.f32 %v237_v44 }
 0x19f   :  { %238 = vrsqrt.f32 %v145_v45  ;;  %vm154_vm4 = vmor %vm152_vm3, %vm153_vm2  ;;  %vm162_vm6 = vweird.f32 %v145_v45 }
 0x1a0   :  { %v148_v47 = vmul.f32 %v237_v44, %v147_v46 }
 0x1a2   :  { %v149_v48 = vmul.f32 0.5, %v148_v47 }
 0x1a4   :  { %v150_v49 = vsub.f32 1.5, %v149_v48 }
 0x1a5   :  { %v239_v50 = vpop.eup %238 }
 0x1a6   :  { %v151_v51 = vmul.f32 %v237_v44, %v150_v49  ;;  %v157_v52 = vmul.f32 %v239_v50, %v145_v45  ;;  %vm163_vm5 = vweird.f32 %v239_v50 }
 0x1a7   :  { %vm164_vm7 = vmor %vm162_vm6, %vm163_vm5 }
 0x1a8   :  { %v155_v54 = vsel %vm154_vm4, %v237_v44, %v151_v51  ;;  %v158_v55 = vmul.f32 %v239_v50, %v157_v52 }
 0x1a9   :  { %v166_v57 = vmul.f32 %v155_v54, %v132_v31 }
 0x1aa   :  { %v159_v58 = vmul.f32 0.5, %v158_v55 }
 0x1ab   :  { %v172_v59 = vmul.f32 %v232_v53, %v166_v57 }
 0x1ac   :  { %v160_v60 = vsub.f32 1.5, %v159_v58 }
 0x1ad   :  { %v178_v61 = vadd.f32 %v233_v56, %v172_v59 }
 0x1ae   :  { %v161_v62 = vmul.f32 %v239_v50, %v160_v60 }
 0x1af   :  { %180 = vst.msk [vmem:[%s353_s7] sm:$0xff] %vm114_vm0, %v178_v61 }
 0x1b0   :  { %v165_v63 = vsel %vm164_vm7, %v239_v50, %v161_v62 }
 0x1b1   :  { %v167_v0 = vmul.f32 %v165_v63, %v133_v36 }
 0x1b3   :  { %v173_v1 = vmul.f32 %v232_v53, %v167_v0 }
 0x1b5   :  { %v179_v2 = vadd.f32 %v233_v56, %v173_v1 }
 0x1b7   :  { %181 = vst.msk [vmem:[%s353_s7 + $0x8] sm:$0xff] %vm114_vm0, %v179_v2 }

// kernel: hybrid_modality_projector_forward.33
= control target key start
LH: loop header
LB: loop body
LE: loop exit
PB: predicated region body
PF: predicated region fallthrough
CT: control target
= control target key end

     0   :  { %vm49_vm0 = vcmask 261120   ;;  %v167_v16 = vmov 32.0   ;;  %s256_s1 = inlined_call_operand.vmem [shape: bf16[32,32], index: 1, kind: input, shape index: {}]   ;;  %s257_s0 = inlined_call_operand.vmem [shape: f32[16,32], index: 0, kind: input, shape index: {}]   ;;  %s258_s2 = inlined_call_operand.vmem [shape: f32[1,32], index: 2, kind: input, shape index: {}]   ;;  %s259_s3 = inlined_call_operand.vmem [shape: f32[16,32], index: 3, kind: input, shape index: {}]   ;;  %s260_s6 = inlined_call_operand.vmem [shape: f32[16,32], index: 6, kind: output, shape index: {0}]   ;;  %s261_s4 = inlined_call_operand.vmem [shape: f32[1,32], index: 4, kind: input, shape index: {}]   ;;  %s262_s5 = inlined_call_operand.vmem [shape: f32[1,32], index: 5, kind: input, shape index: {}]   ;;  %s263_s7 = inlined_call_operand.vmem [shape: f32[16,32], index: 7, kind: output, shape index: {1}]  }
   0x1   :  { %v156_v0 = vld [vmem:[%s256_s1 + $0x8] sm:$0xff]  ;;  %v155_v1 = vld [vmem:[%s256_s1] sm:$0xff]  ;;  %161 = vrcp.f32 %v167_v16 }
   0x2   :  { %59 = vmatpush.bf16.msra.mxu0 %v156_v0  ;;  %v26_v2 = vld [vmem:[%s257_s0] sm:$0xff]  ;;  %v27_v3 = vld [vmem:[%s257_s0 + $0x8] sm:$0xff] }
   0x3   :  { %v28_v4 = vpack.c.bf16 %v27_v3, %v26_v2  ;;  %v158_v5 = vld [vmem:[%s258_s2] ss:$0 sm:$0xff]  ;;  %v68_v12 = vld [vmem:[%s259_s3 + $0x8] sm:$0xff] }
   0x4   :  { %v67_v7 = vld [vmem:[%s259_s3] sm:$0xff] }
   0x5   :  { %v159_v47 = vld [vmem:[%s261_s4] ss:$0 sm:$0xff] }
   0x6   :  { %60 = vmatpush.bf16.msra.mxu0 %v155_v1  ;;  %v160_v50 = vld [vmem:[%s262_s5] ss:$0 sm:$0xff] }
   0x7   :  { %v162_v17 = vpop.eup %161 }
   0x8   :  { %v80_v18 = vmul.f32 32.0, %v162_v17  ;;  %vm84_vm1 = vweird.f32 %v162_v17 }
   0x9   :  { %154 = vmatmul.msk.bf16.vlgmr.msra.gmra.mxu0 %vm49_vm0, %v28_v4 }
   0xa   :  { %v81_v19 = vsub.f32 1.0, %v80_v18 }
   0xc   :  { %v82_v20 = vmul.f32 %v162_v17, %v81_v19 }
   0xe   :  { %v83_v21 = vadd.f32 %v162_v17, %v82_v20 }
  0x10   :  { %v85_v22 = vsel %vm84_vm1, %v162_v17, %v83_v21 }
  0x86   :  { %v62_v6 = vpop.f32.mrf.mxu0 }
  0x87   :  { %v63_v8 = vadd.f32 %v158_v5, %v62_v6 }
  0x89   :  { %v69_v9 = vadd.f32 %v67_v7, %v63_v8 }
  0x8b   :  { %71 = vst.msk [vmem:[%s260_s6] sm:$0xff] %vm49_vm0, %v69_v9  ;;  %v73_v10 = vsel %vm49_vm0, %v69_v9, 0.0 }
  0x8c   :  { %74 = vadd.xlane.f32.xlu0 %v73_v10 }
  0x8e   :  { %v64_v11 = vpop.f32.mrf.mxu0 }
  0x8f   :  { %v65_v13 = vadd.f32 %v158_v5, %v64_v11 }
  0x91   :  { %v70_v14 = vadd.f32 %v68_v12, %v65_v13 }
  0x93   :  { %72 = vst.msk [vmem:[%s260_s6 + $0x8] sm:$0xff] %vm49_vm0, %v70_v14  ;;  %v76_v15 = vsel %vm49_vm0, %v70_v14, 0.0 }
  0x94   :  { %77 = vadd.xlane.f32.xlu0 %v76_v15 }
  0xff   :  { %v75_v23 = vpop.xlane.xlu0 %74 }
 0x100   :  { %v86_v24 = vmul.f32 %v85_v22, %v75_v23 }
 0x102   :  { %v88_v25 = vsub.f32 %v69_v9, %v86_v24 }
 0x104   :  { %v90_v26 = vmul.f32 %v88_v25, %v88_v25 }
 0x106   :  { %v92_v27 = vsel %vm49_vm0, %v90_v26, 0.0 }
 0x107   :  { %93 = vadd.xlane.f32.xlu1 %v92_v27  ;;  %v78_v28 = vpop.xlane.xlu0 %77 }
 0x108   :  { %v87_v29 = vmul.f32 %v85_v22, %v78_v28 }
 0x10a   :  { %v89_v30 = vsub.f32 %v70_v14, %v87_v29 }
 0x10c   :  { %v91_v31 = vmul.f32 %v89_v30, %v89_v30 }
 0x10e   :  { %v95_v32 = vsel %vm49_vm0, %v91_v31, 0.0 }
 0x10f   :  { %96 = vadd.xlane.f32.xlu1 %v95_v32 }
 0x17a   :  { %v94_v33 = vpop.xlane.xlu1 %93 }
 0x17b   :  { %v98_v34 = vmul.f32 %v94_v33, %v85_v22 }
 0x17d   :  { %v100_v35 = vadd.f32 1e-05, %v98_v34 }
 0x17f   :  { %163 = vrsqrt.f32 %v100_v35  ;;  %vm108_vm3 = vweird.f32 %v100_v35 }
 0x182   :  { %v97_v36 = vpop.xlane.xlu1 %96 }
 0x183   :  { %v99_v37 = vmul.f32 %v97_v36, %v85_v22 }
 0x185   :  { %v164_v38 = vpop.eup %163  ;;  %v101_v39 = vadd.f32 1e-05, %v99_v37 }
 0x186   :  { %v103_v40 = vmul.f32 %v164_v38, %v100_v35  ;;  %vm109_vm2 = vweird.f32 %v164_v38 }
 0x187   :  { %165 = vrsqrt.f32 %v101_v39  ;;  %vm110_vm4 = vmor %vm108_vm3, %vm109_vm2  ;;  %vm118_vm6 = vweird.f32 %v101_v39 }
 0x188   :  { %v104_v41 = vmul.f32 %v164_v38, %v103_v40 }
 0x18a   :  { %v105_v42 = vmul.f32 0.5, %v104_v41 }
 0x18c   :  { %v106_v43 = vsub.f32 1.5, %v105_v42 }
 0x18d   :  { %v166_v44 = vpop.eup %165 }
 0x18e   :  { %v107_v45 = vmul.f32 %v164_v38, %v106_v43  ;;  %v113_v46 = vmul.f32 %v166_v44, %v101_v39  ;;  %vm119_vm5 = vweird.f32 %v166_v44 }
 0x18f   :  { %vm120_vm7 = vmor %vm118_vm6, %vm119_vm5 }
 0x190   :  { %v111_v48 = vsel %vm110_vm4, %v164_v38, %v107_v45  ;;  %v114_v49 = vmul.f32 %v166_v44, %v113_v46 }
 0x191   :  { %v122_v51 = vmul.f32 %v111_v48, %v88_v25 }
 0x192   :  { %v115_v52 = vmul.f32 0.5, %v114_v49 }
 0x193   :  { %v128_v53 = vmul.f32 %v159_v47, %v122_v51 }
 0x194   :  { %v116_v54 = vsub.f32 1.5, %v115_v52 }
 0x195   :  { %v134_v55 = vadd.f32 %v160_v50, %v128_v53 }
 0x196   :  { %v117_v56 = vmul.f32 %v166_v44, %v116_v54 }
 0x197   :  { %136 = vst.msk [vmem:[%s263_s7] sm:$0xff] %vm49_vm0, %v134_v55 }
 0x198   :  { %v121_v57 = vsel %vm120_vm7, %v166_v44, %v117_v56 }
 0x199   :  { %v123_v58 = vmul.f32 %v121_v57, %v89_v30 }
 0x19b   :  { %v129_v59 = vmul.f32 %v159_v47, %v123_v58 }
 0x19d   :  { %v135_v60 = vadd.f32 %v160_v50, %v129_v59 }
 0x19f   :  { %137 = vst.msk [vmem:[%s263_s7 + $0x8] sm:$0xff] %vm49_vm0, %v135_v60 }

// kernel: hybrid_modality_projector_forward.41
= control target key start
LH: loop header
LB: loop body
LE: loop exit
PB: predicated region body
PF: predicated region fallthrough
CT: control target
= control target key end

     0   :  { %vm106_vm0 = vcmask 261120   ;;  %s224_s1 = inlined_call_operand.vmem [shape: bf16[128,32], index: 1, kind: input, shape index: {}]   ;;  %s225_s2 = inlined_call_operand.vmem [shape: f32[1,32], index: 2, kind: input, shape index: {}]   ;;  %s226_s0 = inlined_call_operand.vmem [shape: f32[16,128], index: 0, kind: input, shape index: {}]   ;;  %s227_s3 = inlined_call_operand.vmem [shape: f32[16,32], index: 3, kind: input, shape index: {}]   ;;  %s228_s4 = inlined_call_operand.vmem [shape: f32[16,32], index: 4, kind: output, shape index: {}]  }
   0x1   :  { %v152_v0 = vld [vmem:[%s224_s1 + $0x38] sm:$0xff]  ;;  %v151_v1 = vld [vmem:[%s224_s1 + $0x30] sm:$0xff]  ;;  %v150_v2 = vld [vmem:[%s224_s1 + $0x28] sm:$0xff] }
   0x2   :  { %88 = vmatpush.bf16.msra.mxu0 %v152_v0  ;;  %v149_v3 = vld [vmem:[%s224_s1 + $0x20] sm:$0xff]  ;;  %v148_v4 = vld [vmem:[%s224_s1 + $0x18] sm:$0xff]  ;;  %v147_v5 = vld [vmem:[%s224_s1 + $0x10] sm:$0xff] }
   0x3   :  { %v146_v6 = vld [vmem:[%s224_s1 + $0x8] sm:$0xff]  ;;  %v145_v7 = vld [vmem:[%s224_s1] sm:$0xff] }
   0x4   :  { %v17_v8 = vld [vmem:[%s226_s0] sm:$0xff]  ;;  %v18_v9 = vld [vmem:[%s226_s0 + $0x8] sm:$0xff] }
   0x5   :  { %v19_v10 = vpack.c.bf16 %v18_v9, %v17_v8  ;;  %v153_v11 = vld [vmem:[%s225_s2] ss:$0 sm:$0xff]  ;;  %v103_v17 = vld [vmem:[%s227_s3 + $0x8] sm:$0xff] }
   0x6   :  { %89 = vmatpush.bf16.msra.mxu0 %v151_v1  ;;  %v102_v13 = vld [vmem:[%s227_s3] sm:$0xff] }
   0xa   :  { %90 = vmatpush.bf16.msra.mxu0 %v150_v2 }
   0xe   :  { %91 = vmatpush.bf16.msra.mxu0 %v149_v3 }
  0x12   :  { %92 = vmatpush.bf16.msra.mxu0 %v148_v4 }
  0x16   :  { %93 = vmatpush.bf16.msra.mxu0 %v147_v5 }
  0x1a   :  { %94 = vmatpush.bf16.msra.mxu0 %v146_v6 }
  0x1e   :  { %95 = vmatpush.bf16.msra.mxu0 %v145_v7 }
  0x21   :  { %96 = vmatmul.bf16.vlgmr.msra.gmra.mxu0 %v19_v10 }
  0x9e   :  { %v97_v12 = vpop.f32.mrf.mxu0 }
  0x9f   :  { %v98_v14 = vadd.f32 %v153_v11, %v97_v12 }
  0xa1   :  { %v104_v15 = vadd.f32 %v102_v13, %v98_v14 }
  0xa3   :  { %107 = vst.msk [vmem:[%s228_s4] sm:$0xff] %vm106_vm0, %v104_v15 }
  0xa6   :  { %v99_v16 = vpop.f32.mrf.mxu0 }
  0xa7   :  { %v100_v18 = vadd.f32 %v153_v11, %v99_v16 }
  0xa9   :  { %v105_v19 = vadd.f32 %v103_v17, %v100_v18 }
  0xab   :  { %108 = vst.msk [vmem:[%s228_s4 + $0x8] sm:$0xff] %vm106_vm0, %v105_v19 }

// kernel: hybrid_modality_projector_forward.42
= control target key start
LH: loop header
LB: loop body
LE: loop exit
PB: predicated region body
PF: predicated region fallthrough
CT: control target
= control target key end

     0   :  { %vm38_vm0 = vcmask 261120   ;;  %vm144_vm6 = vcmask 523264   ;;  %s225_s1 = inlined_call_operand.vmem [shape: bf16[32,64], index: 1, kind: input, shape index: {}]   ;;  %s226_s0 = inlined_call_operand.vmem [shape: f32[16,32], index: 0, kind: input, shape index: {}]   ;;  %s227_s2 = inlined_call_operand.vmem [shape: f32[1,64], index: 2, kind: input, shape index: {}]   ;;  %s228_s3 = inlined_call_operand.vmem [shape: f32[16,64], index: 3, kind: output, shape index: {}]  }
   0x1   :  { %v163_v0 = vld [vmem:[%s225_s1 + $0x8] sm:$0xff]  ;;  %v162_v1 = vld [vmem:[%s225_s1] sm:$0xff] }
   0x2   :  { %48 = vmatpush.bf16.msra.mxu0 %v163_v0  ;;  %v15_v2 = vld [vmem:[%s226_s0] sm:$0xff]  ;;  %v16_v3 = vld [vmem:[%s226_s0 + $0x8] sm:$0xff] }
   0x3   :  { %v17_v4 = vpack.c.bf16 %v16_v3, %v15_v2  ;;  %v164_v5 = vld [vmem:[%s227_s2] ss:$0 sm:$0xff] }
   0x6   :  { %49 = vmatpush.bf16.msra.mxu0 %v162_v1 }
   0x9   :  { %159 = vmatmul.msk.bf16.vlgmr.msra.gmra.mxu0 %vm38_vm0, %v17_v4 }
  0x86   :  { %v51_v6 = vpop.f32.mrf.mxu0 }
  0x87   :  { %v204_v7 = vadd.f32 %v164_v5, %v51_v6 }
  0x89   :  { %v58_v8 = vmul.f32 0.70710677, %v204_v7 }
  0x8b   :  { %v60_v9 = vmul.f32 %v58_v8, %v58_v8 }
  0x8d   :  { %v61_v10 = vmin.f32 %v60_v9, 16.0 }
  0x8e   :  { %v53_v11 = vpop.f32.mrf.mxu0 }
  0x8f   :  { %v62_v12 = vmul.f32 2.1237322e-06, %v61_v10  ;;  %v73_v13 = vmul.f32 3.8918573e-05, %v61_v10  ;;  %v207_v14 = vadd.f32 %v164_v5, %v53_v11 }
  0x91   :  { %v63_v15 = vadd.f32 0.00028619796, %v62_v12  ;;  %v74_v16 = vadd.f32 0.001143296, %v73_v13  ;;  %v210_v17 = vmul.f32 0.70710677, %v207_v14 }
  0x92   :  { %v56_v13 = vmul.f32 0.5, %v204_v7  ;;  %v57_v7 = vmul.f32 0.5, %v207_v14 }
  0x93   :  { %v64_v18 = vmul.f32 %v63_v15, %v61_v10  ;;  %v75_v19 = vmul.f32 %v74_v16, %v61_v10  ;;  %v100_v20 = vmul.f32 %v210_v17, %v210_v17 }
  0x95   :  { %v76_v21 = vadd.f32 0.014752088, %v75_v19  ;;  %v65_v22 = vadd.f32 0.0036580483, %v64_v18  ;;  %v101_v23 = vmin.f32 %v100_v20, 16.0 }
  0x97   :  { %v77_v24 = vmul.f32 %v76_v21, %v61_v10  ;;  %v102_v25 = vmul.f32 2.1237322e-06, %v101_v23  ;;  %v113_v26 = vmul.f32 3.8918573e-05, %v101_v23  ;;  %v66_v28 = vmul.f32 %v65_v22, %v61_v10 }
  0x99   :  { %v78_v27 = vadd.f32 0.112945676, %v77_v24  ;;  %v103_v29 = vadd.f32 0.00028619796, %v102_v25  ;;  %v114_v30 = vadd.f32 0.001143296, %v113_v26 }
  0x9a   :  { %v67_v35 = vadd.f32 0.05243302, %v66_v28 }
  0x9b   :  { %v79_v31 = vmul.f32 %v78_v27, %v61_v10  ;;  %v104_v32 = vmul.f32 %v103_v29, %v101_v23  ;;  %v115_v33 = vmul.f32 %v114_v30, %v101_v23 }
  0x9c   :  { %v68_v41 = vmul.f32 %v67_v35, %v61_v10 }
  0x9d   :  { %v80_v34 = vadd.f32 0.4994258, %v79_v31  ;;  %v116_v36 = vadd.f32 0.014752088, %v115_v33  ;;  %v105_v38 = vadd.f32 0.0036580483, %v104_v32 }
  0x9e   :  { %v69_v45 = vadd.f32 0.18741608, %v68_v41 }
  0x9f   :  { %v81_v37 = vmul.f32 %v80_v34, %v61_v10  ;;  %v117_v39 = vmul.f32 %v116_v36, %v101_v23  ;;  %v106_v43 = vmul.f32 %v105_v38, %v101_v23 }
  0xa0   :  { %v70_v50 = vmul.f32 %v69_v45, %v61_v10 }
  0xa1   :  { %v82_v40 = vadd.f32 1.0, %v81_v37  ;;  %v118_v42 = vadd.f32 0.112945676, %v117_v39  ;;  %v107_v47 = vadd.f32 0.05243302, %v106_v43 }
  0xa2   :  { %v71_v56 = vadd.f32 1.1283791, %v70_v50 }
  0xa3   :  { %165 = vrcp.f32 %v82_v40  ;;  %v119_v44 = vmul.f32 %v118_v42, %v101_v23  ;;  %v108_v53 = vmul.f32 %v107_v47, %v101_v23  ;;  %v94_v55 = vand.u32 2147483648, %v82_v40 }
  0xa4   :  { %v92_v58 = vand.u32 2147483647, %v82_v40  ;;  %vm88_vm2 = vweird.f32 %v82_v40  ;;  %v72_v63 = vmul.f32 %v71_v56, %v58_v8 }
  0xa5   :  { %v120_v46 = vadd.f32 0.4994258, %v119_v44  ;;  %v109_v59 = vadd.f32 0.18741608, %v108_v53  ;;  %v95_v61 = vor.u32 1.1754944e-38, %v94_v55 }
  0xa6   :  { %vm93_vm4 = vcmp.eq.f32.partialorder %v92_v58, 8.507059e+37 }
  0xa7   :  { %v121_v48 = vmul.f32 %v120_v46, %v101_v23  ;;  %v110_v2 = vmul.f32 %v109_v59, %v101_v23 }
  0xa9   :  { %v166_v49 = vpop.eup %165  ;;  %v122_v52 = vadd.f32 1.0, %v121_v48  ;;  %v111_v10 = vadd.f32 1.1283791, %v110_v2 }
  0xaa   :  { %v84_v51 = vmul.f32 %v166_v49, %v82_v40  ;;  %vm89_vm1 = vweird.f32 %v166_v49 }
  0xab   :  { %167 = vrcp.f32 %v122_v52  ;;  %vm90_vm3 = vmor %vm88_vm2, %vm89_vm1  ;;  %v134_v9 = vand.u32 2147483648, %v122_v52  ;;  %v132_v12 = vand.u32 2147483647, %v122_v52  ;;  %vm128_vm7 = vweird.f32 %v122_v52 }
  0xac   :  { %v85_v54 = vsub.f32 1.0, %v84_v51  ;;  %v112_v19 = vmul.f32 %v111_v10, %v210_v17 }
  0xad   :  { %v135_v18 = vor.u32 1.1754944e-38, %v134_v9  ;;  %vm133_vm9 = vcmp.eq.f32.partialorder %v132_v12, 8.507059e+37 }
  0xae   :  { %v86_v57 = vmul.f32 %v166_v49, %v85_v54 }
  0xb0   :  { %v87_v60 = vadd.f32 %v166_v49, %v86_v57 }
  0xb1   :  { %v168_v62 = vpop.eup %167 }
  0xb2   :  { %v91_v0 = vsel %vm90_vm3, %v166_v49, %v87_v60  ;;  %v124_v3 = vmul.f32 %v168_v62, %v122_v52  ;;  %vm129_vm5 = vweird.f32 %v168_v62 }
  0xb3   :  { %v96_v1 = vsel %vm93_vm4, %v95_v61, %v91_v0  ;;  %vm130_vm8 = vmor %vm128_vm7, %vm129_vm5 }
  0xb4   :  { %v97_v4 = vmul.f32 %v96_v1, %v72_v63  ;;  %v125_v5 = vsub.f32 1.0, %v124_v3 }
  0xb6   :  { %v160_v6 = vclamps-f32 %v97_v4, 1.0  ;;  %v126_v11 = vmul.f32 %v168_v62, %v125_v5 }
  0xb8   :  { %v140_v15 = vadd.f32 1.0, %v160_v6  ;;  %v127_v16 = vadd.f32 %v168_v62, %v126_v11 }
  0xba   :  { %v142_v8 = vmul.f32 %v140_v15, %v56_v13  ;;  %v131_v20 = vsel %vm130_vm8, %v168_v62, %v127_v16 }
  0xbb   :  { %v136_v21 = vsel %vm133_vm9, %v135_v18, %v131_v20 }
  0xbc   :  { %145 = vst.msk [vmem:[%s228_s3] sm:$0xff] %vm144_vm6, %v142_v8  ;;  %v137_v22 = vmul.f32 %v136_v21, %v112_v19 }
  0xbe   :  { %v161_v23 = vclamps-f32 %v137_v22, 1.0 }
  0xc0   :  { %v141_v24 = vadd.f32 1.0, %v161_v23 }
  0xc2   :  { %v143_v25 = vmul.f32 %v141_v24, %v57_v7 }
  0xc4   :  { %146 = vst.msk [vmem:[%s228_s3 + $0x8] sm:$0xff] %vm144_vm6, %v143_v25 }

// kernel: hybrid_modality_projector_forward.43
= control target key start
LH: loop header
LB: loop body
LE: loop exit
PB: predicated region body
PF: predicated region fallthrough
CT: control target
= control target key end

     0   :  { %s293_s0 = inlined_call_operand.vmem [shape: f32[16,64], index: 0, kind: input, shape index: {}]   ;;  %s294_s1 = inlined_call_operand.vmem [shape: bf16[64,32], index: 1, kind: input, shape index: {}]   ;;  %s295_s2 = inlined_call_operand.vmem [shape: f32[1,32], index: 2, kind: input, shape index: {}]   ;;  %s296_s3 = inlined_call_operand.vmem [shape: f32[1,32], index: 3, kind: input, shape index: {}]   ;;  %s297_s4 = inlined_call_operand.vmem [shape: f32[1,32], index: 4, kind: input, shape index: {}]   ;;  %s298_s5 = inlined_call_operand.hbm [shape: f32[16,32], index: 5, kind: output, shape index: {}]  }
   0x1   :  { %v183_v0 = vld [vmem:[%s294_s1 + $0x18] sm:$0xff]  ;;  %v182_v1 = vld [vmem:[%s294_s1 + $0x10] sm:$0xff] }
   0x2   :  { %69 = vmatpush.bf16.msra.mxu0 %v183_v0 }
   0x3   :  { %10 = vsyncpa [#allocation3], 0  ;;  %v181_v2 = vld [vmem:[%s294_s1 + $0x8] sm:$0xff]  ;;  %v180_v3 = vld [vmem:[%s294_s1] sm:$0xff]  ;;  %vm61_vm0 = vcmask 523264   ;;  %vm79_vm1 = vcmask 261120  }
   0x4   :  { %v22_v4 = vld [vmem:[%s293_s0] sm:$0xff]  ;;  %v23_v5 = vld [vmem:[%s293_s0 + $0x8] sm:$0xff]  ;;  %v223_v14 = vmov 32.0   ;;  %s151_s11 = sshll.u32 %s298_s5, 4  ;;  %s226_s12 = smov 8   ;;  %s152_s11 = int_to_ptr.hbm [resolvable:$true] %s151_s11 }
   0x5   :  { %v24_v6 = vpack.c.bf16 %v23_v5, %v22_v4  ;;  %v188_v7 = vld [vmem:[%s295_s2] ss:$0 sm:$0xff]  ;;  %191 = vrcp.f32 %v223_v14 }
   0x6   :  { %70 = vmatpush.bf16.msra.mxu0 %v182_v1  ;;  %v189_v45 = vld [vmem:[%s296_s3] ss:$0 sm:$0xff]  ;;  %s224_s3 = smov [#allocation2]  }
   0x7   :  { %v190_v49 = vld [vmem:[%s297_s4] ss:$0 sm:$0xff]  ;;  %s149_s8 = sshll.u32 %s224_s3, 4  ;;  %s225_s4 = smov 128   ;;  %s150_s8 = int_to_ptr.vmem [resolvable:$true] %s149_s8 }
   0xa   :  { %71 = vmatpush.bf16.msra.mxu0 %v181_v2 }
   0xb   :  { %v192_v15 = vpop.eup %191 }
   0xc   :  { %v87_v16 = vmul.f32 32.0, %v192_v15  ;;  %vm91_vm2 = vweird.f32 %v192_v15 }
   0xe   :  { %72 = vmatpush.bf16.msra.mxu0 %v180_v3  ;;  %v88_v17 = vsub.f32 1.0, %v87_v16 }
  0x10   :  { %v89_v18 = vmul.f32 %v192_v15, %v88_v17 }
  0x11   :  { %179 = vmatmul.msk.bf16.vlgmr.msra.gmra.mxu0 %vm61_vm0, %v24_v6 }
  0x12   :  { %v90_v19 = vadd.f32 %v192_v15, %v89_v18 }
  0x14   :  { %v92_v20 = vsel %vm91_vm2, %v192_v15, %v90_v19 }
  0x8e   :  { %v74_v8 = vpop.f32.mrf.mxu0 }
  0x8f   :  { %v75_v9 = vadd.f32 %v188_v7, %v74_v8 }
  0x91   :  { %v80_v10 = vsel %vm79_vm1, %v75_v9, 0.0 }
  0x92   :  { %81 = vadd.xlane.f32.xlu0 %v80_v10 }
  0x96   :  { %v76_v11 = vpop.f32.mrf.mxu0 }
  0x97   :  { %v77_v12 = vadd.f32 %v188_v7, %v76_v11 }
  0x99   :  { %v83_v13 = vsel %vm79_vm1, %v77_v12, 0.0 }
  0x9a   :  { %84 = vadd.xlane.f32.xlu0 %v83_v13 }
 0x105   :  { %v82_v21 = vpop.xlane.xlu0 %81 }
 0x106   :  { %v93_v22 = vmul.f32 %v92_v20, %v82_v21 }
 0x108   :  { %v95_v23 = vsub.f32 %v75_v9, %v93_v22 }
 0x10a   :  { %v97_v24 = vmul.f32 %v95_v23, %v95_v23 }
 0x10c   :  { %v99_v25 = vsel %vm79_vm1, %v97_v24, 0.0 }
 0x10d   :  { %100 = vadd.xlane.f32.xlu1 %v99_v25  ;;  %v85_v26 = vpop.xlane.xlu0 %84 }
 0x10e   :  { %v94_v27 = vmul.f32 %v92_v20, %v85_v26 }
 0x110   :  { %v96_v28 = vsub.f32 %v77_v12, %v94_v27 }
 0x112   :  { %v98_v29 = vmul.f32 %v96_v28, %v96_v28 }
 0x114   :  { %v102_v30 = vsel %vm79_vm1, %v98_v29, 0.0 }
 0x115   :  { %103 = vadd.xlane.f32.xlu1 %v102_v30 }
 0x180   :  { %v101_v31 = vpop.xlane.xlu1 %100 }
 0x181   :  { %v105_v32 = vmul.f32 %v101_v31, %v92_v20 }
 0x183   :  { %v107_v33 = vadd.f32 1e-05, %v105_v32 }
 0x185   :  { %193 = vrsqrt.f32 %v107_v33  ;;  %vm115_vm4 = vweird.f32 %v107_v33 }
 0x188   :  { %v104_v34 = vpop.xlane.xlu1 %103 }
 0x189   :  { %v106_v35 = vmul.f32 %v104_v34, %v92_v20 }
 0x18b   :  { %v194_v36 = vpop.eup %193  ;;  %v108_v37 = vadd.f32 1e-05, %v106_v35 }
 0x18c   :  { %v110_v38 = vmul.f32 %v194_v36, %v107_v33  ;;  %vm116_vm3 = vweird.f32 %v194_v36 }
 0x18d   :  { %195 = vrsqrt.f32 %v108_v37  ;;  %vm117_vm5 = vmor %vm115_vm4, %vm116_vm3  ;;  %vm125_vm7 = vweird.f32 %v108_v37 }
 0x18e   :  { %v111_v39 = vmul.f32 %v194_v36, %v110_v38 }
 0x190   :  { %v112_v40 = vmul.f32 0.5, %v111_v39 }
 0x192   :  { %v113_v41 = vsub.f32 1.5, %v112_v40 }
 0x193   :  { %v196_v42 = vpop.eup %195 }
 0x194   :  { %v114_v43 = vmul.f32 %v194_v36, %v113_v41  ;;  %v120_v44 = vmul.f32 %v196_v42, %v108_v37  ;;  %vm126_vm6 = vweird.f32 %v196_v42 }
 0x195   :  { %vm127_vm8 = vmor %vm125_vm7, %vm126_vm6 }
 0x196   :  { %v118_v46 = vsel %vm117_vm5, %v194_v36, %v114_v43  ;;  %v121_v47 = vmul.f32 %v196_v42, %v120_v44 }
 0x197   :  { %v129_v48 = vmul.f32 %v118_v46, %v95_v23 }
 0x198   :  { %v122_v50 = vmul.f32 0.5, %v121_v47 }
 0x199   :  { %v135_v51 = vmul.f32 %v189_v45, %v129_v48 }
 0x19a   :  { %v123_v52 = vsub.f32 1.5, %v122_v50 }
 0x19b   :  { %v141_v53 = vadd.f32 %v190_v49, %v135_v51 }
 0x19c   :  { %v124_v54 = vmul.f32 %v196_v42, %v123_v52 }
 0x19d   :  { %143 = vst.msk [vmem:[#allocation2] sm:$0xff] %vm79_vm1, %v141_v53 }
 0x19e   :  { %v128_v55 = vsel %vm127_vm8, %v196_v42, %v124_v54 }
 0x19f   :  { %v130_v56 = vmul.f32 %v128_v55, %v96_v28 }
 0x1a1   :  { %v136_v57 = vmul.f32 %v189_v45, %v130_v56 }
 0x1a3   :  { %v142_v58 = vadd.f32 %v190_v49, %v136_v57 }
 0x1a5   :  { %144 = vst.msk [vmem:[#allocation2 + $0x8] sm:$0xff] %vm79_vm1, %v142_v58 }
 0x1a6   :  { %157 = dma.vmem_to_hbm [thread:$0]  %s150_s8, 256, %s152_s11, [#allocation3], %s225_s4, %s225_s4, %s226_s12  }
 0x1a7   :  { %221 = dma.done.wait [#allocation3], 256  }
 0x1a8   :  { %222 = vsyncadd [#allocation3], 4294967040 }
 0x1a9   :  { %162 = vsyncpa [#allocation3], 1 }

</bundles_post_ra>
